<compile_context>
chip_gen: v7x
topology: tpu7x:2x2x1
jax: 0.10.0
libtpu: 0.0.40
codegen_flags: <defaults>
</compile_context>

<pallas_src>
import functools

import jax
import jax.numpy as jnp
from jax.experimental import pallas as pl
from jax.experimental.pallas import tpu as pltpu

BN_EPS = 1e-5
LANE = 128                       # lane width == Cout tile
VMEM_LIMIT = 48 * 1024 * 1024    # explicit scoped-VMEM budget (safe on v5e/v6e/v7x)


def _round_up(x, m):
    return (x + m - 1) // m * m


# ----------------------------- Pallas kernel ------------------------------- #
def _conv_bn_kernel(*refs, taps, n_inputs, n_pos, apply_relu):
    """Fused 3x3 conv (9 shifted matmuls) + folded-BN shift + optional ReLU.

    refs layout:
      refs[:n_inputs]    : flattened inputs, block (1, Ni, Cin_p) bf16
      refs[n_inputs]     : folded weights,   block (9, Cin_p, LANE) bf16
      refs[n_inputs + 1] : BN shift,         block (1, LANE) fp32
      refs[n_inputs + 2] : output,           block (1, n_pos, LANE) bf16
    taps: static tuple of (input_index, flat_row_offset) for the 9 taps.
    """
    x_refs = refs[:n_inputs]
    w_ref = refs[n_inputs]
    shift_ref = refs[n_inputs + 1]
    o_ref = refs[n_inputs + 2]

    acc = None
    for t, (src, off) in enumerate(taps):
        lhs = x_refs[src][0, pl.ds(off, n_pos), :]          # (n_pos, Cin_p) bf16
        part = jnp.dot(lhs, w_ref[t], preferred_element_type=jnp.float32)  # MXU
        acc = part if acc is None else acc + part           # fp32 accumulation
    y = acc + shift_ref[...]                                 # fp32 epilogue (VPU)
    if apply_relu:
        y = jnp.maximum(y, 0.0)
    o_ref[0] = y.astype(o_ref.dtype)                         # lane-dense bf16 store


# ------------------------------ layer wrapper ------------------------------- #
def conv3x3_bn_act(x_nhwc, params, stride, apply_relu, cout_pad):
    """Conv2d(3x3, pad=1, stride in {1,2}) + folded BatchNorm2d (+ReLU).

    x_nhwc: (B, H, W, Cin_p) bf16, channels already zero-padded to Cin_p.
    Returns (B, Ho, Wo, cout_pad) bf16 (channels cout..cout_pad-1 are zero).
    """
    w, bias, gamma, beta, mean, var = params
    cin, cout = w.shape[2], w.shape[3]
    B, H, W, cin_p = x_nhwc.shape
    cout_p = cout_pad

    # ---- fold BN (and conv bias) into weights / per-channel shift ----------
    inv_std = 1.0 / jnp.sqrt(var + BN_EPS)
    scale = gamma * inv_std                                  # (cout,)
    shift = beta + (bias - mean) * scale                     # (cout,)
    w_f = w.astype(jnp.float32) * scale[None, None, None, :]
    w_p = jnp.zeros((3, 3, cin_p, cout_p), jnp.float32)
    w_p = w_p.at[:, :, :cin, :cout].set(w_f)
    w_p = w_p.reshape(9, cin_p, cout_p).astype(jnp.bfloat16)
    shift_p = jnp.zeros((1, cout_p), jnp.float32).at[0, :cout].set(shift)

    Ho = (H + 2 - 3) // stride + 1
    Wo = (W + 2 - 3) // stride + 1

    if stride == 2:
        # pad=1 conv; the extra bottom pad rows only feed discarded positions.
        xp = jnp.pad(x_nhwc, ((0, 0), (1, 3), (1, 1), (0, 0)))
        Hq, Wq = (H + 4) // 2, (W + 2) // 2
        parts = [xp[:, a::2, b::2, :].reshape(B, Hq * Wq, cin_p)
                 for a in range(2) for b in range(2)]        # parity decomposition
        taps = tuple(((kh % 2) * 2 + (kw % 2), (kh // 2) * Wq + (kw // 2))
                     for kh in range(3) for kw in range(3))
    else:
        xp = jnp.pad(x_nhwc, ((0, 0), (1, 2), (1, 1), (0, 0)))
        Hq, Wq = H + 3, W + 2
        parts = [xp.reshape(B, Hq * Wq, cin_p)]
        taps = tuple((0, kh * Wq + kw) for kh in range(3) for kw in range(3))

    n_pos = Ho * Wq          # Wq - Wo discarded columns per output row
    n_in = len(parts)
    n_ct = cout_p // LANE

    kernel = functools.partial(_conv_bn_kernel, taps=taps, n_inputs=n_in,
                               n_pos=n_pos, apply_relu=apply_relu)

    in_specs = [pl.BlockSpec((1, Hq * Wq, cin_p), lambda b, j: (b, 0, 0))
                for _ in range(n_in)]
    in_specs += [
        pl.BlockSpec((9, cin_p, LANE), lambda b, j: (0, 0, j)),
        pl.BlockSpec((1, LANE), lambda b, j: (0, j)),
    ]
    out_spec = pl.BlockSpec((1, n_pos, LANE), lambda b, j: (b, 0, j))

    flops = 2 * B * n_pos * 9 * cin_p * cout_p
    bytes_accessed = int(sum(p.size for p in parts) * 2 + w_p.size * 2
                         + shift_p.size * 4 + B * n_pos * cout_p * 2)
    cost = pl.CostEstimate(flops=flops, transcendentals=0,
                           bytes_accessed=bytes_accessed)

    out_ext = pl.pallas_call(
        kernel,
        out_shape=jax.ShapeDtypeStruct((B, n_pos, cout_p), jnp.bfloat16),
        grid=(B, n_ct),
        in_specs=in_specs,
        out_specs=out_spec,
        compiler_params=pltpu.CompilerParams(
            dimension_semantics=("parallel", "parallel"),
            vmem_limit_bytes=VMEM_LIMIT),
        cost_estimate=cost,
    )(*parts, w_p, shift_p)

    # drop the per-row scratch columns; keep channel padding for the next layer
    return out_ext.reshape(B, Ho, Wq, cout_p)[:, :, :Wo, :]


# ------------------------------- Stem forward ------------------------------- #
def stem_forward(x_nchw, all_params, out_dim):
    """Pallas Stem forward: NCHW input -> (B, H'*W', out_dim) fp32."""
    x = jnp.transpose(x_nchw, (0, 2, 3, 1))                  # NCHW -> NHWC
    B, H, W, cin = x.shape
    cin_p = _round_up(cin, LANE)
    x = jnp.pad(x, ((0, 0), (0, 0), (0, 0), (0, cin_p - cin))).astype(jnp.bfloat16)

    c_mid_p = _round_up(out_dim // 2, LANE)
    c_out_p = _round_up(out_dim, LANE)

    x = conv3x3_bn_act(x, all_params[0], stride=2, apply_relu=True, cout_pad=c_mid_p)
    x = conv3x3_bn_act(x, all_params[1], stride=2, apply_relu=True, cout_pad=c_out_p)
    x = conv3x3_bn_act(x, all_params[2], stride=1, apply_relu=False, cout_pad=c_out_p)

    B, Ho, Wo, _ = x.shape
    x = x[..., :out_dim].astype(jnp.float32)
    return x.reshape(B, Ho * Wo, out_dim)      # == Rearrange('b c h w -> b (h w) c')


# --------------------------- parameter init --------------------------------- #
def make_conv_bn_params(key, cin, cout):
    kw, kb, kg, kbe, km, kv = jax.random.split(key, 6)
    fan_in = 9 * cin
    w = jax.random.normal(kw, (3, 3, cin, cout), jnp.float32) / jnp.sqrt(fan_in)
    b = 0.05 * jax.random.normal(kb, (cout,), jnp.float32)
    gamma = 1.0 + 0.1 * jax.random.normal(kg, (cout,), jnp.float32)
    beta = 0.1 * jax.random.normal(kbe, (cout,), jnp.float32)
    mean = 0.1 * jax.random.normal(km, (cout,), jnp.float32)
    var = 0.5 + 0.5 * jnp.abs(jax.random.normal(kv, (cout,), jnp.float32))
    return (w, b, gamma, beta, mean, var)


# ---------------------------- pure-JAX reference ---------------------------- #
def _ref_conv_bn_act(x_nhwc, params, stride, apply_relu):
    w, b, g, be, m, v = params
    y = jax.lax.conv_general_dilated(
        x_nhwc, w, (stride, stride), ((1, 1), (1, 1)),
        dimension_numbers=("NHWC", "HWIO", "NHWC"),
        precision=jax.lax.Precision.HIGHEST)
    y = y + b
    y = (y - m) / jnp.sqrt(v + BN_EPS) * g + be
    return jnp.maximum(y, 0.0) if apply_relu else y


def stem_ref(x_nchw, all_params):
    x = jnp.transpose(x_nchw, (0, 2, 3, 1))
    x = _ref_conv_bn_act(x, all_params[0], 2, True)
    x = _ref_conv_bn_act(x, all_params[1], 2, True)
    x = _ref_conv_bn_act(x, all_params[2], 1, False)
    B, H, W, C = x.shape
    return x.reshape(B, H * W, C)


# --------------------------------- main -------------------------------------- #
if __name__ == "__main__":
    in_dim, out_dim = 3, 32           # small synthetic sizes (PyTorch default: 3 -> 768)
    B, H, W = 2, 16, 16

    key = jax.random.PRNGKey(0)
    kx, k1, k2, k3 = jax.random.split(key, 4)
    x = jax.random.normal(kx, (B, in_dim, H, W), jnp.float32)   # NCHW, like PyTorch

    params = (
        make_conv_bn_params(k1, in_dim, out_dim // 2),
        make_conv_bn_params(k2, out_dim // 2, out_dim),
        make_conv_bn_params(k3, out_dim, out_dim),
    )

    fwd = jax.jit(functools.partial(stem_forward, out_dim=out_dim))
    out = jax.block_until_ready(fwd(x, params))

    ref = jax.block_until_ready(stem_ref(x, params))
    assert out.shape == (B, (H // 4) * (W // 4), out_dim), out.shape
    # bf16 MXU operands (fp32 accumulation) vs fp32 HIGHEST reference -> ~1e-2 rel error.
    max_err = float(jnp.max(jnp.abs(out - ref)))
    assert jnp.allclose(out, ref, atol=1e-1, rtol=5e-2), max_err

    print("KERNEL_OK")
</pallas_src>

<mosaic_0001>
module attributes {stable_mosaic.version = 11 : i64} {
  func.func @_conv_bn_kernel(%arg0: i32, %arg1: i32, %arg2: memref<1x90x128xbf16, #tpu.memory_space<vmem>>, %arg3: memref<1x90x128xbf16, #tpu.memory_space<vmem>>, %arg4: memref<1x90x128xbf16, #tpu.memory_space<vmem>>, %arg5: memref<1x90x128xbf16, #tpu.memory_space<vmem>>, %arg6: memref<9x128x128xbf16, #tpu.memory_space<vmem>>, %arg7: memref<1x128xf32, #tpu.memory_space<vmem>>, %arg8: memref<1x72x128xbf16, #tpu.memory_space<vmem>>) attributes {dimension_semantics = [#tpu.dimension_semantics<parallel>, #tpu.dimension_semantics<parallel>], iteration_bounds = array<i64: 2, 1>, scalar_prefetch = 0 : i64, scratch_operands = 0 : i64, tpu.core_type = #tpu.core_type<tc>, window_params = [{transform_indices = @transform_0, window_bounds = array<i64: 1, 90, 128>}, {transform_indices = @transform_1, window_bounds = array<i64: 1, 90, 128>}, {transform_indices = @transform_2, window_bounds = array<i64: 1, 90, 128>}, {transform_indices = @transform_3, window_bounds = array<i64: 1, 90, 128>}, {transform_indices = @transform_4, window_bounds = array<i64: 9, 128, 128>}, {transform_indices = @transform_5, window_bounds = array<i64: 1, 128>}, {transform_indices = @transform_6, window_bounds = array<i64: 1, 72, 128>}]} {
    %c0 = arith.constant 0 : index
    %c0_0 = arith.constant 0 : index
    %c0_1 = arith.constant 0 : index
    %0 = vector.load %arg2[%c0, %c0_0, %c0_1] : memref<1x90x128xbf16, #tpu.memory_space<vmem>>, vector<1x72x128xbf16>
    %1 = vector.shape_cast %0 : vector<1x72x128xbf16> to vector<72x128xbf16>
    %c0_2 = arith.constant 0 : index
    %c0_3 = arith.constant 0 : index
    %c0_4 = arith.constant 0 : index
    %2 = vector.load %arg6[%c0_2, %c0_3, %c0_4] : memref<9x128x128xbf16, #tpu.memory_space<vmem>>, vector<1x128x128xbf16>
    %3 = vector.shape_cast %2 : vector<1x128x128xbf16> to vector<128x128xbf16>
    %cst = arith.constant dense<0.000000e+00> : vector<72x128xf32>
    %4 = tpu.matmul %1, %3, %cst {dimension_numbers = #tpu.dot_dimension_numbers<[1], [0], [0], [1], [0, 0, 1, 1], [], []>} : vector<72x128xbf16>, vector<128x128xbf16>, vector<72x128xf32> -> vector<72x128xf32>
    %c0_5 = arith.constant 0 : index
    %c0_6 = arith.constant 0 : index
    %c0_7 = arith.constant 0 : index
    %5 = vector.load %arg3[%c0_5, %c0_6, %c0_7] : memref<1x90x128xbf16, #tpu.memory_space<vmem>>, vector<1x72x128xbf16>
    %6 = vector.shape_cast %5 : vector<1x72x128xbf16> to vector<72x128xbf16>
    %c1 = arith.constant 1 : index
    %c0_8 = arith.constant 0 : index
    %c0_9 = arith.constant 0 : index
    %7 = vector.load %arg6[%c1, %c0_8, %c0_9] : memref<9x128x128xbf16, #tpu.memory_space<vmem>>, vector<1x128x128xbf16>
    %8 = vector.shape_cast %7 : vector<1x128x128xbf16> to vector<128x128xbf16>
    %cst_10 = arith.constant dense<0.000000e+00> : vector<72x128xf32>
    %9 = tpu.matmul %6, %8, %cst_10 {dimension_numbers = #tpu.dot_dimension_numbers<[1], [0], [0], [1], [0, 0, 1, 1], [], []>} : vector<72x128xbf16>, vector<128x128xbf16>, vector<72x128xf32> -> vector<72x128xf32>
    %10 = arith.addf %4, %9 : vector<72x128xf32>
    %c0_11 = arith.constant 0 : index
    %c1_12 = arith.constant 1 : index
    %c0_13 = arith.constant 0 : index
    %11 = vector.load %arg2[%c0_11, %c1_12, %c0_13] : memref<1x90x128xbf16, #tpu.memory_space<vmem>>, vector<1x72x128xbf16>
    %12 = vector.shape_cast %11 : vector<1x72x128xbf16> to vector<72x128xbf16>
    %c2 = arith.constant 2 : index
    %c0_14 = arith.constant 0 : index
    %c0_15 = arith.constant 0 : index
    %13 = vector.load %arg6[%c2, %c0_14, %c0_15] : memref<9x128x128xbf16, #tpu.memory_space<vmem>>, vector<1x128x128xbf16>
    %14 = vector.shape_cast %13 : vector<1x128x128xbf16> to vector<128x128xbf16>
    %cst_16 = arith.constant dense<0.000000e+00> : vector<72x128xf32>
    %15 = tpu.matmul %12, %14, %cst_16 {dimension_numbers = #tpu.dot_dimension_numbers<[1], [0], [0], [1], [0, 0, 1, 1], [], []>} : vector<72x128xbf16>, vector<128x128xbf16>, vector<72x128xf32> -> vector<72x128xf32>
    %16 = arith.addf %10, %15 : vector<72x128xf32>
    %c0_17 = arith.constant 0 : index
    %c0_18 = arith.constant 0 : index
    %c0_19 = arith.constant 0 : index
    %17 = vector.load %arg4[%c0_17, %c0_18, %c0_19] : memref<1x90x128xbf16, #tpu.memory_space<vmem>>, vector<1x72x128xbf16>
    %18 = vector.shape_cast %17 : vector<1x72x128xbf16> to vector<72x128xbf16>
    %c3 = arith.constant 3 : index
    %c0_20 = arith.constant 0 : index
    %c0_21 = arith.constant 0 : index
    %19 = vector.load %arg6[%c3, %c0_20, %c0_21] : memref<9x128x128xbf16, #tpu.memory_space<vmem>>, vector<1x128x128xbf16>
    %20 = vector.shape_cast %19 : vector<1x128x128xbf16> to vector<128x128xbf16>
    %cst_22 = arith.constant dense<0.000000e+00> : vector<72x128xf32>
    %21 = tpu.matmul %18, %20, %cst_22 {dimension_numbers = #tpu.dot_dimension_numbers<[1], [0], [0], [1], [0, 0, 1, 1], [], []>} : vector<72x128xbf16>, vector<128x128xbf16>, vector<72x128xf32> -> vector<72x128xf32>
    %22 = arith.addf %16, %21 : vector<72x128xf32>
    %c0_23 = arith.constant 0 : index
    %c0_24 = arith.constant 0 : index
    %c0_25 = arith.constant 0 : index
    %23 = vector.load %arg5[%c0_23, %c0_24, %c0_25] : memref<1x90x128xbf16, #tpu.memory_space<vmem>>, vector<1x72x128xbf16>
    %24 = vector.shape_cast %23 : vector<1x72x128xbf16> to vector<72x128xbf16>
    %c4 = arith.constant 4 : index
    %c0_26 = arith.constant 0 : index
    %c0_27 = arith.constant 0 : index
    %25 = vector.load %arg6[%c4, %c0_26, %c0_27] : memref<9x128x128xbf16, #tpu.memory_space<vmem>>, vector<1x128x128xbf16>
    %26 = vector.shape_cast %25 : vector<1x128x128xbf16> to vector<128x128xbf16>
    %cst_28 = arith.constant dense<0.000000e+00> : vector<72x128xf32>
    %27 = tpu.matmul %24, %26, %cst_28 {dimension_numbers = #tpu.dot_dimension_numbers<[1], [0], [0], [1], [0, 0, 1, 1], [], []>} : vector<72x128xbf16>, vector<128x128xbf16>, vector<72x128xf32> -> vector<72x128xf32>
    %28 = arith.addf %22, %27 : vector<72x128xf32>
    %c0_29 = arith.constant 0 : index
    %c1_30 = arith.constant 1 : index
    %c0_31 = arith.constant 0 : index
    %29 = vector.load %arg4[%c0_29, %c1_30, %c0_31] : memref<1x90x128xbf16, #tpu.memory_space<vmem>>, vector<1x72x128xbf16>
    %30 = vector.shape_cast %29 : vector<1x72x128xbf16> to vector<72x128xbf16>
    %c5 = arith.constant 5 : index
    %c0_32 = arith.constant 0 : index
    %c0_33 = arith.constant 0 : index
    %31 = vector.load %arg6[%c5, %c0_32, %c0_33] : memref<9x128x128xbf16, #tpu.memory_space<vmem>>, vector<1x128x128xbf16>
    %32 = vector.shape_cast %31 : vector<1x128x128xbf16> to vector<128x128xbf16>
    %cst_34 = arith.constant dense<0.000000e+00> : vector<72x128xf32>
    %33 = tpu.matmul %30, %32, %cst_34 {dimension_numbers = #tpu.dot_dimension_numbers<[1], [0], [0], [1], [0, 0, 1, 1], [], []>} : vector<72x128xbf16>, vector<128x128xbf16>, vector<72x128xf32> -> vector<72x128xf32>
    %34 = arith.addf %28, %33 : vector<72x128xf32>
    %c0_35 = arith.constant 0 : index
    %c9 = arith.constant 9 : index
    %c0_36 = arith.constant 0 : index
    %35 = vector.load %arg2[%c0_35, %c9, %c0_36] : memref<1x90x128xbf16, #tpu.memory_space<vmem>>, vector<1x72x128xbf16>
    %36 = vector.shape_cast %35 : vector<1x72x128xbf16> to vector<72x128xbf16>
    %c6 = arith.constant 6 : index
    %c0_37 = arith.constant 0 : index
    %c0_38 = arith.constant 0 : index
    %37 = vector.load %arg6[%c6, %c0_37, %c0_38] : memref<9x128x128xbf16, #tpu.memory_space<vmem>>, vector<1x128x128xbf16>
    %38 = vector.shape_cast %37 : vector<1x128x128xbf16> to vector<128x128xbf16>
    %cst_39 = arith.constant dense<0.000000e+00> : vector<72x128xf32>
    %39 = tpu.matmul %36, %38, %cst_39 {dimension_numbers = #tpu.dot_dimension_numbers<[1], [0], [0], [1], [0, 0, 1, 1], [], []>} : vector<72x128xbf16>, vector<128x128xbf16>, vector<72x128xf32> -> vector<72x128xf32>
    %40 = arith.addf %34, %39 : vector<72x128xf32>
    %c0_40 = arith.constant 0 : index
    %c9_41 = arith.constant 9 : index
    %c0_42 = arith.constant 0 : index
    %41 = vector.load %arg3[%c0_40, %c9_41, %c0_42] : memref<1x90x128xbf16, #tpu.memory_space<vmem>>, vector<1x72x128xbf16>
    %42 = vector.shape_cast %41 : vector<1x72x128xbf16> to vector<72x128xbf16>
    %c7 = arith.constant 7 : index
    %c0_43 = arith.constant 0 : index
    %c0_44 = arith.constant 0 : index
    %43 = vector.load %arg6[%c7, %c0_43, %c0_44] : memref<9x128x128xbf16, #tpu.memory_space<vmem>>, vector<1x128x128xbf16>
    %44 = vector.shape_cast %43 : vector<1x128x128xbf16> to vector<128x128xbf16>
    %cst_45 = arith.constant dense<0.000000e+00> : vector<72x128xf32>
    %45 = tpu.matmul %42, %44, %cst_45 {dimension_numbers = #tpu.dot_dimension_numbers<[1], [0], [0], [1], [0, 0, 1, 1], [], []>} : vector<72x128xbf16>, vector<128x128xbf16>, vector<72x128xf32> -> vector<72x128xf32>
    %46 = arith.addf %40, %45 : vector<72x128xf32>
    %c0_46 = arith.constant 0 : index
    %c10 = arith.constant 10 : index
    %c0_47 = arith.constant 0 : index
    %47 = vector.load %arg2[%c0_46, %c10, %c0_47] : memref<1x90x128xbf16, #tpu.memory_space<vmem>>, vector<1x72x128xbf16>
    %48 = vector.shape_cast %47 : vector<1x72x128xbf16> to vector<72x128xbf16>
    %c8 = arith.constant 8 : index
    %c0_48 = arith.constant 0 : index
    %c0_49 = arith.constant 0 : index
    %49 = vector.load %arg6[%c8, %c0_48, %c0_49] : memref<9x128x128xbf16, #tpu.memory_space<vmem>>, vector<1x128x128xbf16>
    %50 = vector.shape_cast %49 : vector<1x128x128xbf16> to vector<128x128xbf16>
    %cst_50 = arith.constant dense<0.000000e+00> : vector<72x128xf32>
    %51 = tpu.matmul %48, %50, %cst_50 {dimension_numbers = #tpu.dot_dimension_numbers<[1], [0], [0], [1], [0, 0, 1, 1], [], []>} : vector<72x128xbf16>, vector<128x128xbf16>, vector<72x128xf32> -> vector<72x128xf32>
    %52 = arith.addf %46, %51 : vector<72x128xf32>
    %c0_51 = arith.constant 0 : index
    %c0_52 = arith.constant 0 : index
    %53 = vector.load %arg7[%c0_51, %c0_52] : memref<1x128xf32, #tpu.memory_space<vmem>>, vector<1x128xf32>
    %54 = vector.broadcast %53 : vector<1x128xf32> to vector<72x128xf32>
    %55 = arith.addf %52, %54 : vector<72x128xf32>
    %cst_53 = arith.constant 0.000000e+00 : f32
    %56 = vector.broadcast %cst_53 : f32 to vector<72x128xf32>
    %57 = arith.maximumf %55, %56 : vector<72x128xf32>
    %58 = arith.truncf %57 : vector<72x128xf32> to vector<72x128xbf16>
    %c0_54 = arith.constant 0 : index
    %c0_55 = arith.constant 0 : index
    %c0_56 = arith.constant 0 : index
    %59 = vector.load %arg8[%c0_54, %c0_55, %c0_56] : memref<1x72x128xbf16, #tpu.memory_space<vmem>>, vector<1x72x128xbf16>
    %60 = vector.shape_cast %59 : vector<1x72x128xbf16> to vector<72x128xbf16>
    %61 = vector.shape_cast %58 : vector<72x128xbf16> to vector<1x72x128xbf16>
    tpu.vector_store %arg8[%c0_54, %c0_55, %c0_56], %61 {strides = array<i32>} : memref<1x72x128xbf16, #tpu.memory_space<vmem>>, vector<1x72x128xbf16>,
    return
  }
  func.func @transform_0(%arg0: i32, %arg1: i32) -> (i32, i32, i32) {
    %c0_i32 = arith.constant 0 : i32
    %c0_i32_0 = arith.constant 0 : i32
    %c0_i32_1 = arith.constant 0 : i32
    return %arg0, %c0_i32, %c0_i32_0 : i32, i32, i32
  }
  func.func @transform_1(%arg0: i32, %arg1: i32) -> (i32, i32, i32) {
    %c0_i32 = arith.constant 0 : i32
    %c0_i32_0 = arith.constant 0 : i32
    %c0_i32_1 = arith.constant 0 : i32
    return %arg0, %c0_i32, %c0_i32_0 : i32, i32, i32
  }
  func.func @transform_2(%arg0: i32, %arg1: i32) -> (i32, i32, i32) {
    %c0_i32 = arith.constant 0 : i32
    %c0_i32_0 = arith.constant 0 : i32
    %c0_i32_1 = arith.constant 0 : i32
    return %arg0, %c0_i32, %c0_i32_0 : i32, i32, i32
  }
  func.func @transform_3(%arg0: i32, %arg1: i32) -> (i32, i32, i32) {
    %c0_i32 = arith.constant 0 : i32
    %c0_i32_0 = arith.constant 0 : i32
    %c0_i32_1 = arith.constant 0 : i32
    return %arg0, %c0_i32, %c0_i32_0 : i32, i32, i32
  }
  func.func @transform_4(%arg0: i32, %arg1: i32) -> (i32, i32, i32) {
    %c0_i32 = arith.constant 0 : i32
    %c0_i32_0 = arith.constant 0 : i32
    %c0_i32_1 = arith.constant 0 : i32
    return %c0_i32, %c0_i32_0, %arg1 : i32, i32, i32
  }
  func.func @transform_5(%arg0: i32, %arg1: i32) -> (i32, i32) {
    %c0_i32 = arith.constant 0 : i32
    %c0_i32_0 = arith.constant 0 : i32
    return %c0_i32, %arg1 : i32, i32
  }
  func.func @transform_6(%arg0: i32, %arg1: i32) -> (i32, i32, i32) {
    %c0_i32 = arith.constant 0 : i32
    %c0_i32_0 = arith.constant 0 : i32
    return %arg0, %c0_i32, %arg1 : i32, i32, i32
  }
}

module attributes {stable_mosaic.version = 11 : i64} {
  func.func @_conv_bn_kernel(%arg0: i32, %arg1: i32, %arg2: memref<1x30x128xbf16, #tpu.memory_space<vmem>>, %arg3: memref<1x30x128xbf16, #tpu.memory_space<vmem>>, %arg4: memref<1x30x128xbf16, #tpu.memory_space<vmem>>, %arg5: memref<1x30x128xbf16, #tpu.memory_space<vmem>>, %arg6: memref<9x128x128xbf16, #tpu.memory_space<vmem>>, %arg7: memref<1x128xf32, #tpu.memory_space<vmem>>, %arg8: memref<1x20x128xbf16, #tpu.memory_space<vmem>>) attributes {dimension_semantics = [#tpu.dimension_semantics<parallel>, #tpu.dimension_semantics<parallel>], iteration_bounds = array<i64: 2, 1>, scalar_prefetch = 0 : i64, scratch_operands = 0 : i64, tpu.core_type = #tpu.core_type<tc>, window_params = [{transform_indices = @transform_0, window_bounds = array<i64: 1, 30, 128>}, {transform_indices = @transform_1, window_bounds = array<i64: 1, 30, 128>}, {transform_indices = @transform_2, window_bounds = array<i64: 1, 30, 128>}, {transform_indices = @transform_3, window_bounds = array<i64: 1, 30, 128>}, {transform_indices = @transform_4, window_bounds = array<i64: 9, 128, 128>}, {transform_indices = @transform_5, window_bounds = array<i64: 1, 128>}, {transform_indices = @transform_6, window_bounds = array<i64: 1, 20, 128>}]} {
    %c0 = arith.constant 0 : index
    %c0_0 = arith.constant 0 : index
    %c0_1 = arith.constant 0 : index
    %0 = vector.load %arg2[%c0, %c0_0, %c0_1] : memref<1x30x128xbf16, #tpu.memory_space<vmem>>, vector<1x20x128xbf16>
    %1 = vector.shape_cast %0 : vector<1x20x128xbf16> to vector<20x128xbf16>
    %c0_2 = arith.constant 0 : index
    %c0_3 = arith.constant 0 : index
    %c0_4 = arith.constant 0 : index
    %2 = vector.load %arg6[%c0_2, %c0_3, %c0_4] : memref<9x128x128xbf16, #tpu.memory_space<vmem>>, vector<1x128x128xbf16>
    %3 = vector.shape_cast %2 : vector<1x128x128xbf16> to vector<128x128xbf16>
    %cst = arith.constant dense<0.000000e+00> : vector<20x128xf32>
    %4 = tpu.matmul %1, %3, %cst {dimension_numbers = #tpu.dot_dimension_numbers<[1], [0], [0], [1], [0, 0, 1, 1], [], []>} : vector<20x128xbf16>, vector<128x128xbf16>, vector<20x128xf32> -> vector<20x128xf32>
    %c0_5 = arith.constant 0 : index
    %c0_6 = arith.constant 0 : index
    %c0_7 = arith.constant 0 : index
    %5 = vector.load %arg3[%c0_5, %c0_6, %c0_7] : memref<1x30x128xbf16, #tpu.memory_space<vmem>>, vector<1x20x128xbf16>
    %6 = vector.shape_cast %5 : vector<1x20x128xbf16> to vector<20x128xbf16>
    %c1 = arith.constant 1 : index
    %c0_8 = arith.constant 0 : index
    %c0_9 = arith.constant 0 : index
    %7 = vector.load %arg6[%c1, %c0_8, %c0_9] : memref<9x128x128xbf16, #tpu.memory_space<vmem>>, vector<1x128x128xbf16>
    %8 = vector.shape_cast %7 : vector<1x128x128xbf16> to vector<128x128xbf16>
    %cst_10 = arith.constant dense<0.000000e+00> : vector<20x128xf32>
    %9 = tpu.matmul %6, %8, %cst_10 {dimension_numbers = #tpu.dot_dimension_numbers<[1], [0], [0], [1], [0, 0, 1, 1], [], []>} : vector<20x128xbf16>, vector<128x128xbf16>, vector<20x128xf32> -> vector<20x128xf32>
    %10 = arith.addf %4, %9 : vector<20x128xf32>
    %c0_11 = arith.constant 0 : index
    %c1_12 = arith.constant 1 : index
    %c0_13 = arith.constant 0 : index
    %11 = vector.load %arg2[%c0_11, %c1_12, %c0_13] : memref<1x30x128xbf16, #tpu.memory_space<vmem>>, vector<1x20x128xbf16>
    %12 = vector.shape_cast %11 : vector<1x20x128xbf16> to vector<20x128xbf16>
    %c2 = arith.constant 2 : index
    %c0_14 = arith.constant 0 : index
    %c0_15 = arith.constant 0 : index
    %13 = vector.load %arg6[%c2, %c0_14, %c0_15] : memref<9x128x128xbf16, #tpu.memory_space<vmem>>, vector<1x128x128xbf16>
    %14 = vector.shape_cast %13 : vector<1x128x128xbf16> to vector<128x128xbf16>
    %cst_16 = arith.constant dense<0.000000e+00> : vector<20x128xf32>
    %15 = tpu.matmul %12, %14, %cst_16 {dimension_numbers = #tpu.dot_dimension_numbers<[1], [0], [0], [1], [0, 0, 1, 1], [], []>} : vector<20x128xbf16>, vector<128x128xbf16>, vector<20x128xf32> -> vector<20x128xf32>
    %16 = arith.addf %10, %15 : vector<20x128xf32>
    %c0_17 = arith.constant 0 : index
    %c0_18 = arith.constant 0 : index
    %c0_19 = arith.constant 0 : index
    %17 = vector.load %arg4[%c0_17, %c0_18, %c0_19] : memref<1x30x128xbf16, #tpu.memory_space<vmem>>, vector<1x20x128xbf16>
    %18 = vector.shape_cast %17 : vector<1x20x128xbf16> to vector<20x128xbf16>
    %c3 = arith.constant 3 : index
    %c0_20 = arith.constant 0 : index
    %c0_21 = arith.constant 0 : index
    %19 = vector.load %arg6[%c3, %c0_20, %c0_21] : memref<9x128x128xbf16, #tpu.memory_space<vmem>>, vector<1x128x128xbf16>
    %20 = vector.shape_cast %19 : vector<1x128x128xbf16> to vector<128x128xbf16>
    %cst_22 = arith.constant dense<0.000000e+00> : vector<20x128xf32>
    %21 = tpu.matmul %18, %20, %cst_22 {dimension_numbers = #tpu.dot_dimension_numbers<[1], [0], [0], [1], [0, 0, 1, 1], [], []>} : vector<20x128xbf16>, vector<128x128xbf16>, vector<20x128xf32> -> vector<20x128xf32>
    %22 = arith.addf %16, %21 : vector<20x128xf32>
    %c0_23 = arith.constant 0 : index
    %c0_24 = arith.constant 0 : index
    %c0_25 = arith.constant 0 : index
    %23 = vector.load %arg5[%c0_23, %c0_24, %c0_25] : memref<1x30x128xbf16, #tpu.memory_space<vmem>>, vector<1x20x128xbf16>
    %24 = vector.shape_cast %23 : vector<1x20x128xbf16> to vector<20x128xbf16>
    %c4 = arith.constant 4 : index
    %c0_26 = arith.constant 0 : index
    %c0_27 = arith.constant 0 : index
    %25 = vector.load %arg6[%c4, %c0_26, %c0_27] : memref<9x128x128xbf16, #tpu.memory_space<vmem>>, vector<1x128x128xbf16>
    %26 = vector.shape_cast %25 : vector<1x128x128xbf16> to vector<128x128xbf16>
    %cst_28 = arith.constant dense<0.000000e+00> : vector<20x128xf32>
    %27 = tpu.matmul %24, %26, %cst_28 {dimension_numbers = #tpu.dot_dimension_numbers<[1], [0], [0], [1], [0, 0, 1, 1], [], []>} : vector<20x128xbf16>, vector<128x128xbf16>, vector<20x128xf32> -> vector<20x128xf32>
    %28 = arith.addf %22, %27 : vector<20x128xf32>
    %c0_29 = arith.constant 0 : index
    %c1_30 = arith.constant 1 : index
    %c0_31 = arith.constant 0 : index
    %29 = vector.load %arg4[%c0_29, %c1_30, %c0_31] : memref<1x30x128xbf16, #tpu.memory_space<vmem>>, vector<1x20x128xbf16>
    %30 = vector.shape_cast %29 : vector<1x20x128xbf16> to vector<20x128xbf16>
    %c5 = arith.constant 5 : index
    %c0_32 = arith.constant 0 : index
    %c0_33 = arith.constant 0 : index
    %31 = vector.load %arg6[%c5, %c0_32, %c0_33] : memref<9x128x128xbf16, #tpu.memory_space<vmem>>, vector<1x128x128xbf16>
    %32 = vector.shape_cast %31 : vector<1x128x128xbf16> to vector<128x128xbf16>
    %cst_34 = arith.constant dense<0.000000e+00> : vector<20x128xf32>
    %33 = tpu.matmul %30, %32, %cst_34 {dimension_numbers = #tpu.dot_dimension_numbers<[1], [0], [0], [1], [0, 0, 1, 1], [], []>} : vector<20x128xbf16>, vector<128x128xbf16>, vector<20x128xf32> -> vector<20x128xf32>
    %34 = arith.addf %28, %33 : vector<20x128xf32>
    %c0_35 = arith.constant 0 : index
    %c5_36 = arith.constant 5 : index
    %c0_37 = arith.constant 0 : index
    %35 = vector.load %arg2[%c0_35, %c5_36, %c0_37] : memref<1x30x128xbf16, #tpu.memory_space<vmem>>, vector<1x20x128xbf16>
    %36 = vector.shape_cast %35 : vector<1x20x128xbf16> to vector<20x128xbf16>
    %c6 = arith.constant 6 : index
    %c0_38 = arith.constant 0 : index
    %c0_39 = arith.constant 0 : index
    %37 = vector.load %arg6[%c6, %c0_38, %c0_39] : memref<9x128x128xbf16, #tpu.memory_space<vmem>>, vector<1x128x128xbf16>
    %38 = vector.shape_cast %37 : vector<1x128x128xbf16> to vector<128x128xbf16>
    %cst_40 = arith.constant dense<0.000000e+00> : vector<20x128xf32>
    %39 = tpu.matmul %36, %38, %cst_40 {dimension_numbers = #tpu.dot_dimension_numbers<[1], [0], [0], [1], [0, 0, 1, 1], [], []>} : vector<20x128xbf16>, vector<128x128xbf16>, vector<20x128xf32> -> vector<20x128xf32>
    %40 = arith.addf %34, %39 : vector<20x128xf32>
    %c0_41 = arith.constant 0 : index
    %c5_42 = arith.constant 5 : index
    %c0_43 = arith.constant 0 : index
    %41 = vector.load %arg3[%c0_41, %c5_42, %c0_43] : memref<1x30x128xbf16, #tpu.memory_space<vmem>>, vector<1x20x128xbf16>
    %42 = vector.shape_cast %41 : vector<1x20x128xbf16> to vector<20x128xbf16>
    %c7 = arith.constant 7 : index
    %c0_44 = arith.constant 0 : index
    %c0_45 = arith.constant 0 : index
    %43 = vector.load %arg6[%c7, %c0_44, %c0_45] : memref<9x128x128xbf16, #tpu.memory_space<vmem>>, vector<1x128x128xbf16>
    %44 = vector.shape_cast %43 : vector<1x128x128xbf16> to vector<128x128xbf16>
    %cst_46 = arith.constant dense<0.000000e+00> : vector<20x128xf32>
    %45 = tpu.matmul %42, %44, %cst_46 {dimension_numbers = #tpu.dot_dimension_numbers<[1], [0], [0], [1], [0, 0, 1, 1], [], []>} : vector<20x128xbf16>, vector<128x128xbf16>, vector<20x128xf32> -> vector<20x128xf32>
    %46 = arith.addf %40, %45 : vector<20x128xf32>
    %c0_47 = arith.constant 0 : index
    %c6_48 = arith.constant 6 : index
    %c0_49 = arith.constant 0 : index
    %47 = vector.load %arg2[%c0_47, %c6_48, %c0_49] : memref<1x30x128xbf16, #tpu.memory_space<vmem>>, vector<1x20x128xbf16>
    %48 = vector.shape_cast %47 : vector<1x20x128xbf16> to vector<20x128xbf16>
    %c8 = arith.constant 8 : index
    %c0_50 = arith.constant 0 : index
    %c0_51 = arith.constant 0 : index
    %49 = vector.load %arg6[%c8, %c0_50, %c0_51] : memref<9x128x128xbf16, #tpu.memory_space<vmem>>, vector<1x128x128xbf16>
    %50 = vector.shape_cast %49 : vector<1x128x128xbf16> to vector<128x128xbf16>
    %cst_52 = arith.constant dense<0.000000e+00> : vector<20x128xf32>
    %51 = tpu.matmul %48, %50, %cst_52 {dimension_numbers = #tpu.dot_dimension_numbers<[1], [0], [0], [1], [0, 0, 1, 1], [], []>} : vector<20x128xbf16>, vector<128x128xbf16>, vector<20x128xf32> -> vector<20x128xf32>
    %52 = arith.addf %46, %51 : vector<20x128xf32>
    %c0_53 = arith.constant 0 : index
    %c0_54 = arith.constant 0 : index
    %53 = vector.load %arg7[%c0_53, %c0_54] : memref<1x128xf32, #tpu.memory_space<vmem>>, vector<1x128xf32>
    %54 = vector.broadcast %53 : vector<1x128xf32> to vector<20x128xf32>
    %55 = arith.addf %52, %54 : vector<20x128xf32>
    %cst_55 = arith.constant 0.000000e+00 : f32
    %56 = vector.broadcast %cst_55 : f32 to vector<20x128xf32>
    %57 = arith.maximumf %55, %56 : vector<20x128xf32>
    %58 = arith.truncf %57 : vector<20x128xf32> to vector<20x128xbf16>
    %c0_56 = arith.constant 0 : index
    %c0_57 = arith.constant 0 : index
    %c0_58 = arith.constant 0 : index
    %59 = vector.load %arg8[%c0_56, %c0_57, %c0_58] : memref<1x20x128xbf16, #tpu.memory_space<vmem>>, vector<1x20x128xbf16>
    %60 = vector.shape_cast %59 : vector<1x20x128xbf16> to vector<20x128xbf16>
    %61 = vector.shape_cast %58 : vector<20x128xbf16> to vector<1x20x128xbf16>
    tpu.vector_store %arg8[%c0_56, %c0_57, %c0_58], %61 {strides = array<i32>} : memref<1x20x128xbf16, #tpu.memory_space<vmem>>, vector<1x20x128xbf16>,
    return
  }
  func.func @transform_0(%arg0: i32, %arg1: i32) -> (i32, i32, i32) {
    %c0_i32 = arith.constant 0 : i32
    %c0_i32_0 = arith.constant 0 : i32
    %c0_i32_1 = arith.constant 0 : i32
    return %arg0, %c0_i32, %c0_i32_0 : i32, i32, i32
  }
  func.func @transform_1(%arg0: i32, %arg1: i32) -> (i32, i32, i32) {
    %c0_i32 = arith.constant 0 : i32
    %c0_i32_0 = arith.constant 0 : i32
    %c0_i32_1 = arith.constant 0 : i32
    return %arg0, %c0_i32, %c0_i32_0 : i32, i32, i32
  }
  func.func @transform_2(%arg0: i32, %arg1: i32) -> (i32, i32, i32) {
    %c0_i32 = arith.constant 0 : i32
    %c0_i32_0 = arith.constant 0 : i32
    %c0_i32_1 = arith.constant 0 : i32
    return %arg0, %c0_i32, %c0_i32_0 : i32, i32, i32
  }
  func.func @transform_3(%arg0: i32, %arg1: i32) -> (i32, i32, i32) {
    %c0_i32 = arith.constant 0 : i32
    %c0_i32_0 = arith.constant 0 : i32
    %c0_i32_1 = arith.constant 0 : i32
    return %arg0, %c0_i32, %c0_i32_0 : i32, i32, i32
  }
  func.func @transform_4(%arg0: i32, %arg1: i32) -> (i32, i32, i32) {
    %c0_i32 = arith.constant 0 : i32
    %c0_i32_0 = arith.constant 0 : i32
    %c0_i32_1 = arith.constant 0 : i32
    return %c0_i32, %c0_i32_0, %arg1 : i32, i32, i32
  }
  func.func @transform_5(%arg0: i32, %arg1: i32) -> (i32, i32) {
    %c0_i32 = arith.constant 0 : i32
    %c0_i32_0 = arith.constant 0 : i32
    return %c0_i32, %arg1 : i32, i32
  }
  func.func @transform_6(%arg0: i32, %arg1: i32) -> (i32, i32, i32) {
    %c0_i32 = arith.constant 0 : i32
    %c0_i32_0 = arith.constant 0 : i32
    return %arg0, %c0_i32, %arg1 : i32, i32, i32
  }
}

module attributes {stable_mosaic.version = 11 : i64} {
  func.func @_conv_bn_kernel(%arg0: i32, %arg1: i32, %arg2: memref<1x42x128xbf16, #tpu.memory_space<vmem>>, %arg3: memref<9x128x128xbf16, #tpu.memory_space<vmem>>, %arg4: memref<1x128xf32, #tpu.memory_space<vmem>>, %arg5: memref<1x24x128xbf16, #tpu.memory_space<vmem>>) attributes {dimension_semantics = [#tpu.dimension_semantics<parallel>, #tpu.dimension_semantics<parallel>], iteration_bounds = array<i64: 2, 1>, scalar_prefetch = 0 : i64, scratch_operands = 0 : i64, tpu.core_type = #tpu.core_type<tc>, window_params = [{transform_indices = @transform_0, window_bounds = array<i64: 1, 42, 128>}, {transform_indices = @transform_1, window_bounds = array<i64: 9, 128, 128>}, {transform_indices = @transform_2, window_bounds = array<i64: 1, 128>}, {transform_indices = @transform_3, window_bounds = array<i64: 1, 24, 128>}]} {
    %c0 = arith.constant 0 : index
    %c0_0 = arith.constant 0 : index
    %c0_1 = arith.constant 0 : index
    %0 = vector.load %arg2[%c0, %c0_0, %c0_1] : memref<1x42x128xbf16, #tpu.memory_space<vmem>>, vector<1x24x128xbf16>
    %1 = vector.shape_cast %0 : vector<1x24x128xbf16> to vector<24x128xbf16>
    %c0_2 = arith.constant 0 : index
    %c0_3 = arith.constant 0 : index
    %c0_4 = arith.constant 0 : index
    %2 = vector.load %arg3[%c0_2, %c0_3, %c0_4] : memref<9x128x128xbf16, #tpu.memory_space<vmem>>, vector<1x128x128xbf16>
    %3 = vector.shape_cast %2 : vector<1x128x128xbf16> to vector<128x128xbf16>
    %cst = arith.constant dense<0.000000e+00> : vector<24x128xf32>
    %4 = tpu.matmul %1, %3, %cst {dimension_numbers = #tpu.dot_dimension_numbers<[1], [0], [0], [1], [0, 0, 1, 1], [], []>} : vector<24x128xbf16>, vector<128x128xbf16>, vector<24x128xf32> -> vector<24x128xf32>
    %c0_5 = arith.constant 0 : index
    %c1 = arith.constant 1 : index
    %c0_6 = arith.constant 0 : index
    %5 = vector.load %arg2[%c0_5, %c1, %c0_6] : memref<1x42x128xbf16, #tpu.memory_space<vmem>>, vector<1x24x128xbf16>
    %6 = vector.shape_cast %5 : vector<1x24x128xbf16> to vector<24x128xbf16>
    %c1_7 = arith.constant 1 : index
    %c0_8 = arith.constant 0 : index
    %c0_9 = arith.constant 0 : index
    %7 = vector.load %arg3[%c1_7, %c0_8, %c0_9] : memref<9x128x128xbf16, #tpu.memory_space<vmem>>, vector<1x128x128xbf16>
    %8 = vector.shape_cast %7 : vector<1x128x128xbf16> to vector<128x128xbf16>
    %cst_10 = arith.constant dense<0.000000e+00> : vector<24x128xf32>
    %9 = tpu.matmul %6, %8, %cst_10 {dimension_numbers = #tpu.dot_dimension_numbers<[1], [0], [0], [1], [0, 0, 1, 1], [], []>} : vector<24x128xbf16>, vector<128x128xbf16>, vector<24x128xf32> -> vector<24x128xf32>
    %10 = arith.addf %4, %9 : vector<24x128xf32>
    %c0_11 = arith.constant 0 : index
    %c2 = arith.constant 2 : index
    %c0_12 = arith.constant 0 : index
    %11 = vector.load %arg2[%c0_11, %c2, %c0_12] : memref<1x42x128xbf16, #tpu.memory_space<vmem>>, vector<1x24x128xbf16>
    %12 = vector.shape_cast %11 : vector<1x24x128xbf16> to vector<24x128xbf16>
    %c2_13 = arith.constant 2 : index
    %c0_14 = arith.constant 0 : index
    %c0_15 = arith.constant 0 : index
    %13 = vector.load %arg3[%c2_13, %c0_14, %c0_15] : memref<9x128x128xbf16, #tpu.memory_space<vmem>>, vector<1x128x128xbf16>
    %14 = vector.shape_cast %13 : vector<1x128x128xbf16> to vector<128x128xbf16>
    %cst_16 = arith.constant dense<0.000000e+00> : vector<24x128xf32>
    %15 = tpu.matmul %12, %14, %cst_16 {dimension_numbers = #tpu.dot_dimension_numbers<[1], [0], [0], [1], [0, 0, 1, 1], [], []>} : vector<24x128xbf16>, vector<128x128xbf16>, vector<24x128xf32> -> vector<24x128xf32>
    %16 = arith.addf %10, %15 : vector<24x128xf32>
    %c0_17 = arith.constant 0 : index
    %c6 = arith.constant 6 : index
    %c0_18 = arith.constant 0 : index
    %17 = vector.load %arg2[%c0_17, %c6, %c0_18] : memref<1x42x128xbf16, #tpu.memory_space<vmem>>, vector<1x24x128xbf16>
    %18 = vector.shape_cast %17 : vector<1x24x128xbf16> to vector<24x128xbf16>
    %c3 = arith.constant 3 : index
    %c0_19 = arith.constant 0 : index
    %c0_20 = arith.constant 0 : index
    %19 = vector.load %arg3[%c3, %c0_19, %c0_20] : memref<9x128x128xbf16, #tpu.memory_space<vmem>>, vector<1x128x128xbf16>
    %20 = vector.shape_cast %19 : vector<1x128x128xbf16> to vector<128x128xbf16>
    %cst_21 = arith.constant dense<0.000000e+00> : vector<24x128xf32>
    %21 = tpu.matmul %18, %20, %cst_21 {dimension_numbers = #tpu.dot_dimension_numbers<[1], [0], [0], [1], [0, 0, 1, 1], [], []>} : vector<24x128xbf16>, vector<128x128xbf16>, vector<24x128xf32> -> vector<24x128xf32>
    %22 = arith.addf %16, %21 : vector<24x128xf32>
    %c0_22 = arith.constant 0 : index
    %c7 = arith.constant 7 : index
    %c0_23 = arith.constant 0 : index
    %23 = vector.load %arg2[%c0_22, %c7, %c0_23] : memref<1x42x128xbf16, #tpu.memory_space<vmem>>, vector<1x24x128xbf16>
    %24 = vector.shape_cast %23 : vector<1x24x128xbf16> to vector<24x128xbf16>
    %c4 = arith.constant 4 : index
    %c0_24 = arith.constant 0 : index
    %c0_25 = arith.constant 0 : index
    %25 = vector.load %arg3[%c4, %c0_24, %c0_25] : memref<9x128x128xbf16, #tpu.memory_space<vmem>>, vector<1x128x128xbf16>
    %26 = vector.shape_cast %25 : vector<1x128x128xbf16> to vector<128x128xbf16>
    %cst_26 = arith.constant dense<0.000000e+00> : vector<24x128xf32>
    %27 = tpu.matmul %24, %26, %cst_26 {dimension_numbers = #tpu.dot_dimension_numbers<[1], [0], [0], [1], [0, 0, 1, 1], [], []>} : vector<24x128xbf16>, vector<128x128xbf16>, vector<24x128xf32> -> vector<24x128xf32>
    %28 = arith.addf %22, %27 : vector<24x128xf32>
    %c0_27 = arith.constant 0 : index
    %c8 = arith.constant 8 : index
    %c0_28 = arith.constant 0 : index
    %29 = vector.load %arg2[%c0_27, %c8, %c0_28] : memref<1x42x128xbf16, #tpu.memory_space<vmem>>, vector<1x24x128xbf16>
    %30 = vector.shape_cast %29 : vector<1x24x128xbf16> to vector<24x128xbf16>
    %c5 = arith.constant 5 : index
    %c0_29 = arith.constant 0 : index
    %c0_30 = arith.constant 0 : index
    %31 = vector.load %arg3[%c5, %c0_29, %c0_30] : memref<9x128x128xbf16, #tpu.memory_space<vmem>>, vector<1x128x128xbf16>
    %32 = vector.shape_cast %31 : vector<1x128x128xbf16> to vector<128x128xbf16>
    %cst_31 = arith.constant dense<0.000000e+00> : vector<24x128xf32>
    %33 = tpu.matmul %30, %32, %cst_31 {dimension_numbers = #tpu.dot_dimension_numbers<[1], [0], [0], [1], [0, 0, 1, 1], [], []>} : vector<24x128xbf16>, vector<128x128xbf16>, vector<24x128xf32> -> vector<24x128xf32>
    %34 = arith.addf %28, %33 : vector<24x128xf32>
    %c0_32 = arith.constant 0 : index
    %c12 = arith.constant 12 : index
    %c0_33 = arith.constant 0 : index
    %35 = vector.load %arg2[%c0_32, %c12, %c0_33] : memref<1x42x128xbf16, #tpu.memory_space<vmem>>, vector<1x24x128xbf16>
    %36 = vector.shape_cast %35 : vector<1x24x128xbf16> to vector<24x128xbf16>
    %c6_34 = arith.constant 6 : index
    %c0_35 = arith.constant 0 : index
    %c0_36 = arith.constant 0 : index
    %37 = vector.load %arg3[%c6_34, %c0_35, %c0_36] : memref<9x128x128xbf16, #tpu.memory_space<vmem>>, vector<1x128x128xbf16>
    %38 = vector.shape_cast %37 : vector<1x128x128xbf16> to vector<128x128xbf16>
    %cst_37 = arith.constant dense<0.000000e+00> : vector<24x128xf32>
    %39 = tpu.matmul %36, %38, %cst_37 {dimension_numbers = #tpu.dot_dimension_numbers<[1], [0], [0], [1], [0, 0, 1, 1], [], []>} : vector<24x128xbf16>, vector<128x128xbf16>, vector<24x128xf32> -> vector<24x128xf32>
    %40 = arith.addf %34, %39 : vector<24x128xf32>
    %c0_38 = arith.constant 0 : index
    %c13 = arith.constant 13 : index
    %c0_39 = arith.constant 0 : index
    %41 = vector.load %arg2[%c0_38, %c13, %c0_39] : memref<1x42x128xbf16, #tpu.memory_space<vmem>>, vector<1x24x128xbf16>
    %42 = vector.shape_cast %41 : vector<1x24x128xbf16> to vector<24x128xbf16>
    %c7_40 = arith.constant 7 : index
    %c0_41 = arith.constant 0 : index
    %c0_42 = arith.constant 0 : index
    %43 = vector.load %arg3[%c7_40, %c0_41, %c0_42] : memref<9x128x128xbf16, #tpu.memory_space<vmem>>, vector<1x128x128xbf16>
    %44 = vector.shape_cast %43 : vector<1x128x128xbf16> to vector<128x128xbf16>
    %cst_43 = arith.constant dense<0.000000e+00> : vector<24x128xf32>
    %45 = tpu.matmul %42, %44, %cst_43 {dimension_numbers = #tpu.dot_dimension_numbers<[1], [0], [0], [1], [0, 0, 1, 1], [], []>} : vector<24x128xbf16>, vector<128x128xbf16>, vector<24x128xf32> -> vector<24x128xf32>
    %46 = arith.addf %40, %45 : vector<24x128xf32>
    %c0_44 = arith.constant 0 : index
    %c14 = arith.constant 14 : index
    %c0_45 = arith.constant 0 : index
    %47 = vector.load %arg2[%c0_44, %c14, %c0_45] : memref<1x42x128xbf16, #tpu.memory_space<vmem>>, vector<1x24x128xbf16>
    %48 = vector.shape_cast %47 : vector<1x24x128xbf16> to vector<24x128xbf16>
    %c8_46 = arith.constant 8 : index
    %c0_47 = arith.constant 0 : index
    %c0_48 = arith.constant 0 : index
    %49 = vector.load %arg3[%c8_46, %c0_47, %c0_48] : memref<9x128x128xbf16, #tpu.memory_space<vmem>>, vector<1x128x128xbf16>
    %50 = vector.shape_cast %49 : vector<1x128x128xbf16> to vector<128x128xbf16>
    %cst_49 = arith.constant dense<0.000000e+00> : vector<24x128xf32>
    %51 = tpu.matmul %48, %50, %cst_49 {dimension_numbers = #tpu.dot_dimension_numbers<[1], [0], [0], [1], [0, 0, 1, 1], [], []>} : vector<24x128xbf16>, vector<128x128xbf16>, vector<24x128xf32> -> vector<24x128xf32>
    %52 = arith.addf %46, %51 : vector<24x128xf32>
    %c0_50 = arith.constant 0 : index
    %c0_51 = arith.constant 0 : index
    %53 = vector.load %arg4[%c0_50, %c0_51] : memref<1x128xf32, #tpu.memory_space<vmem>>, vector<1x128xf32>
    %54 = vector.broadcast %53 : vector<1x128xf32> to vector<24x128xf32>
    %55 = arith.addf %52, %54 : vector<24x128xf32>
    %56 = arith.truncf %55 : vector<24x128xf32> to vector<24x128xbf16>
    %c0_52 = arith.constant 0 : index
    %c0_53 = arith.constant 0 : index
    %c0_54 = arith.constant 0 : index
    %57 = vector.load %arg5[%c0_52, %c0_53, %c0_54] : memref<1x24x128xbf16, #tpu.memory_space<vmem>>, vector<1x24x128xbf16>
    %58 = vector.shape_cast %57 : vector<1x24x128xbf16> to vector<24x128xbf16>
    %59 = vector.shape_cast %56 : vector<24x128xbf16> to vector<1x24x128xbf16>
    tpu.vector_store %arg5[%c0_52, %c0_53, %c0_54], %59 {strides = array<i32>} : memref<1x24x128xbf16, #tpu.memory_space<vmem>>, vector<1x24x128xbf16>,
    return
  }
  func.func @transform_0(%arg0: i32, %arg1: i32) -> (i32, i32, i32) {
    %c0_i32 = arith.constant 0 : i32
    %c0_i32_0 = arith.constant 0 : i32
    %c0_i32_1 = arith.constant 0 : i32
    return %arg0, %c0_i32, %c0_i32_0 : i32, i32, i32
  }
  func.func @transform_1(%arg0: i32, %arg1: i32) -> (i32, i32, i32) {
    %c0_i32 = arith.constant 0 : i32
    %c0_i32_0 = arith.constant 0 : i32
    %c0_i32_1 = arith.constant 0 : i32
    return %c0_i32, %c0_i32_0, %arg1 : i32, i32, i32
  }
  func.func @transform_2(%arg0: i32, %arg1: i32) -> (i32, i32) {
    %c0_i32 = arith.constant 0 : i32
    %c0_i32_0 = arith.constant 0 : i32
    return %c0_i32, %arg1 : i32, i32
  }
  func.func @transform_3(%arg0: i32, %arg1: i32) -> (i32, i32, i32) {
    %c0_i32 = arith.constant 0 : i32
    %c0_i32_0 = arith.constant 0 : i32
    return %arg0, %c0_i32, %arg1 : i32, i32, i32
  }
}

</mosaic_0001>

<bundles_post_ra>
// kernel: stem_forward.3
= control target key start
LH: loop header
LB: loop body
LE: loop exit
PB: predicated region body
PF: predicated region fallthrough
CT: control target
= control target key end

     0   :  { %s3311_s21 = smov 0   ;;  %s3313_s22 = smov 0   ;;  %s3865_s0 = inlined_call_operand.vmem [shape: bf16[2,90,128], index: 0, kind: input, shape index: {}]   ;;  %s3866_s1 = inlined_call_operand.vmem [shape: bf16[2,90,128], index: 1, kind: input, shape index: {}]   ;;  %s3867_s2 = inlined_call_operand.vmem [shape: bf16[2,90,128], index: 2, kind: input, shape index: {}]   ;;  %s3868_s3 = inlined_call_operand.vmem [shape: bf16[2,90,128], index: 3, kind: input, shape index: {}]   ;;  %s3869_s4 = inlined_call_operand.vmem [shape: bf16[9,128,128], index: 4, kind: input, shape index: {}]   ;;  %s3870_s5 = inlined_call_operand.vmem [shape: f32[1,128], index: 5, kind: input, shape index: {}]   ;;  %s3871_s6 = inlined_call_operand.vmem [shape: bf16[2,72,128], index: 6, kind: output, shape index: {}]  }
   0x1   :  { %s3315_s23 = smov 0  }
   0x2 LB: > { %s28_s24 = sadd.s32 1, %s3268_s22  ;;  %p2361_p0 = scmp.ge.s32.totalorder %s3272_s23, 1  ;;  %s3272_s23 = sphi %s3315_s23, %s16_s23   ;;  %s3268_s22 = sphi %s3313_s22, %s3873_s22   ;;  %s3264_s21 = sphi %s3311_s21, %s3872_s21  }
   0x3   : > { %p30_p1 = scmp.ge.s32.totalorder %s28_s24, 2  ;;  %p273_p2 = scmp.lt.s32.totalorder %s3272_s23, 3 }
   0x5   : > { %s3875_s24 = smov (%p30_p1, %s28_s24), 0  ;;  %p274_p3 = pnand %p2361_p0, %p273_p2 }
   0x6   : > { %v3137_v0 = vld [vmem:[%s3869_s4 + $0x40] sm:$0xff] (!%p274_p3)   ;;  %v3274_v1 = vmov (!%p274_p3), 0.0   ;;  %v3139_v3 = vld [vmem:[%s3869_s4 + $0x48] sm:$0xff] (!%p274_p3)   ;;  %vm3275_vm0 = vmmov (!%p274_p3), 0   ;;  %p328_p4 = scmp.lt.s32.totalorder (!%p274_p3), %s3264_s21, 1  ;;  %v3141_v5 = vld [vmem:[%s3869_s4 + $0x50] sm:$0xff] (!%p274_p3)  }
   0x7   : > { %277 = sbr.rel (%p274_p3) target bundleno = 438 (0x1b6), region = 44  ;;  %2769 = vmatprep.subr.bf16.mxu0 (!%p274_p3), %v3274_v1  ;;  %2805 = vmatprep.subr.bf16.mxu1 (!%p274_p3), %v3274_v1  ;;  %v3138_v2 = vld [vmem:[%s3869_s4] sm:$0xff] (!%p274_p3)   ;;  %v3140_v4 = vld [vmem:[%s3869_s4 + $0x8] sm:$0xff] (!%p274_p3)   ;;  %v3142_v6 = vld [vmem:[%s3869_s4 + $0x10] sm:$0xff] (!%p274_p3)   ;;  %vm763_vm1 = vsmask.f32 (!%p274_p3), 7424 }
   0x8   : > { %2770 = vmatpush3.bf16.msra.mxu0 (!%p274_p3), %v3137_v0  ;;  %2785 = vmatprep.mubr.msk.bf16.mxu0 (!%p274_p3), %vm3275_vm0, %v3274_v1  ;;  %v3143_v7 = vld [vmem:[%s3869_s4 + $0x58] sm:$0xff] (!%p274_p3)   ;;  %v3145_v9 = vld [vmem:[%s3869_s4 + $0x60] sm:$0xff] (!%p274_p3)   ;;  %v3147_v11 = vld [vmem:[%s3869_s4 + $0x68] sm:$0xff] (!%p274_p3)   ;;  %vm1999_vm2 = vcmask (!%p274_p3), 1046528  }
   0x9   : > { %2806 = vmatpush3.bf16.msra.mxu1 (!%p274_p3), %v3138_v2  ;;  %2771 = vmatprep.subr.bf16.mxu0 (!%p274_p3), %v3274_v1  ;;  %v3144_v8 = vld [vmem:[%s3869_s4 + $0x18] sm:$0xff] (!%p274_p3)   ;;  %v3146_v10 = vld [vmem:[%s3869_s4 + $0x20] sm:$0xff] (!%p274_p3)   ;;  %v3148_v12 = vld [vmem:[%s3869_s4 + $0x28] sm:$0xff] (!%p274_p3)  }
   0xa   : > { %2807 = vmatprep.subr.bf16.mxu1 (!%p274_p3), %v3274_v1  ;;  %2821 = vmatprep.mubr.msk.bf16.mxu1 (!%p274_p3), %vm3275_vm0, %v3274_v1  ;;  %v3149_v13 = vld [vmem:[%s3869_s4 + $0x70] sm:$0xff] (!%p274_p3)   ;;  %v3151_v15 = vld [vmem:[%s3869_s4 + $0x78] sm:$0xff] (!%p274_p3)   ;;  %v3155_v19 = vld [vmem:[%s3869_s4 + $0x80] sm:$0xff] (!%p274_p3)  }
   0xb   : > { %v3150_v14 = vld [vmem:[%s3869_s4 + $0x30] sm:$0xff] (!%p274_p3)   ;;  %v3152_v16 = vld [vmem:[%s3869_s4 + $0x38] sm:$0xff] (!%p274_p3)   ;;  %v3159_v20 = vld [vmem:[%s3869_s4 + $0xc0] sm:$0xff] (!%p274_p3)  }
   0xc   : > { %2772 = vmatpush3.bf16.msra.mxu0 (!%p274_p3), %v3139_v3  ;;  %v3156_v21 = vld [vmem:[%s3869_s4 + $0x88] sm:$0xff] (!%p274_p3)   ;;  %v3160_v25 = vld [vmem:[%s3869_s4 + $0x90] sm:$0xff] (!%p274_p3)   ;;  %v3164_v27 = vld [vmem:[%s3869_s4 + $0x98] sm:$0xff] (!%p274_p3)  }
   0xd   : > { %2808 = vmatpush3.bf16.msra.mxu1 (!%p274_p3), %v3140_v4  ;;  %2773 = vmatprep.subr.bf16.mxu0 (!%p274_p3), %v3274_v1  ;;  %v3161_v23 = vld [vmem:[%s3869_s4 + $0xc8] sm:$0xff] (!%p274_p3)   ;;  %v3165_v26 = vld [vmem:[%s3869_s4 + $0xd0] sm:$0xff] (!%p274_p3)   ;;  %v3167_v29 = vld [vmem:[%s3869_s4 + $0xd8] sm:$0xff] (!%p274_p3)  }
   0xe   : > { %s3877_s21 = smov (!%p328_p4, %s3264_s21), 1  ;;  %2809 = vmatprep.subr.bf16.mxu1 %v3274_v1  ;;  %v3166_v31 = vld [vmem:[%s3869_s4 + $0xa0] sm:$0xff]   ;;  %v3171_v33 = vld [vmem:[%s3869_s4 + $0xa8] sm:$0xff]   ;;  %v3173_v38 = vld [vmem:[%s3869_s4 + $0xb0] sm:$0xff]  }
   0xf   : > { %s3371_s17 = smul.u32 48, %s3877_s21  ;;  %v3170_v32 = vld [vmem:[%s3869_s4 + $0xe0] sm:$0xff]   ;;  %v3172_v35 = vld [vmem:[%s3869_s4 + $0xe8] sm:$0xff]   ;;  %v3176_v39 = vld [vmem:[%s3869_s4 + $0xf0] sm:$0xff]  }
  0x10   : > { %2774 = vmatpush3.bf16.msra.mxu0 %v3141_v5  ;;  %v3177_v43 = vld [vmem:[%s3869_s4 + $0xb8] sm:$0xff]   ;;  %v3182_v53 = vld [vmem:[%s3869_s4 + $0x100] sm:$0xff]   ;;  %v3183_v59 = vld [vmem:[%s3869_s4 + $0x108] sm:$0xff]   ;;  %s3110_s26 = smul.u32 36, %s3877_s21 }
  0x11   : > { %2810 = vmatpush3.bf16.msra.mxu1 %v3142_v6  ;;  %2775 = vmatprep.subr.bf16.mxu0 %v3274_v1  ;;  %s3385_s28 = scalar_lea.vmem %s3866_s1, %s3371_s17  ;;  %s3392_s7 = scalar_lea.vmem %s3865_s0, %s3371_s17  ;;  %v3178_v45 = vld [vmem:[%s3869_s4 + $0xf8] sm:$0xff]   ;;  %v3186_v57 = vld [vmem:[%s3869_s4 + $0x140] sm:$0xff]   ;;  %v3188_v62 = vld [vmem:[%s3869_s4 + $0x148] sm:$0xff]  }
  0x12   : > { %2811 = vmatprep.subr.bf16.mxu1 %v3274_v1  ;;  %v3153_v17 = vld [vmem:[%s3385_s28] sm:$0xff]   ;;  %v3157_v22 = vld [vmem:[%s3385_s28 + $0x8] sm:$0xff]   ;;  %s3457_s20 = scalar_lea.vmem %s3867_s2, %s3371_s17  ;;  %v3162_v28 = vld [vmem:[%s3385_s28 + $0x10] sm:$0xff]   ;;  %s3525_s30 = scalar_lea.vmem %s3868_s3, %s3371_s17 }
  0x13   : > { %v3154_v18 = vld [vmem:[%s3392_s7] sm:$0xff]   ;;  %v3158_v24 = vld [vmem:[%s3392_s7 + $0x8] sm:$0xff]   ;;  %v3163_v30 = vld [vmem:[%s3392_s7 + $0x10] sm:$0xff]   ;;  %s3845_s29 = scalar_lea.vmem %s3871_s6, %s3110_s26 }
  0x14   : > { %2776 = vmatpush3.bf16.msra.mxu0 %v3143_v7  ;;  %v3168_v34 = vld [vmem:[%s3385_s28 + $0x18] sm:$0xff]   ;;  %v3179_v37 = vld [vmem:[%s3392_s7] sm:$0xff]   ;;  %v3180_v40 = vld [vmem:[%s3392_s7 + $0x8] sm:$0xff]  }
  0x15   : > { %2812 = vmatpush3.bf16.msra.mxu1 %v3144_v8  ;;  %2777 = vmatprep.subr.bf16.mxu0 %v3274_v1  ;;  %v3169_v36 = vld [vmem:[%s3392_s7 + $0x18] sm:$0xff]   ;;  %v767_v41 = vshll.u32 %v3179_v37, 16  ;;  %v3174_v42 = vld [vmem:[%s3385_s28 + $0x20] ss:$0 sps:$4 sm:$0xff]   ;;  %v765_v46 = vshrl.u32 %v3179_v37, 16  ;;  %v772_v48 = vshll.u32 %v3180_v40, 16 }
  0x16   : > { %2813 = vmatprep.subr.bf16.mxu1 %v3274_v1  ;;  %v3175_v44 = vld [vmem:[%s3392_s7 + $0x20] ss:$0 sps:$4 sm:$0xff]   ;;  %v3184_v51 = vld [vmem:[%s3392_s7 + $0x10] sm:$0xff]   ;;  %v776_v55 = vshrl.u32 %v3180_v40, 16  ;;  %v3189_v58 = vld [vmem:[%s3392_s7 + $0x18] sm:$0xff]  }
  0x17   : > { %v769_v47 = vrot.slane %v767_v41, 1  ;;  %v774_v50 = vrot.slane %v772_v48, 1  ;;  %v3181_v52 = vld [vmem:[%s3457_s20] sm:$0xff]   ;;  %v780_v56 = vshll.u32 %v3184_v51, 16  ;;  %v3185_v63 = vld [vmem:[%s3457_s20 + $0x8] sm:$0xff]   ;;  %v788_v0 = vshll.u32 %v3189_v58, 16 }
  0x18   : > { %2778 = vmatpush3.bf16.msra.mxu0 %v3145_v9  ;;  %v3187_v3 = vld [vmem:[%s3869_s4 + $0x110] sm:$0xff]   ;;  %v784_v4 = vshrl.u32 %v3184_v51, 16  ;;  %v3191_v7 = vld [vmem:[%s3869_s4 + $0x118] sm:$0xff]   ;;  %v3195_v9 = vld [vmem:[%s3392_s7 + $0x20] sm:$0x1f]  }
  0x19   : > { %2814 = vmatpush3.bf16.msra.mxu1 %v3146_v10  ;;  %2779 = vmatprep.subr.bf16.mxu0 %v3274_v1  ;;  %v770_v49 = vor.u32 %v769_v47, %v765_v46  ;;  %v778_v60 = vor.u32 %v776_v55, %v774_v50  ;;  %v782_v61 = vrot.slane %v780_v56, 1  ;;  %v3192_v5 = vld [vmem:[%s3869_s4 + $0x150] sm:$0xff]   ;;  %v790_v6 = vrot.slane %v788_v0, 1  ;;  %v3194_v10 = vld [vmem:[%s3869_s4 + $0x158] sm:$0xff]   ;;  %v3208_v40 = vld [vmem:[%s3869_s4 + $0x180] sm:$0xff]  }
  0x1a   : > { %2815 = vmatprep.subr.bf16.mxu1 %v3274_v1  ;;  %v3216_v48 = vld [vmem:[%s3457_s20 + $0x18] sm:$0xff]   ;;  %v3213_v51 = vld [vmem:[%s3869_s4 + $0x190] sm:$0xff]  }
  0x1b   : > { %v775_v54 = vsel %vm763_vm1, %v770_v49, %v774_v50  ;;  %v783_v2 = vsel %vm763_vm1, %v778_v60, %v782_v61  ;;  %v786_v8 = vor.u32 %v784_v4, %v782_v61  ;;  %v3214_v49 = vld [vmem:[%s3869_s4 + $0x1c8] sm:$0xff]   ;;  %v3218_v55 = vld [vmem:[%s3869_s4 + $0x1d0] sm:$0xff]   ;;  %v3217_v56 = vld [vmem:[%s3869_s4 + $0x198] sm:$0xff]   ;;  %v1383_v0 = vshrl.u32 %v3216_v48, 16 }
  0x1c   : > { %2780 = vmatpush3.bf16.msra.mxu0 %v3147_v11  ;;  %v3190_v11 = vld [vmem:[%s3457_s20 + $0x10] sm:$0xff]   ;;  %v3210_v50 = vld [vmem:[%s3525_s30 + $0x8] sm:$0xff]   ;;  %v3220_v60 = vld [vmem:[%s3869_s4 + $0x1d8] sm:$0xff]  }
  0x1d   : > { %2816 = vmatpush3.bf16.msra.mxu1 %v3148_v12  ;;  %2781 = vmatprep.subr.bf16.mxu0 %v3274_v1  ;;  %v792_v12 = vshrl.u32 %v3189_v58, 16  ;;  %v3215_v61 = vld [vmem:[%s3525_s30 + $0x10] sm:$0xff]   ;;  %v3224_v4 = vld [vmem:[%s3869_s4 + $0x1a8] sm:$0xff]  }
  0x1e   : > { %2817 = vmatprep.subr.bf16.mxu1 %v3274_v1 }
  0x20   : > { %2782 = vmatpush3.bf16.msra.mxu0 %v3149_v13  ;;  %v791_v13 = vsel %vm763_vm1, %v786_v8, %v790_v6  ;;  %v3690_v8 = vld [vmem:[%s3392_s7 + $0x8] sm:$0xf] }
  0x21   : > { %2818 = vmatpush3.bf16.msra.mxu1 %v3150_v14  ;;  %2783 = vmatprep.subr.bf16.mxu0 %v3274_v1  ;;  %v3193_v14 = vld [vmem:[%s3869_s4 + $0x120] sm:$0xff]  }
  0x22   : > { %2819 = vmatprep.subr.bf16.mxu1 %v3274_v1 }
  0x24   : > { %2784 = vmatpush3.bf16.msra.mxu0 %v3151_v15  ;;  %v796_v15 = vshll.u32 %v3195_v9, 16 }
  0x25   : > { %2820 = vmatpush3.bf16.msra.mxu1 %v3152_v16  ;;  %2841 = vmatprep.subr.bf16.mxu0 %v3274_v1  ;;  %v3197_v16 = vld [vmem:[%s3869_s4 + $0x160] sm:$0xff]  }
  0x26   : > { %2877 = vmatprep.subr.bf16.mxu1 %v3274_v1 }
  0x27   : > { %2786 = vmatmul.mubr.bf16.vlgmr.msra.gmra.mrb[0].mxu0 %v3153_v17  ;;  %v794_v17 = vor.u32 %v792_v12, %v790_v6 }
  0x28   : > { %2822 = vmatmul.mubr.bf16.vlgmr.msra.gmra.mrb[0].mxu1 %v3154_v18  ;;  %2842 = vmatpush3.bf16.msra.mxu0 %v3155_v19  ;;  %v798_v18 = vrot.slane %v796_v15, 1  ;;  %v3198_v19 = vld [vmem:[%s3869_s4 + $0x128] sm:$0xff]   ;;  %v3228_v15 = vld [vmem:[%s3869_s4 + $0x1f0] sm:$0xff]  }
  0x29   : > { %2843 = vmatprep.subr.bf16.mxu0 %v3274_v1  ;;  %2789 = vmatprep.mubr.msk.bf16.mxu0 %vm3275_vm0, %v3274_v1 }
  0x2a   : > { %2825 = vmatprep.mubr.msk.bf16.mxu1 %vm3275_vm0, %v3274_v1  ;;  %2878 = vmatpush3.bf16.msra.mxu1 %v3159_v20  ;;  %v3199_v20 = vld [vmem:[%s3869_s4 + $0x168] sm:$0xff]  }
  0x2b   : > { %2879 = vmatprep.subr.bf16.mxu1 %v3274_v1 }
  0x2c   : > { %2844 = vmatpush3.bf16.msra.mxu0 %v3156_v21  ;;  %v3196_v21 = vld [vmem:[%s3457_s20 + $0x18] sm:$0xff]  }
  0x2d   : > { %2845 = vmatprep.subr.bf16.mxu0 %v3274_v1 }
  0x2e   : > { %2880 = vmatpush3.bf16.msra.mxu1 %v3161_v23  ;;  %v799_v23 = vsel %vm763_vm1, %v794_v17, %v798_v18  ;;  %v3712_v17 = vld [vmem:[%s3392_s7 + $0xc] sm:$0xff]  }
  0x2f   : > { %2790 = vmatmul.mubr.bf16.gmra.mrb[4].mxu0 %v3157_v22  ;;  %2881 = vmatprep.subr.bf16.mxu1 %v3274_v1  ;;  %v3200_v22 = vld [vmem:[%s3869_s4 + $0x130] sm:$0xff]  }
  0x30   : > { %2826 = vmatmul.mubr.bf16.gmra.mrb[4].mxu1 %v3158_v24  ;;  %2846 = vmatpush3.bf16.msra.mxu0 %v3160_v25  ;;  %v3206_v24 = vld [vmem:[%s3457_s20] sm:$0xff]   ;;  %v3202_v25 = vld [vmem:[%s3869_s4 + $0x170] sm:$0xff]  }
  0x31   : > { %2793 = vmatprep.mubr.msk.bf16.mxu0 %vm3275_vm0, %v3274_v1  ;;  %2829 = vmatprep.mubr.msk.bf16.mxu1 %vm3275_vm0, %v3274_v1 }
  0x32   : > { %2847 = vmatprep.subr.bf16.mxu0 %v3274_v1  ;;  %2882 = vmatpush3.bf16.msra.mxu1 %v3165_v26  ;;  %v800_v26 = vshrl.u32 %v3195_v9, 16  ;;  %v3225_v9 = vld [vmem:[%s3869_s4 + $0x1e8] sm:$0xff]  }
  0x33   : > { %2883 = vmatprep.subr.bf16.mxu1 %v3274_v1 }
  0x34   : > { %2848 = vmatpush3.bf16.msra.mxu0 %v3164_v27  ;;  %v3203_v27 = vld [vmem:[%s3869_s4 + $0x138] sm:$0xff]  }
  0x35   : > { %2849 = vmatprep.subr.bf16.mxu0 %v3274_v1 }
  0x36   : > { %2884 = vmatpush3.bf16.msra.mxu1 %v3167_v29  ;;  %v1358_v29 = vshll.u32 %v3206_v24, 16 }
  0x37   : > { %2794 = vmatmul.mubr.bf16.gmra.mrb[8].mxu0 %v3162_v28  ;;  %2885 = vmatprep.subr.bf16.mxu1 %v3274_v1  ;;  %v3207_v28 = vld [vmem:[%s3457_s20 + $0x8] sm:$0xff]  }
  0x38   : > { %2830 = vmatmul.mubr.bf16.gmra.mrb[8].mxu1 %v3163_v30  ;;  %2850 = vmatpush3.bf16.msra.mxu0 %v3166_v31  ;;  %v3204_v30 = vld [vmem:[%s3869_s4 + $0x178] sm:$0xff]   ;;  %v802_v31 = vor.u32 %v800_v26, %v798_v18 }
  0x39   : > { %2797 = vmatprep.mubr.msk.bf16.mxu0 %vm3275_vm0, %v3274_v1  ;;  %2833 = vmatprep.mubr.msk.bf16.mxu1 %vm3275_vm0, %v3274_v1 }
  0x3a   : > { %2851 = vmatprep.subr.bf16.mxu0 %v3274_v1  ;;  %2886 = vmatpush3.bf16.msra.mxu1 %v3170_v32  ;;  %v3201_v32 = vld [vmem:[%s3457_s20 + $0x20] ss:$0 sps:$4 sm:$0xff]  }
  0x3b   : > { %2887 = vmatprep.subr.bf16.mxu1 %v3274_v1 }
  0x3c   : > { %2852 = vmatpush3.bf16.msra.mxu0 %v3171_v33  ;;  %v1356_v33 = vshrl.u32 %v3206_v24, 16 }
  0x3d   : > { %2853 = vmatprep.subr.bf16.mxu0 %v3274_v1 }
  0x3e   : > { %2888 = vmatpush3.bf16.msra.mxu1 %v3172_v35  ;;  %v1363_v35 = vshll.u32 %v3207_v28, 16 }
  0x3f   : > { %2798 = vmatmul.mubr.bf16.gmra.mrb[12].mxu0 %v3168_v34  ;;  %2889 = vmatprep.subr.bf16.mxu1 %v3274_v1  ;;  %v1360_v34 = vrot.slane %v1358_v29, 1 }
  0x40   : > { %2834 = vmatmul.mubr.bf16.gmra.mrb[12].mxu1 %v3169_v36  ;;  %2801 = vmatprep.mubr.msk.bf16.mxu0 %vm3275_vm0, %v3274_v1  ;;  %v1365_v37 = vrot.slane %v1363_v35, 1 }
  0x41   : > { %2837 = vmatprep.mubr.msk.bf16.mxu1 %vm3275_vm0, %v3274_v1  ;;  %2854 = vmatpush3.bf16.msra.mxu0 %v3173_v38  ;;  %v1361_v36 = vor.u32 %v1360_v34, %v1356_v33  ;;  %v3211_v38 = vld [vmem:[%s3457_s20 + $0x10] sm:$0xff]  }
  0x42   : > { %2890 = vmatpush3.bf16.msra.mxu1 %v3176_v39  ;;  %2855 = vmatprep.subr.bf16.mxu0 %v3274_v1  ;;  %v3205_v39 = vld [vmem:[%s3525_s30] sm:$0xff]   ;;  %v3732_v33 = vld [vmem:[%s3392_s7 + $0x14] sm:$0xff]  }
  0x43   : > { %2891 = vmatprep.subr.bf16.mxu1 %v3274_v1  ;;  %v1366_v41 = vsel %vm763_vm1, %v1361_v36, %v1365_v37  ;;  %v3238_v36 = vld [vmem:[%s3385_s28 + $0x14] sm:$0xff]  }
  0x45   : > { %2856 = vmatpush3.bf16.msra.mxu0 %v3177_v43  ;;  %v1371_v43 = vshll.u32 %v3211_v38, 16 }
  0x46   : > { %2892 = vmatpush3.bf16.msra.mxu1 %v3178_v45  ;;  %2913 = vmatprep.subr.bf16.mxu0 %v3274_v1  ;;  %v3209_v45 = vld [vmem:[%s3869_s4 + $0x188] sm:$0xff]  }
  0x47   : > { %2802 = vmatmul.mubr.bf16.gmra.mrb[16].mxu0 %v3174_v42  ;;  %2949 = vmatprep.subr.bf16.mxu1 %v3274_v1  ;;  %v1367_v42 = vshrl.u32 %v3207_v28, 16  ;;  %v1373_v47 = vrot.slane %v1371_v43, 1  ;;  %v1821_v43 = vshll.u32 %v3238_v36, 16 }
  0x48   : > { %2838 = vmatmul.mubr.bf16.gmra.mrb[16].mxu1 %v3175_v44  ;;  %2857 = vmatprep.mubr.msk.bf16.mxu0 %vm3275_vm0, %v3274_v1  ;;  %v3212_v44 = vld [vmem:[%s3869_s4 + $0x1c0] sm:$0xff]  }
  0x49   : > { %2893 = vmatprep.mubr.msk.bf16.mxu1 %vm3275_vm0, %v3274_v1  ;;  %v1369_v46 = vor.u32 %v1367_v42, %v1365_v37 }
  0x4f   : > { %2858 = vmatmul.mubr.bf16.vlgmr.msra.gmra.mrb[20].mxu0 %v775_v54  ;;  %v1379_v54 = vshll.u32 %v3216_v48, 16 }
  0x50   : > { %2894 = vmatmul.mubr.bf16.vlgmr.msra.gmra.mrb[20].mxu1 %v3181_v52  ;;  %2914 = vmatpush3.bf16.msra.mxu0 %v3182_v53  ;;  %v1374_v52 = vsel %vm763_vm1, %v1369_v46, %v1373_v47  ;;  %v1375_v53 = vshrl.u32 %v3211_v38, 16  ;;  %v3235_v38 = vld [vmem:[%s3869_s4 + $0x200] sm:$0xff]  }
  0x51   : > { %2915 = vmatprep.subr.bf16.mxu0 %v3274_v1  ;;  %2861 = vmatprep.mubr.msk.bf16.mxu0 %vm3275_vm0, %v3274_v1  ;;  %v1381_v58 = vrot.slane %v1379_v54, 1 }
  0x52   : > { %2897 = vmatprep.mubr.msk.bf16.mxu1 %vm3275_vm0, %v3274_v1  ;;  %2950 = vmatpush3.bf16.msra.mxu1 %v3186_v57  ;;  %v1377_v57 = vor.u32 %v1375_v53, %v1373_v47  ;;  %v3748_v47 = vld [vmem:[%s3392_s7 + $0x1c] sm:$0xff]   ;;  %v1600_v53 = vshrl.u32 %v3732_v33, 16 }
  0x53   : > { %2951 = vmatprep.subr.bf16.mxu1 %v3274_v1  ;;  %v1604_v54 = vshll.u32 %v3748_v47, 16 }
  0x54   : > { %2916 = vmatpush3.bf16.msra.mxu0 %v3183_v59  ;;  %v3222_v59 = vld [vmem:[%s3457_s20 + $0x20] sm:$0x1f]  }
  0x55   : > { %2917 = vmatprep.subr.bf16.mxu0 %v3274_v1 }
  0x56   : > { %2952 = vmatpush3.bf16.msra.mxu1 %v3188_v62  ;;  %v3219_v62 = vld [vmem:[%s3869_s4 + $0x1a0] sm:$0xff]  }
  0x57   : > { %2862 = vmatmul.mubr.bf16.gmra.mrb[24].mxu0 %v783_v2  ;;  %2953 = vmatprep.subr.bf16.mxu1 %v3274_v1  ;;  %v1387_v2 = vshll.u32 %v3222_v59, 16 }
  0x58   : > { %2898 = vmatmul.mubr.bf16.gmra.mrb[24].mxu1 %v3185_v63  ;;  %2918 = vmatpush3.bf16.msra.mxu0 %v3187_v3  ;;  %v1382_v63 = vsel %vm763_vm1, %v1377_v57, %v1381_v58  ;;  %v3223_v3 = vld [vmem:[%s3869_s4 + $0x1e0] sm:$0xff]  }
  0x59   : > { %2865 = vmatprep.mubr.msk.bf16.mxu0 %vm3275_vm0, %v3274_v1  ;;  %2901 = vmatprep.mubr.msk.bf16.mxu1 %vm3275_vm0, %v3274_v1  ;;  %v1389_v6 = vrot.slane %v1387_v2, 1 }
  0x5a   : > { %2919 = vmatprep.subr.bf16.mxu0 %v3274_v1  ;;  %2954 = vmatpush3.bf16.msra.mxu1 %v3192_v5  ;;  %v1385_v5 = vor.u32 %v1383_v0, %v1381_v58  ;;  %v3245_v0 = vld [vmem:[%s3385_s28 + $0x24] sm:$0x1f]  }
  0x5b   : > { %2955 = vmatprep.subr.bf16.mxu1 %v3274_v1 }
  0x5c   : > { %2920 = vmatpush3.bf16.msra.mxu0 %v3191_v7  ;;  %v1528_v7 = vld [vmem:[%s3392_s7 + $0x4] sm:$0xf]  ;;  %v1390_v12 = vsel %vm763_vm1, %v1385_v5, %v1389_v6 }
  0x5d   : > { %2921 = vmatprep.subr.bf16.mxu0 %v3274_v1 }
  0x5e   : > { %2956 = vmatpush3.bf16.msra.mxu1 %v3194_v10  ;;  %v3221_v10 = vld [vmem:[%s3525_s30 + $0x18] sm:$0xff]  }
  0x5f   : > { %2866 = vmatmul.mubr.bf16.gmra.mrb[28].mxu0 %v791_v13  ;;  %2957 = vmatprep.subr.bf16.mxu1 %v3274_v1  ;;  %v3226_v13 = vld [vmem:[%s3869_s4 + $0x1b0] sm:$0xff]  }
  0x60   : > { %2902 = vmatmul.mubr.bf16.gmra.mrb[28].mxu1 %v3190_v11  ;;  %2922 = vmatpush3.bf16.msra.mxu0 %v3193_v14  ;;  %v2541_v11 = vcombine.low %v1528_v7, %v3690_v8  ;;  %v3233_v14 = vld [vmem:[%s3385_s28 + $0x4] sm:$0xff]  }
  0x61   : > { %2869 = vmatprep.mubr.msk.bf16.mxu0 %vm3275_vm0, %v3274_v1  ;;  %2905 = vmatprep.mubr.msk.bf16.mxu1 %vm3275_vm0, %v3274_v1  ;;  %v1806_v28 = vshrl.u32 %v3233_v14, 16 }
  0x62   : > { %2923 = vmatprep.subr.bf16.mxu0 %v3274_v1  ;;  %2958 = vmatpush3.bf16.msra.mxu1 %v3197_v16  ;;  %v1391_v16 = vshrl.u32 %v3222_v59, 16  ;;  %v1583_v18 = vshll.u32 %v2541_v11, 16  ;;  %v1606_v59 = vrot.slane %v1604_v54, 1 }
  0x63   : > { %2959 = vmatprep.subr.bf16.mxu1 %v3274_v1 }
  0x64   : > { %2924 = vmatpush3.bf16.msra.mxu0 %v3198_v19  ;;  %v3229_v19 = vld [vmem:[%s3869_s4 + $0x1b8] sm:$0xff]   ;;  %v1393_v24 = vor.u32 %v1391_v16, %v1389_v6  ;;  %v1585_v26 = vrot.slane %v1583_v18, 1  ;;  %v3247_v18 = vld [vmem:[%s3869_s4 + $0x230] sm:$0xff]  }
  0x65   : > { %2925 = vmatprep.subr.bf16.mxu0 %v3274_v1 }
  0x66   : > { %2960 = vmatpush3.bf16.msra.mxu1 %v3199_v20  ;;  %v3234_v20 = vld [vmem:[%s3385_s28 + $0xc] sm:$0xff]  }
  0x67   : > { %2870 = vmatmul.mubr.bf16.gmra.mrb[32].mxu0 %v799_v23  ;;  %2961 = vmatprep.subr.bf16.mxu1 %v3274_v1  ;;  %v3227_v23 = vld [vmem:[%s3525_s30 + $0x20] ss:$0 sps:$4 sm:$0xff]   ;;  %v1817_v42 = vshrl.u32 %v3234_v20, 16 }
  0x68   : > { %2906 = vmatmul.mubr.bf16.gmra.mrb[32].mxu1 %v3196_v21  ;;  %2873 = vmatprep.mubr.msk.bf16.mxu0 %vm3275_vm0, %v3274_v1  ;;  %v1808_v21 = vshll.u32 %v3233_v14, 16 }
  0x69   : > { %2909 = vmatprep.mubr.msk.bf16.mxu1 %vm3275_vm0, %v3274_v1  ;;  %2926 = vmatpush3.bf16.msra.mxu0 %v3200_v22  ;;  %v3230_v22 = vld [vmem:[%s3869_s4 + $0x1f8] sm:$0xff]  }
  0x6a   : > { %2962 = vmatpush3.bf16.msra.mxu1 %v3202_v25  ;;  %2927 = vmatprep.subr.bf16.mxu0 %v3274_v1  ;;  %v1581_v25 = vshrl.u32 %v2541_v11, 16  ;;  %v1810_v29 = vrot.slane %v1808_v21, 1  ;;  %v3248_v21 = vld [vmem:[%s3869_s4 + $0x238] sm:$0xff]  }
  0x6b   : > { %2963 = vmatprep.subr.bf16.mxu1 %v3274_v1 }
  0x6c   : > { %v1811_v34 = vor.u32 %v1810_v29, %v1806_v28  ;;  %v2005_v28 = vrot.slane %v3748_v47, 1 }
  0x6d   : > { %2928 = vmatpush3.bf16.msra.mxu0 %v3203_v27  ;;  %v1588_v27 = vshll.u32 %v3712_v17, 16 }
  0x6e   : > { %2964 = vmatpush3.bf16.msra.mxu1 %v3204_v30  ;;  %2985 = vmatprep.subr.bf16.mxu0 %v3274_v1  ;;  %v1813_v30 = vshll.u32 %v3234_v20, 16  ;;  %v1841_v20 = vshrl.u32 %v3245_v0, 16 }
  0x6f   : > { %2874 = vmatmul.mubr.bf16.gmra.mrb[36].mxu0 %v802_v31  ;;  %3021 = vmatprep.subr.bf16.mxu1 %v3274_v1  ;;  %v1586_v31 = vor.u32 %v1585_v26, %v1581_v25 }
  0x70   : > { %2910 = vmatmul.mubr.bf16.gmra.mrb[36].mxu1 %v3201_v32  ;;  %2929 = vmatprep.mubr.msk.bf16.mxu0 %vm3275_vm0, %v3274_v1  ;;  %v1590_v32 = vrot.slane %v1588_v27, 1  ;;  %v1815_v35 = vrot.slane %v1813_v30, 1  ;;  %v2001_v27 = vrot.slane %v3712_v17, 1 }
  0x71   : > { %2965 = vmatprep.mubr.msk.bf16.mxu1 %vm3275_vm0, %v3274_v1 }
  0x72   : > { %v1591_v37 = vsel %vm763_vm1, %v1586_v31, %v1590_v32  ;;  %v1819_v48 = vor.u32 %v1817_v42, %v1815_v35  ;;  %v2003_v31 = vrot.slane %v3732_v33, 1 }
  0x77   : > { %2930 = vmatmul.mubr.bf16.vlgmr.msra.gmra.mrb[40].mxu0 %v3205_v39  ;;  %v1592_v39 = vshrl.u32 %v3712_v17, 16  ;;  %v2004_v17 = vsel %vm1999_vm2, %v2001_v27, %v2003_v31 }
  0x78   : > { %2966 = vmatmul.mubr.bf16.vlgmr.msra.gmra.mrb[40].mxu1 %v1366_v41  ;;  %2986 = vmatpush3.bf16.msra.mxu0 %v3208_v40  ;;  %v1596_v40 = vshll.u32 %v3732_v33, 16  ;;  %v1816_v41 = vsel %vm763_vm1, %v1811_v34, %v1815_v35 }
  0x79   : > { %2987 = vmatprep.subr.bf16.mxu0 %v3274_v1  ;;  %2933 = vmatprep.mubr.msk.bf16.mxu0 %vm3275_vm0, %v3274_v1 }
  0x7a   : > { %2969 = vmatprep.mubr.msk.bf16.mxu1 %vm3275_vm0, %v3274_v1  ;;  %3022 = vmatpush3.bf16.msra.mxu1 %v3212_v44  ;;  %v3236_v44 = vld [vmem:[%s3869_s4 + $0x208] sm:$0xff]   ;;  %v1598_v46 = vrot.slane %v1596_v40, 1 }
  0x7b   : > { %3023 = vmatprep.subr.bf16.mxu1 %v3274_v1 }
  0x7c   : > { %2988 = vmatpush3.bf16.msra.mxu0 %v3209_v45  ;;  %v1594_v45 = vor.u32 %v1592_v39, %v1590_v32  ;;  %v1602_v58 = vor.u32 %v1600_v53, %v1598_v46  ;;  %v2006_v32 = vsel %vm1999_vm2, %v2003_v31, %v2005_v28 }
  0x7d   : > { %2989 = vmatprep.subr.bf16.mxu0 %v3274_v1 }
  0x7e   : > { %3024 = vmatpush3.bf16.msra.mxu1 %v3214_v49  ;;  %v1823_v49 = vrot.slane %v1821_v43, 1  ;;  %v1607_v2 = vsel %vm763_vm1, %v1602_v58, %v1606_v59 }
  0x7f   : > { %2934 = vmatmul.mubr.bf16.gmra.mrb[44].mxu0 %v3210_v50  ;;  %3025 = vmatprep.subr.bf16.mxu1 %v3274_v1  ;;  %v3241_v50 = vld [vmem:[%s3385_s28 + $0x1c] sm:$0xff]  }
  0x80   : > { %2970 = vmatmul.mubr.bf16.gmra.mrb[44].mxu1 %v1374_v52  ;;  %2990 = vmatpush3.bf16.msra.mxu0 %v3213_v51  ;;  %v1599_v51 = vsel %vm763_vm1, %v1594_v45, %v1598_v46  ;;  %v3239_v52 = vld [vmem:[%s3869_s4 + $0x210] sm:$0xff]   ;;  %v1829_v57 = vshll.u32 %v3241_v50, 16  ;;  %v1833_v7 = vshrl.u32 %v3241_v50, 16 }
  0x81   : > { %2937 = vmatprep.mubr.msk.bf16.mxu0 %vm3275_vm0, %v3274_v1  ;;  %2973 = vmatprep.mubr.msk.bf16.mxu1 %vm3275_vm0, %v3274_v1 }
  0x82   : > { %2991 = vmatprep.subr.bf16.mxu0 %v3274_v1  ;;  %3026 = vmatpush3.bf16.msra.mxu1 %v3218_v55  ;;  %v1824_v55 = vsel %vm763_vm1, %v1819_v48, %v1823_v49 }
  0x83   : > { %3027 = vmatprep.subr.bf16.mxu1 %v3274_v1 }
  0x84   : > { %2992 = vmatpush3.bf16.msra.mxu0 %v3217_v56  ;;  %v1825_v56 = vshrl.u32 %v3238_v36, 16 }
  0x85   : > { %2993 = vmatprep.subr.bf16.mxu0 %v3274_v1 }
  0x86   : > { %3028 = vmatpush3.bf16.msra.mxu1 %v3220_v60  ;;  %v3242_v60 = vld [vmem:[%s3869_s4 + $0x218] sm:$0xff]  }
  0x87   : > { %2938 = vmatmul.mubr.bf16.gmra.mrb[48].mxu0 %v3215_v61  ;;  %3029 = vmatprep.subr.bf16.mxu1 %v3274_v1  ;;  %v3770_v61 = vld [vmem:[%s3392_s7 + $0x24] sm:$0x1f]  }
  0x88   : > { %2974 = vmatmul.mubr.bf16.gmra.mrb[48].mxu1 %v1382_v63  ;;  %2994 = vmatpush3.bf16.msra.mxu0 %v3219_v62  ;;  %v1827_v62 = vor.u32 %v1825_v56, %v1823_v49  ;;  %v1831_v63 = vrot.slane %v1829_v57, 1  ;;  %v1612_v5 = vshll.u32 %v3770_v61, 16  ;;  %v2007_v29 = vrot.slane %v3770_v61, 1 }
  0x89   : > { %2941 = vmatprep.mubr.msk.bf16.mxu0 %vm3275_vm0, %v3274_v1  ;;  %2977 = vmatprep.mubr.msk.bf16.mxu1 %vm3275_vm0, %v3274_v1 }
  0x8a   : > { %2995 = vmatprep.subr.bf16.mxu0 %v3274_v1  ;;  %3030 = vmatpush3.bf16.msra.mxu1 %v3223_v3  ;;  %v3243_v3 = vld [vmem:[%s3869_s4 + $0x220] sm:$0xff]   ;;  %v1832_v6 = vsel %vm763_vm1, %v1827_v62, %v1831_v63  ;;  %v1614_v11 = vrot.slane %v1612_v5, 1 }
  0x8b   : > { %3031 = vmatprep.subr.bf16.mxu1 %v3274_v1 }
  0x8c   : > { %2996 = vmatpush3.bf16.msra.mxu0 %v3224_v4  ;;  %v1608_v4 = vshrl.u32 %v3748_v47, 16 }
  0x8d   : > { %2997 = vmatprep.subr.bf16.mxu0 %v3274_v1 }
  0x8e   : > { %3032 = vmatpush3.bf16.msra.mxu1 %v3225_v9  ;;  %v1837_v9 = vshll.u32 %v3245_v0, 16 }
  0x8f   : > { %2942 = vmatmul.mubr.bf16.gmra.mrb[52].mxu0 %v3221_v10  ;;  %3033 = vmatprep.subr.bf16.mxu1 %v3274_v1  ;;  %v1610_v10 = vor.u32 %v1608_v4, %v1606_v59 }
  0x90   : > { %2978 = vmatmul.mubr.bf16.gmra.mrb[52].mxu1 %v1390_v12  ;;  %2945 = vmatprep.mubr.msk.bf16.mxu0 %vm3275_vm0, %v3274_v1  ;;  %v3246_v12 = vld [vmem:[%s3869_s4 + $0x228] sm:$0xff]   ;;  %v1839_v14 = vrot.slane %v1837_v9, 1 }
  0x91   : > { %2981 = vmatprep.mubr.msk.bf16.mxu1 %vm3275_vm0, %v3274_v1  ;;  %2998 = vmatpush3.bf16.msra.mxu0 %v3226_v13  ;;  %v1835_v13 = vor.u32 %v1833_v7, %v1831_v63 }
  0x92   : > { %3034 = vmatpush3.bf16.msra.mxu1 %v3228_v15  ;;  %2999 = vmatprep.subr.bf16.mxu0 %v3274_v1  ;;  %v1615_v15 = vsel %vm763_vm1, %v1610_v10, %v1614_v11 }
  0x93   : > { %3035 = vmatprep.subr.bf16.mxu1 %v3274_v1  ;;  %v1840_v16 = vsel %vm763_vm1, %v1835_v13, %v1839_v14 }
  0x95   : > { %3000 = vmatpush3.bf16.msra.mxu0 %v3229_v19  ;;  %v1616_v19 = vshrl.u32 %v3770_v61, 16 }
  0x96   : > { %3036 = vmatpush3.bf16.msra.mxu1 %v3230_v22  ;;  %3057 = vmatprep.subr.bf16.mxu0 %v3274_v1  ;;  %v1978_v22 = vld [vmem:[%s3392_s7 + $0x4] sm:$0xe] }
  0x97   : > { %2946 = vmatmul.mubr.bf16.gmra.mrb[56].mxu0 %v3227_v23  ;;  %3093 = vmatprep.subr.bf16.mxu1 %v3274_v1  ;;  %v1618_v23 = vor.u32 %v1616_v19, %v1614_v11  ;;  %v2599_v25 = vcombine.low %v1978_v22, %v3690_v8  ;;  %v2008_v8 = vsel %vm1999_vm2, %v2005_v28, %v2007_v29 }
  0x98   : > { %2982 = vmatmul.mubr.bf16.gmra.mrb[56].mxu1 %v1393_v24  ;;  %3001 = vmatprep.mubr.msk.bf16.mxu0 %vm3275_vm0, %v3274_v1  ;;  %v1843_v24 = vor.u32 %v1841_v20, %v1839_v14 }
  0x99   : > { %3037 = vmatprep.mubr.msk.bf16.mxu1 %vm3275_vm0, %v3274_v1  ;;  %v2000_v26 = vrot.slane %v2599_v25, 1 }
  0x9b   : > { %v2002_v30 = vsel %vm1999_vm2, %v2000_v26, %v2001_v27 }
  0x9f   : > { %3002 = vmatmul.mubr.bf16.vlgmr.msra.gmra.mrb[60].mxu0 %v1591_v37 }
  0xa0   : > { %3038 = vmatmul.mubr.bf16.vlgmr.msra.gmra.mrb[60].mxu1 %v1816_v41  ;;  %3058 = vmatpush3.bf16.msra.mxu0 %v3235_v38 }
  0xa1   : > { %3059 = vmatprep.subr.bf16.mxu0 %v3274_v1  ;;  %3005 = vmatprep.mubr.msk.bf16.mxu0 %vm3275_vm0, %v3274_v1 }
  0xa2   : > { %3041 = vmatprep.mubr.msk.bf16.mxu1 %vm3275_vm0, %v3274_v1  ;;  %3101 = vmatpush3.bf16.msra.mxu1 %v3235_v38 }
  0xa3   : > { %3094 = vmatprep.subr.bf16.mxu1 %v3274_v1 }
  0xa4   : > { %3060 = vmatpush3.bf16.msra.mxu0 %v3236_v44 }
  0xa5   : > { %3061 = vmatprep.subr.bf16.mxu0 %v3274_v1 }
  0xa6   : > { %3102 = vmatpush3.bf16.msra.mxu1 %v3236_v44 }
  0xa7   : > { %3006 = vmatmul.mubr.bf16.gmra.mrb[64].mxu0 %v1599_v51  ;;  %3095 = vmatprep.subr.bf16.mxu1 %v3274_v1 }
  0xa8   : > { %3042 = vmatmul.mubr.bf16.gmra.mrb[64].mxu1 %v1824_v55  ;;  %3062 = vmatpush3.bf16.msra.mxu0 %v3239_v52 }
  0xa9   : > { %3009 = vmatprep.mubr.msk.bf16.mxu0 %vm3275_vm0, %v3274_v1  ;;  %3045 = vmatprep.mubr.msk.bf16.mxu1 %vm3275_vm0, %v3274_v1 }
  0xaa   : > { %3063 = vmatprep.subr.bf16.mxu0 %v3274_v1  ;;  %3103 = vmatpush3.bf16.msra.mxu1 %v3239_v52 }
  0xab   : > { %3096 = vmatprep.subr.bf16.mxu1 %v3274_v1 }
  0xac   : > { %3064 = vmatpush3.bf16.msra.mxu0 %v3242_v60 }
  0xad   : > { %3065 = vmatprep.subr.bf16.mxu0 %v3274_v1 }
  0xae   : > { %3104 = vmatpush3.bf16.msra.mxu1 %v3242_v60 }
  0xaf   : > { %3010 = vmatmul.mubr.bf16.gmra.mrb[68].mxu0 %v1607_v2  ;;  %3097 = vmatprep.subr.bf16.mxu1 %v3274_v1 }
  0xb0   : > { %3046 = vmatmul.mubr.bf16.gmra.mrb[68].mxu1 %v1832_v6  ;;  %3066 = vmatpush3.bf16.msra.mxu0 %v3243_v3 }
  0xb1   : > { %3013 = vmatprep.mubr.msk.bf16.mxu0 %vm3275_vm0, %v3274_v1  ;;  %3049 = vmatprep.mubr.msk.bf16.mxu1 %vm3275_vm0, %v3274_v1 }
  0xb2   : > { %3105 = vmatpush3.bf16.msra.mxu1 %v3243_v3  ;;  %3067 = vmatprep.subr.bf16.mxu0 %v3274_v1 }
  0xb3   : > { %3098 = vmatprep.subr.bf16.mxu1 %v3274_v1 }
  0xb4   : > { %3068 = vmatpush3.bf16.msra.mxu0 %v3246_v12 }
  0xb5   : > { %3069 = vmatprep.subr.bf16.mxu0 %v3274_v1 }
  0xb6   : > { %3106 = vmatpush3.bf16.msra.mxu1 %v3246_v12 }
  0xb7   : > { %3014 = vmatmul.mubr.bf16.gmra.mrb[72].mxu0 %v1615_v15  ;;  %3099 = vmatprep.subr.bf16.mxu1 %v3274_v1 }
  0xb8   : > { %3050 = vmatmul.mubr.bf16.gmra.mrb[72].mxu1 %v1840_v16  ;;  %3017 = vmatprep.mubr.msk.bf16.mxu0 %vm3275_vm0, %v3274_v1 }
  0xb9   : > { %3053 = vmatprep.mubr.msk.bf16.mxu1 %vm3275_vm0, %v3274_v1  ;;  %3070 = vmatpush3.bf16.msra.mxu0 %v3247_v18 }
  0xba   : > { %3107 = vmatpush3.bf16.msra.mxu1 %v3247_v18  ;;  %3071 = vmatprep.subr.bf16.mxu0 %v3274_v1 }
  0xbb   : > { %3100 = vmatprep.subr.bf16.mxu1 %v3274_v1 }
  0xbd   : > { %3072 = vmatpush3.bf16.msra.mxu0 %v3248_v21 }
  0xbe   : > { %3108 = vmatpush3.bf16.msra.mxu1 %v3248_v21 }
  0xbf   : > { %3018 = vmatmul.mubr.bf16.gmra.mrb[76].mxu0 %v1618_v23 }
  0xc0   : > { %3054 = vmatmul.mubr.bf16.gmra.mrb[76].mxu1 %v1843_v24  ;;  %3073 = vmatprep.mubr.msk.bf16.mxu0 %vm3275_vm0, %v3274_v1 }
  0xc1   : > { %3085 = vmatprep.mubr.msk.bf16.mxu1 %vm3275_vm0, %v3274_v1 }
  0xc7   : > { %3074 = vmatmul.mubr.bf16.vlgmr.msra.gmra.mrb[80].mxu0 %v2002_v30 }
  0xc8   : > { %3086 = vmatmul.mubr.bf16.vlgmr.msra.gmra.mrb[80].mxu1 %v2008_v8  ;;  %3077 = vmatprep.mubr.msk.bf16.mxu0 %vm3275_vm0, %v3274_v1 }
  0xc9   : > { %3089 = vmatprep.mubr.msk.bf16.mxu1 %vm3275_vm0, %v3274_v1 }
  0xcf   : > { %3078 = vmatmul.mubr.bf16.gmra.mrb[84].mxu0 %v2004_v17 }
  0xd0   : > { %3090 = vmatmul.mubr.bf16.gmra.mrb[84].mxu1 %v2007_v29  ;;  %3081 = vmatprep.mubr.msk.bf16.mxu0 %vm3275_vm0, %v3274_v1 }
  0xd7   : > { %3082 = vmatmul.mubr.bf16.gmra.mrb[88].mxu0 %v2006_v32 }
  0xfa   : > { %v525_v34 = vpop.f32.mrb[0].mxu0 }
  0xfb   : > { %v673_v35 = vpop.f32.mrb[0].mxu1  ;;  %v2787_v36 = vpop.f32.mrb[1].mxu0 }
  0xfc   : > { %v674_v37 = vadd.f32 %v673_v35, %v525_v34  ;;  %v2823_v38 = vpop.f32.mrb[1].mxu1  ;;  %v528_v39 = vpop.f32.mrb[2].mxu0 }
  0xfd   : > { %v676_v40 = vpop.f32.mrb[2].mxu1  ;;  %v2788_v41 = vpop.f32.mrb[3].mxu0 }
  0xfe   : > { %v677_v33 = vadd.f32 %v676_v40, %v528_v39  ;;  %v2824_v42 = vpop.f32.mrb[3].mxu1 }
 0x102   : > { %v533_v43 = vpop.f32.mrb[4].mxu0 }
 0x103   : > { %v681_v44 = vpop.f32.mrb[4].mxu1  ;;  %v2791_v45 = vpop.f32.mrb[5].mxu0 }
 0x104   : > { %v682_v46 = vadd.f32 %v681_v44, %v533_v43  ;;  %v2827_v47 = vpop.f32.mrb[5].mxu1  ;;  %v536_v48 = vpop.f32.mrb[6].mxu0 }
 0x105   : > { %v684_v49 = vpop.f32.mrb[6].mxu1  ;;  %v2792_v1 = vpop.f32.mrb[7].mxu0 }
 0x106   : > { %v685_v50 = vadd.f32 %v684_v49, %v536_v48  ;;  %v2828_v51 = vpop.f32.mrb[7].mxu1 }
 0x10a   : > { %v541_v52 = vpop.f32.mrb[8].mxu0 }
 0x10b   : > { %v689_v53 = vpop.f32.mrb[8].mxu1  ;;  %v2795_v54 = vpop.f32.mrb[9].mxu0 }
 0x10c   : > { %v690_v55 = vadd.f32 %v689_v53, %v541_v52  ;;  %v2831_v56 = vpop.f32.mrb[9].mxu1  ;;  %v544_v57 = vpop.f32.mrb[10].mxu0 }
 0x10d   : > { %v692_v58 = vpop.f32.mrb[10].mxu1  ;;  %v2796_v59 = vpop.f32.mrb[11].mxu0 }
 0x10e   : > { %v693_v60 = vadd.f32 %v692_v58, %v544_v57  ;;  %v2832_v61 = vpop.f32.mrb[11].mxu1 }
 0x112   : > { %v549_v62 = vpop.f32.mrb[12].mxu0 }
 0x113   : > { %v697_v63 = vpop.f32.mrb[12].mxu1  ;;  %v2799_v0 = vpop.f32.mrb[13].mxu0 }
 0x114   : > { %v698_v2 = vadd.f32 %v697_v63, %v549_v62  ;;  %v2835_v3 = vpop.f32.mrb[13].mxu1  ;;  %v552_v4 = vpop.f32.mrb[14].mxu0 }
 0x115   : > { %v700_v5 = vpop.f32.mrb[14].mxu1  ;;  %v2800_v6 = vpop.f32.mrb[15].mxu0 }
 0x116   : > { %v701_v7 = vadd.f32 %v700_v5, %v552_v4  ;;  %v2836_v9 = vpop.f32.mrb[15].mxu1 }
 0x11a   : > { %v557_v10 = vpop.f32.mrb[16].mxu0 }
 0x11b   : > { %v2803_v11 = vpop.f32.mrb[17].mxu0  ;;  %v705_v12 = vpop.f32.mrb[16].mxu1 }
 0x11c   : > { %v706_v13 = vadd.f32 %v705_v12, %v557_v10  ;;  %v560_v14 = vpop.f32.mrb[18].mxu0  ;;  %v2839_v15 = vpop.f32.mrb[17].mxu1 }
 0x11d   : > { %v2804_v16 = vpop.f32.mrb[19].mxu0  ;;  %v708_v18 = vpop.f32.mrb[18].mxu1 }
 0x11e   : > { %v2840_v19 = vpop.f32.mrb[19].mxu1 }
 0x122   : > { %v890_v20 = vpop.f32.mrb[20].mxu0 }
 0x123   : > { %v928_v21 = vadd.f32 %v890_v20, %v674_v37  ;;  %v2859_v22 = vpop.f32.mrb[21].mxu0  ;;  %v1073_v23 = vpop.f32.mrb[20].mxu1 }
 0x124   : > { %v893_v24 = vpop.f32.mrb[22].mxu0  ;;  %v2895_v25 = vpop.f32.mrb[21].mxu1 }
 0x125   : > { %v929_v26 = vadd.f32 %v893_v24, %v677_v33  ;;  %v1111_v27 = vadd.f32 %v1073_v23, %v928_v21  ;;  %v2860_v28 = vpop.f32.mrb[23].mxu0  ;;  %v1076_v29 = vpop.f32.mrb[22].mxu1 }
 0x126   : > { %v2896_v30 = vpop.f32.mrb[23].mxu1 }
 0x127   : > { %v1112_v8 = vadd.f32 %v1076_v29, %v929_v26 }
 0x12a   : > { %v898_v31 = vpop.f32.mrb[24].mxu0 }
 0x12b   : > { %v930_v17 = vadd.f32 %v898_v31, %v682_v46  ;;  %v2863_v32 = vpop.f32.mrb[25].mxu0  ;;  %v1081_v34 = vpop.f32.mrb[24].mxu1 }
 0x12c   : > { %v901_v35 = vpop.f32.mrb[26].mxu0  ;;  %v2899_v36 = vpop.f32.mrb[25].mxu1 }
 0x12d   : > { %v931_v38 = vadd.f32 %v901_v35, %v685_v50  ;;  %v1113_v39 = vadd.f32 %v1081_v34, %v930_v17  ;;  %v2864_v40 = vpop.f32.mrb[27].mxu0  ;;  %v1084_v37 = vpop.f32.mrb[26].mxu1 }
 0x12e   : > { %v2900_v41 = vpop.f32.mrb[27].mxu1 }
 0x12f   : > { %v1114_v42 = vadd.f32 %v1084_v37, %v931_v38 }
 0x132   : > { %v906_v43 = vpop.f32.mrb[28].mxu0 }
 0x133   : > { %v932_v44 = vadd.f32 %v906_v43, %v690_v55  ;;  %v2867_v33 = vpop.f32.mrb[29].mxu0  ;;  %v1089_v45 = vpop.f32.mrb[28].mxu1 }
 0x134   : > { %v909_v47 = vpop.f32.mrb[30].mxu0  ;;  %v2903_v48 = vpop.f32.mrb[29].mxu1 }
 0x135   : > { %v933_v49 = vadd.f32 %v909_v47, %v693_v60  ;;  %v1115_v1 = vadd.f32 %v1089_v45, %v932_v44  ;;  %v2868_v51 = vpop.f32.mrb[31].mxu0  ;;  %v1092_v46 = vpop.f32.mrb[30].mxu1 }
 0x136   : > { %v2904_v52 = vpop.f32.mrb[31].mxu1 }
 0x137   : > { %v1116_v53 = vadd.f32 %v1092_v46, %v933_v49 }
 0x13a   : > { %v914_v54 = vpop.f32.mrb[32].mxu0 }
 0x13b   : > { %v934_v56 = vadd.f32 %v914_v54, %v698_v2  ;;  %v2871_v50 = vpop.f32.mrb[33].mxu0  ;;  %v1097_v57 = vpop.f32.mrb[32].mxu1 }
 0x13c   : > { %v917_v58 = vpop.f32.mrb[34].mxu0  ;;  %v2907_v59 = vpop.f32.mrb[33].mxu1 }
 0x13d   : > { %v935_v61 = vadd.f32 %v917_v58, %v701_v7  ;;  %v1117_v62 = vadd.f32 %v1097_v57, %v934_v56  ;;  %v2872_v63 = vpop.f32.mrb[35].mxu0  ;;  %v1100_v55 = vpop.f32.mrb[34].mxu1 }
 0x13e   : > { %v2908_v0 = vpop.f32.mrb[35].mxu1 }
 0x13f   : > { %v1118_v3 = vadd.f32 %v1100_v55, %v935_v61 }
 0x142   : > { %v922_v4 = vpop.f32.mrb[36].mxu0 }
 0x143   : > { %v936_v5 = vadd.f32 %v922_v4, %v706_v13  ;;  %v2875_v60 = vpop.f32.mrb[37].mxu0  ;;  %v1105_v6 = vpop.f32.mrb[36].mxu1 }
 0x144   : > { %v925_v9 = vpop.f32.mrb[38].mxu0  ;;  %v2911_v10 = vpop.f32.mrb[37].mxu1 }
 0x145   : > { %v1119_v11 = vadd.f32 %v1105_v6, %v936_v5  ;;  %v2876_v12 = vpop.f32.mrb[39].mxu0  ;;  %v1108_v14 = vpop.f32.mrb[38].mxu1 }
 0x146   : > { %v2912_v2 = vpop.f32.mrb[39].mxu1 }
 0x14a   : > { %v1256_v15 = vpop.f32.mrb[40].mxu0 }
 0x14b   : > { %v1294_v16 = vadd.f32 %v1256_v15, %v1111_v27  ;;  %v2931_v18 = vpop.f32.mrb[41].mxu0  ;;  %v1481_v19 = vpop.f32.mrb[40].mxu1 }
 0x14c   : > { %v1259_v7 = vpop.f32.mrb[42].mxu0  ;;  %v2967_v20 = vpop.f32.mrb[41].mxu1 }
 0x14d   : > { %v1295_v21 = vadd.f32 %v1259_v7, %v1112_v8  ;;  %v1519_v22 = vadd.f32 %v1481_v19, %v1294_v16  ;;  %v2932_v23 = vpop.f32.mrb[43].mxu0  ;;  %v1484_v24 = vpop.f32.mrb[42].mxu1 }
 0x14e   : > { %v2968_v25 = vpop.f32.mrb[43].mxu1 }
 0x14f   : > { %v1520_v13 = vadd.f32 %v1484_v24, %v1295_v21 }
 0x152   : > { %v1264_v26 = vpop.f32.mrb[44].mxu0 }
 0x153   : > { %v1296_v28 = vadd.f32 %v1264_v26, %v1113_v39  ;;  %v2935_v29 = vpop.f32.mrb[45].mxu0  ;;  %v1489_v30 = vpop.f32.mrb[44].mxu1 }
 0x154   : > { %v1267_v31 = vpop.f32.mrb[46].mxu0  ;;  %v2971_v17 = vpop.f32.mrb[45].mxu1 }
 0x155   : > { %v1297_v32 = vadd.f32 %v1267_v31, %v1114_v42  ;;  %v1521_v34 = vadd.f32 %v1489_v30, %v1296_v28  ;;  %v2936_v35 = vpop.f32.mrb[47].mxu0  ;;  %v1492_v27 = vpop.f32.mrb[46].mxu1 }
 0x156   : > { %v2972_v36 = vpop.f32.mrb[47].mxu1 }
 0x157   : > { %v1522_v38 = vadd.f32 %v1492_v27, %v1297_v32 }
 0x15a   : > { %v1272_v40 = vpop.f32.mrb[48].mxu0 }
 0x15b   : > { %v1298_v37 = vadd.f32 %v1272_v40, %v1115_v1  ;;  %v2939_v8 = vpop.f32.mrb[49].mxu0  ;;  %v1497_v41 = vpop.f32.mrb[48].mxu1 }
 0x15c   : > { %v1275_v43 = vpop.f32.mrb[50].mxu0  ;;  %v2975_v44 = vpop.f32.mrb[49].mxu1 }
 0x15d   : > { %v1299_v33 = vadd.f32 %v1275_v43, %v1116_v53  ;;  %v1523_v45 = vadd.f32 %v1497_v41, %v1298_v37  ;;  %v2940_v47 = vpop.f32.mrb[51].mxu0  ;;  %v1500_v39 = vpop.f32.mrb[50].mxu1 }
 0x15e   : > { %v2976_v48 = vpop.f32.mrb[51].mxu1 }
 0x15f   : > { %v1524_v49 = vadd.f32 %v1500_v39, %v1299_v33 }
 0x162   : > { %v1280_v51 = vpop.f32.mrb[52].mxu0 }
 0x163   : > { %v1300_v46 = vadd.f32 %v1280_v51, %v1117_v62  ;;  %v2943_v42 = vpop.f32.mrb[53].mxu0  ;;  %v1505_v52 = vpop.f32.mrb[52].mxu1 }
 0x164   : > { %v1283_v54 = vpop.f32.mrb[54].mxu0  ;;  %v2979_v56 = vpop.f32.mrb[53].mxu1 }
 0x165   : > { %v1301_v50 = vadd.f32 %v1283_v54, %v1118_v3  ;;  %v1525_v57 = vadd.f32 %v1505_v52, %v1300_v46  ;;  %v2944_v58 = vpop.f32.mrb[55].mxu0  ;;  %v1508_v1 = vpop.f32.mrb[54].mxu1 }
 0x166   : > { %v2980_v59 = vpop.f32.mrb[55].mxu1 }
 0x167   : > { %v1526_v61 = vadd.f32 %v1508_v1, %v1301_v50 }
 0x16a   : > { %v1288_v63 = vpop.f32.mrb[56].mxu0 }
 0x16b   : > { %v1302_v55 = vadd.f32 %v1288_v63, %v1119_v11  ;;  %v2947_v53 = vpop.f32.mrb[57].mxu0  ;;  %v1513_v0 = vpop.f32.mrb[56].mxu1 }
 0x16c   : > { %v1291_v4 = vpop.f32.mrb[58].mxu0  ;;  %v2983_v5 = vpop.f32.mrb[57].mxu1 }
 0x16d   : > { %v1527_v60 = vadd.f32 %v1513_v0, %v1302_v55  ;;  %v2948_v6 = vpop.f32.mrb[59].mxu0  ;;  %v1516_v9 = vpop.f32.mrb[58].mxu1 }
 0x16e   : > { %v2984_v62 = vpop.f32.mrb[59].mxu1 }
 0x172   : > { %v1706_v10 = vpop.f32.mrb[60].mxu0 }
 0x173   : > { %v1744_v12 = vadd.f32 %v1706_v10, %v1519_v22  ;;  %v3003_v14 = vpop.f32.mrb[61].mxu0  ;;  %v1931_v2 = vpop.f32.mrb[60].mxu1 }
 0x174   : > { %v1709_v3 = vpop.f32.mrb[62].mxu0  ;;  %v3039_v15 = vpop.f32.mrb[61].mxu1 }
 0x175   : > { %v1745_v16 = vadd.f32 %v1709_v3, %v1520_v13  ;;  %v1969_v18 = vadd.f32 %v1931_v2, %v1744_v12  ;;  %v3004_v19 = vpop.f32.mrb[63].mxu0  ;;  %v1934_v7 = vpop.f32.mrb[62].mxu1 }
 0x176   : > { %v3040_v20 = vpop.f32.mrb[63].mxu1 }
 0x177   : > { %v1970_v11 = vadd.f32 %v1934_v7, %v1745_v16 }
 0x17a   : > { %v1714_v21 = vpop.f32.mrb[64].mxu0 }
 0x17b   : > { %v1746_v23 = vadd.f32 %v1714_v21, %v1521_v34  ;;  %v3007_v24 = vpop.f32.mrb[65].mxu0  ;;  %v1939_v25 = vpop.f32.mrb[64].mxu1 }
 0x17c   : > { %v1717_v26 = vpop.f32.mrb[66].mxu0  ;;  %v3043_v28 = vpop.f32.mrb[65].mxu1 }
 0x17d   : > { %v1747_v29 = vadd.f32 %v1717_v26, %v1522_v38  ;;  %v3830_v30 = vadd.f32 %v1939_v25, %v1746_v23  ;;  %v3008_v22 = vpop.f32.mrb[67].mxu0  ;;  %v1942_v31 = vpop.f32.mrb[66].mxu1 }
 0x17e   : > { %v3044_v17 = vpop.f32.mrb[67].mxu1 }
 0x17f   : > { %v3832_v32 = vadd.f32 %v1942_v31, %v1747_v29 }
 0x182   : > { %v1722_v13 = vpop.f32.mrb[68].mxu0 }
 0x183   : > { %v1748_v35 = vadd.f32 %v1722_v13, %v1523_v45  ;;  %v3011_v27 = vpop.f32.mrb[69].mxu0  ;;  %v1947_v36 = vpop.f32.mrb[68].mxu1 }
 0x184   : > { %v1725_v40 = vpop.f32.mrb[70].mxu0  ;;  %v3047_v37 = vpop.f32.mrb[69].mxu1 }
 0x185   : > { %v1749_v8 = vadd.f32 %v1725_v40, %v1524_v49  ;;  %v3834_v34 = vadd.f32 %v1947_v36, %v1748_v35  ;;  %v3012_v41 = vpop.f32.mrb[71].mxu0  ;;  %v1950_v43 = vpop.f32.mrb[70].mxu1 }
 0x186   : > { %v3048_v44 = vpop.f32.mrb[71].mxu1 }
 0x187   : > { %v3836_v38 = vadd.f32 %v1950_v43, %v1749_v8 }
 0x18a   : > { %v1730_v33 = vpop.f32.mrb[72].mxu0 }
 0x18b   : > { %v1750_v47 = vadd.f32 %v1730_v33, %v1525_v57  ;;  %v3015_v39 = vpop.f32.mrb[73].mxu0  ;;  %v1955_v48 = vpop.f32.mrb[72].mxu1 }
 0x18c   : > { %v1733_v51 = vpop.f32.mrb[74].mxu0  ;;  %v3051_v46 = vpop.f32.mrb[73].mxu1 }
 0x18d   : > { %v1751_v42 = vadd.f32 %v1733_v51, %v1526_v61  ;;  %v1975_v45 = vadd.f32 %v1955_v48, %v1750_v47  ;;  %v3016_v52 = vpop.f32.mrb[75].mxu0  ;;  %v1958_v54 = vpop.f32.mrb[74].mxu1  ;;  %v2608_v61 = vld [vmem:[%s3870_s5] ss:$0 sm:$0xff] }
 0x18e   : > { %v3052_v56 = vpop.f32.mrb[75].mxu1 }
 0x18f   : > { %v1976_v50 = vadd.f32 %v1958_v54, %v1751_v42 }
 0x192   : > { %v1738_v49 = vpop.f32.mrb[76].mxu0 }
 0x193   : > { %v1752_v58 = vadd.f32 %v1738_v49, %v1527_v60  ;;  %v3019_v1 = vpop.f32.mrb[77].mxu0  ;;  %v1963_v59 = vpop.f32.mrb[76].mxu1 }
 0x194   : > { %v1741_v63 = vpop.f32.mrb[78].mxu0  ;;  %v3055_v55 = vpop.f32.mrb[77].mxu1 }
 0x195   : > { %v1977_v53 = vadd.f32 %v1963_v59, %v1752_v58  ;;  %v3020_v0 = vpop.f32.mrb[79].mxu0  ;;  %v1966_v57 = vpop.f32.mrb[78].mxu1 }
 0x196   : > { %v3056_v4 = vpop.f32.mrb[79].mxu1 }
 0x19a   : > { %v2096_v5 = vpop.f32.mrb[80].mxu0 }
 0x19b   : > { %v2134_v6 = vadd.f32 %v2096_v5, %v1969_v18  ;;  %v2120_v9 = vpop.f32.mrb[80].mxu1  ;;  %v3075_v62 = vpop.f32.mrb[81].mxu0 }
 0x19c   : > { %v2140_v10 = vadd.f32 %v2120_v9, %v1975_v45  ;;  %v3087_v12 = vpop.f32.mrb[81].mxu1  ;;  %v2099_v60 = vpop.f32.mrb[82].mxu0 }
 0x19d   : > { %v2150_v14 = vadd.f32 %v2608_v61, %v2134_v6  ;;  %v2135_v2 = vadd.f32 %v2099_v60, %v1970_v11  ;;  %v2123_v3 = vpop.f32.mrb[82].mxu1  ;;  %v3076_v15 = vpop.f32.mrb[83].mxu0 }
 0x19e   : > { %v2156_v16 = vadd.f32 %v2608_v61, %v2140_v10  ;;  %v2141_v19 = vadd.f32 %v2123_v3, %v1976_v50  ;;  %v3088_v7 = vpop.f32.mrb[83].mxu1 }
 0x19f   : > { %v2151_v20 = vadd.f32 %v2608_v61, %v2135_v2  ;;  %v2159_v23 = vmax.f32 %v2150_v14, 0.0 }
 0x1a0   : > { %v2157_v21 = vadd.f32 %v2608_v61, %v2141_v19  ;;  %v2165_v25 = vmax.f32 %v2156_v16, 0.0 }
 0x1a1   : > { %v2160_v24 = vmax.f32 %v2151_v20, 0.0 }
 0x1a2   : > { %v2166_v18 = vmax.f32 %v2157_v21, 0.0  ;;  %v2104_v11 = vpop.f32.mrb[84].mxu0 }
 0x1a3   : > { %v2632_v26 = vpack.c.bf16 %v2160_v24, %v2159_v23  ;;  %v2136_v28 = vadd.f32 %v2104_v11, %v3830_v30  ;;  %v2128_v29 = vpop.f32.mrb[84].mxu1  ;;  %v3079_v22 = vpop.f32.mrb[85].mxu0 }
 0x1a4   : > { %v2647_v31 = vpack.c.bf16 %v2166_v18, %v2165_v25  ;;  %v2142_v17 = vadd.f32 %v2128_v29, %v1977_v53  ;;  %v2107_v13 = vpop.f32.mrb[86].mxu0  ;;  %v3091_v35 = vpop.f32.mrb[85].mxu1 }
 0x1a5   : > { %2633 = vst [vmem:[%s3845_s29] sm:$0xff] %v2632_v26   ;;  %v2152_v27 = vadd.f32 %v2608_v61, %v2136_v28  ;;  %v2137_v36 = vadd.f32 %v2107_v13, %v3832_v32  ;;  %v3080_v40 = vpop.f32.mrb[87].mxu0  ;;  %v2131_v37 = vpop.f32.mrb[86].mxu1 }
 0x1a6   : > { %2651 = vst [vmem:[%s3845_s29 + $0x18] sm:$0xff] %v2647_v31   ;;  %v2158_v8 = vadd.f32 %v2608_v61, %v2142_v17  ;;  %v3092_v41 = vpop.f32.mrb[87].mxu1 }
 0x1a7   : > { %v2153_v43 = vadd.f32 %v2608_v61, %v2137_v36  ;;  %v2161_v30 = vmax.f32 %v2152_v27, 0.0 }
 0x1a8   : > { %v2167_v44 = vmax.f32 %v2158_v8, 0.0 }
 0x1a9   : > { %v2162_v33 = vmax.f32 %v2153_v43, 0.0 }
 0x1aa   : > { %v2628_v47 = vpack.c.bf16 %v2167_v44, %v2167_v44  ;;  %v2112_v39 = vpop.f32.mrb[88].mxu0 }
 0x1ab   : > { %v2637_v48 = vpack.c.bf16 %v2162_v33, %v2161_v30  ;;  %v2138_v51 = vadd.f32 %v2112_v39, %v3834_v34  ;;  %v3083_v46 = vpop.f32.mrb[89].mxu0 }
 0x1ac   : > { %2213 = vst [vmem:[%s3845_s29 + $0x20] sm:$0xf] %v2628_v47  ;;  %v2115_v42 = vpop.f32.mrb[90].mxu0 }
 0x1ad   : > { %2649 = vst [vmem:[%s3845_s29 + $0x8] sm:$0xff] %v2637_v48   ;;  %v2154_v32 = vadd.f32 %v2608_v61, %v2138_v51  ;;  %v2139_v45 = vadd.f32 %v2115_v42, %v3836_v38  ;;  %v3084_v52 = vpop.f32.mrb[91].mxu0 }
 0x1af   : > { %v2155_v54 = vadd.f32 %v2608_v61, %v2139_v45  ;;  %v2163_v56 = vmax.f32 %v2154_v32, 0.0 }
 0x1b1   : > { %v2164_v50 = vmax.f32 %v2155_v54, 0.0 }
 0x1b3   : > { %v2642_v49 = vpack.c.bf16 %v2164_v50, %v2163_v56 }
 0x1b5   : > { %2650 = vst [vmem:[%s3845_s29 + $0x10] sm:$0xff] %v2642_v49  }
 0x1b6 PF: > { %s16_s23 = sadd.s32 1, %s3272_s23   ;;  %s3872_s21 = smov %s3268_s22 }
 0x1b7   : > { %p13_p5 = scmp.ge.s32.totalorder %s16_s23, 4   ;;  %s3873_s22 = smov %s3875_s24 }
 0x1b9   :  { %15 = sbr.rel (!%p13_p5) target bundleno = 2 (0x2), region = 97 }

// kernel: stem_forward.4
= control target key start
LH: loop header
LB: loop body
LE: loop exit
PB: predicated region body
PF: predicated region fallthrough
CT: control target
= control target key end

     0   :  { %s2433_s21 = smov 0   ;;  %s2435_s22 = smov 0   ;;  %s2755_s0 = inlined_call_operand.vmem [shape: bf16[2,30,128], index: 0, kind: input, shape index: {}]   ;;  %s2756_s1 = inlined_call_operand.vmem [shape: bf16[2,30,128], index: 1, kind: input, shape index: {}]   ;;  %s2757_s2 = inlined_call_operand.vmem [shape: bf16[2,30,128], index: 2, kind: input, shape index: {}]   ;;  %s2758_s3 = inlined_call_operand.vmem [shape: bf16[2,30,128], index: 3, kind: input, shape index: {}]   ;;  %s2759_s4 = inlined_call_operand.vmem [shape: bf16[9,128,128], index: 4, kind: input, shape index: {}]   ;;  %s2760_s5 = inlined_call_operand.vmem [shape: f32[1,128], index: 5, kind: input, shape index: {}]   ;;  %s2761_s6 = inlined_call_operand.vmem [shape: bf16[2,20,128], index: 6, kind: output, shape index: {}]  }
   0x1   :  { %s2437_s23 = smov 0  }
   0x2 LB: > { %s28_s24 = sadd.s32 1, %s2392_s22  ;;  %p1749_p0 = scmp.ge.s32.totalorder %s2396_s23, 1  ;;  %s2396_s23 = sphi %s2437_s23, %s16_s23   ;;  %s2392_s22 = sphi %s2435_s22, %s2763_s22   ;;  %s2388_s21 = sphi %s2433_s21, %s2762_s21  }
   0x3   : > { %p30_p1 = scmp.ge.s32.totalorder %s28_s24, 2  ;;  %p273_p2 = scmp.lt.s32.totalorder %s2396_s23, 3 }
   0x5   : > { %s2765_s24 = smov (%p30_p1, %s28_s24), 0  ;;  %p274_p3 = pnand %p1749_p0, %p273_p2 }
   0x6   : > { %v2287_v0 = vld [vmem:[%s2759_s4 + $0x40] sm:$0xff] (!%p274_p3)   ;;  %v2289_v2 = vld [vmem:[%s2759_s4 + $0x48] sm:$0xff] (!%p274_p3)   ;;  %p328_p4 = scmp.lt.s32.totalorder (!%p274_p3), %s2388_s21, 1  ;;  %v2291_v4 = vld [vmem:[%s2759_s4 + $0x50] sm:$0xff] (!%p274_p3)   ;;  %vm636_vm0 = vsmask.f32 (!%p274_p3), 7424 }
   0x7   : > { %277 = sbr.rel (%p274_p3) target bundleno = 391 (0x187), region = 44  ;;  %v2288_v1 = vld [vmem:[%s2759_s4] sm:$0xff] (!%p274_p3)   ;;  %2082 = vmatprep.subr.bf16.mxu0 (!%p274_p3), %v2287_v0  ;;  %v2290_v3 = vld [vmem:[%s2759_s4 + $0x8] sm:$0xff] (!%p274_p3)   ;;  %v2292_v5 = vld [vmem:[%s2759_s4 + $0x10] sm:$0xff] (!%p274_p3)   ;;  %vm1179_vm1 = vsmask.f32 (!%p274_p3), 5376 }
   0x8   : > { %2102 = vmatprep.subr.bf16.mxu1 (!%p274_p3), %v2288_v1  ;;  %2083 = vmatpush3.bf16.msra.mxu0 (!%p274_p3), %v2287_v0  ;;  %v2293_v6 = vld [vmem:[%s2759_s4 + $0x58] sm:$0xff] (!%p274_p3)   ;;  %v2295_v8 = vld [vmem:[%s2759_s4 + $0x60] sm:$0xff] (!%p274_p3)   ;;  %v2297_v10 = vld [vmem:[%s2759_s4 + $0x68] sm:$0xff] (!%p274_p3)   ;;  %vm1468_vm2 = vcmask (!%p274_p3), 1044480  }
   0x9   : > { %2103 = vmatpush3.bf16.msra.mxu1 (!%p274_p3), %v2288_v1  ;;  %2084 = vmatprep.subr.bf16.mxu0 (!%p274_p3), %v2289_v2  ;;  %v2294_v7 = vld [vmem:[%s2759_s4 + $0x18] sm:$0xff] (!%p274_p3)   ;;  %v2296_v9 = vld [vmem:[%s2759_s4 + $0x20] sm:$0xff] (!%p274_p3)   ;;  %v2298_v11 = vld [vmem:[%s2759_s4 + $0x28] sm:$0xff] (!%p274_p3)  }
   0xa   : > { %2104 = vmatprep.subr.bf16.mxu1 (!%p274_p3), %v2290_v3  ;;  %v2299_v14 = vld [vmem:[%s2759_s4 + $0x70] sm:$0xff] (!%p274_p3)   ;;  %v2301_v16 = vld [vmem:[%s2759_s4 + $0x78] sm:$0xff] (!%p274_p3)   ;;  %v2307_v19 = vld [vmem:[%s2759_s4 + $0x80] sm:$0xff] (!%p274_p3)  }
   0xb   : > { %v2300_v15 = vld [vmem:[%s2759_s4 + $0x30] sm:$0xff] (!%p274_p3)   ;;  %v2302_v17 = vld [vmem:[%s2759_s4 + $0x38] sm:$0xff] (!%p274_p3)   ;;  %v2308_v21 = vld [vmem:[%s2759_s4 + $0xc0] sm:$0xff] (!%p274_p3)  }
   0xc   : > { %2085 = vmatpush3.bf16.msra.mxu0 (!%p274_p3), %v2289_v2  ;;  %v2309_v23 = vld [vmem:[%s2759_s4 + $0x88] sm:$0xff] (!%p274_p3)   ;;  %v2311_v27 = vld [vmem:[%s2759_s4 + $0x90] sm:$0xff] (!%p274_p3)   ;;  %v2313_v33 = vld [vmem:[%s2759_s4 + $0x98] sm:$0xff] (!%p274_p3)  }
   0xd   : > { %2105 = vmatpush3.bf16.msra.mxu1 (!%p274_p3), %v2290_v3  ;;  %2086 = vmatprep.subr.bf16.mxu0 (!%p274_p3), %v2291_v4  ;;  %v2310_v24 = vld [vmem:[%s2759_s4 + $0xc8] sm:$0xff] (!%p274_p3)   ;;  %v2312_v28 = vld [vmem:[%s2759_s4 + $0xd0] sm:$0xff] (!%p274_p3)   ;;  %v2314_v34 = vld [vmem:[%s2759_s4 + $0xd8] sm:$0xff] (!%p274_p3)  }
   0xe   : > { %s2767_s21 = smov (!%p328_p4, %s2388_s21), 1  ;;  %2106 = vmatprep.subr.bf16.mxu1 %v2292_v5  ;;  %v2315_v37 = vld [vmem:[%s2759_s4 + $0xa0] sm:$0xff]   ;;  %v2317_v39 = vld [vmem:[%s2759_s4 + $0xa8] sm:$0xff]   ;;  %v2319_v41 = vld [vmem:[%s2759_s4 + $0xb0] sm:$0xff]  }
   0xf   : > { %s2478_s17 = sshll.u32 %s2767_s21, 4  ;;  %v2316_v38 = vld [vmem:[%s2759_s4 + $0xe0] sm:$0xff]   ;;  %v2318_v40 = vld [vmem:[%s2759_s4 + $0xe8] sm:$0xff]   ;;  %v2320_v42 = vld [vmem:[%s2759_s4 + $0xf0] sm:$0xff]   ;;  %s2262_s15 = smul.u32 12, %s2767_s21 }
  0x10   : > { %2087 = vmatpush3.bf16.msra.mxu0 %v2291_v4  ;;  %s2490_s28 = scalar_lea.vmem %s2756_s1, %s2478_s17  ;;  %s2499_s9 = scalar_lea.vmem %s2755_s0, %s2478_s17  ;;  %v2321_v44 = vld [vmem:[%s2759_s4 + $0xb8] sm:$0xff]   ;;  %v2324_v50 = vld [vmem:[%s2759_s4 + $0x100] sm:$0xff]   ;;  %v2328_v55 = vld [vmem:[%s2759_s4 + $0x108] sm:$0xff]  }
  0x11   : > { %2107 = vmatpush3.bf16.msra.mxu1 %v2292_v5  ;;  %2088 = vmatprep.subr.bf16.mxu0 %v2293_v6  ;;  %v2303_v12 = vld [vmem:[%s2490_s28] sm:$0xff]   ;;  %v2305_v18 = vld [vmem:[%s2490_s28 + $0x8] ss:$0 sps:$4 sm:$0x33]   ;;  %s2536_s13 = scalar_lea.vmem %s2757_s2, %s2478_s17  ;;  %s2575_s25 = scalar_lea.vmem %s2758_s3, %s2478_s17  ;;  %v2322_v45 = vld [vmem:[%s2759_s4 + $0xf8] sm:$0xff]  }
  0x12   : > { %2108 = vmatprep.subr.bf16.mxu1 %v2294_v7  ;;  %v2304_v13 = vld [vmem:[%s2499_s9] sm:$0xff]   ;;  %2098 = vmatprep.mubr.bf16.mxu0 %v2303_v12  ;;  %v2306_v20 = vld [vmem:[%s2499_s9 + $0x8] ss:$0 sps:$4 sm:$0x33]   ;;  %v2330_v61 = vld [vmem:[%s2759_s4 + $0x110] sm:$0xff]   ;;  %s362_s18 = scalar_lea.vmem %s2761_s6, %s2262_s15 }
  0x13   : > { %2118 = vmatprep.mubr.bf16.mxu1 %v2304_v13  ;;  %v640_v22 = vshll.u32 %v2304_v13, 16  ;;  %v638_v25 = vshrl.u32 %v2304_v13, 16  ;;  %v2323_v29 = vld [vmem:[%s2499_s9 + $0x8] ss:$0 sps:$4 sm:$0x77]   ;;  %v2325_v32 = vld [vmem:[%s2536_s13] sm:$0xff]  }
  0x14   : > { %2089 = vmatpush3.bf16.msra.mxu0 %v2293_v6  ;;  %v645_v31 = vshll.u32 %v2323_v29, 16  ;;  %v1035_v43 = vshll.u32 %v2325_v32, 16  ;;  %v649_v46 = vshrl.u32 %v2323_v29, 16  ;;  %v2584_v47 = vld [vmem:[%s2536_s13 + $0x8] ss:$0 sps:$4 sm:$0x77]  }
  0x15   : > { %2109 = vmatpush3.bf16.msra.mxu1 %v2294_v7  ;;  %2090 = vmatprep.subr.bf16.mxu0 %v2295_v8  ;;  %v642_v26 = vrot.slane %v640_v22, 1  ;;  %v1033_v48 = vshrl.u32 %v2325_v32, 16  ;;  %v1040_v51 = vshll.u32 %v2584_v47, 16  ;;  %v2326_v52 = vld [vmem:[%s2536_s13 + $0x8] ss:$0 sps:$4 sm:$0x33]  }
  0x16   : > { %2110 = vmatprep.subr.bf16.mxu1 %v2296_v9  ;;  %v647_v35 = vrot.slane %v645_v31, 1  ;;  %v1037_v49 = vrot.slane %v1035_v43, 1  ;;  %v2327_v53 = vld [vmem:[%s2759_s4 + $0x140] sm:$0xff]   ;;  %v2329_v58 = vld [vmem:[%s2759_s4 + $0x148] sm:$0xff]   ;;  %v2331_v62 = vld [vmem:[%s2759_s4 + $0x150] sm:$0xff]  }
  0x17   : > { %v643_v30 = vor.u32 %v642_v26, %v638_v25  ;;  %v2597_v57 = vrot.slane %v1040_v51, 1  ;;  %v2342_v59 = vld [vmem:[%s2575_s25] sm:$0xff]   ;;  %v2332_v63 = vld [vmem:[%s2759_s4 + $0x118] sm:$0xff]   ;;  %v2336_v5 = vld [vmem:[%s2759_s4 + $0x128] sm:$0xff]  }
  0x18   : > { %2091 = vmatpush3.bf16.msra.mxu0 %v2295_v8  ;;  %v651_v54 = vor.u32 %v649_v46, %v647_v35  ;;  %v1038_v56 = vor.u32 %v1037_v49, %v1033_v48  ;;  %v2333_v0 = vld [vmem:[%s2759_s4 + $0x158] sm:$0xff]   ;;  %v2334_v1 = vld [vmem:[%s2759_s4 + $0x120] sm:$0xff]   ;;  %v2337_v6 = vld [vmem:[%s2759_s4 + $0x168] sm:$0xff]  }
  0x19   : > { %2111 = vmatpush3.bf16.msra.mxu1 %v2296_v9  ;;  %2092 = vmatprep.subr.bf16.mxu0 %v2297_v10  ;;  %v648_v36 = vsel %vm636_vm0, %v643_v30, %v647_v35  ;;  %v2335_v2 = vld [vmem:[%s2759_s4 + $0x160] sm:$0xff]   ;;  %v2635_v8 = vld [vmem:[%s2499_s9 + $0x8] sm:$0x1f]   ;;  %v2338_v9 = vld [vmem:[%s2759_s4 + $0x130] sm:$0xff]  }
  0x1a   : > { %2112 = vmatprep.subr.bf16.mxu1 %v2298_v11  ;;  %v1043_v60 = vsel %vm636_vm0, %v1038_v56, %v2597_v57  ;;  %v1148_v3 = vld [vmem:[%s2499_s9] sm:$0xc]  ;;  %v2625_v4 = vld [vmem:[%s2499_s9 + $0x4] sm:$0xf]  ;;  %v2339_v12 = vld [vmem:[%s2759_s4 + $0x170] sm:$0xff]  }
  0x1b   : > { %v1913_v7 = vcombine.low %v1148_v3, %v2625_v4  ;;  %v2341_v22 = vld [vmem:[%s2759_s4 + $0x178] sm:$0xff]   ;;  %v2353_v48 = vld [vmem:[%s2759_s4 + $0x1a0] sm:$0xff]   ;;  %v2356_v51 = vld [vmem:[%s2759_s4 + $0x1e8] sm:$0xff]  }
  0x1c   : > { %2093 = vmatpush3.bf16.msra.mxu0 %v2297_v10  ;;  %v2364_v10 = vld [vmem:[%s2490_s28] sm:$0xfc]   ;;  %v2351_v46 = vld [vmem:[%s2759_s4 + $0x198] sm:$0xff]   ;;  %v2371_v3 = vld [vmem:[%s2759_s4 + $0x230] sm:$0xff]  }
  0x1d   : > { %2113 = vmatpush3.bf16.msra.mxu1 %v2298_v11  ;;  %2094 = vmatprep.subr.bf16.mxu0 %v2299_v14  ;;  %v2365_v11 = vld [vmem:[%s2490_s28 + $0x8] sm:$0x1f]   ;;  %v1181_v13 = vshrl.u32 %v1913_v7, 16  ;;  %v2354_v49 = vld [vmem:[%s2759_s4 + $0x1e0] sm:$0xff]   ;;  %v2360_v56 = vld [vmem:[%s2759_s4 + $0x1f8] sm:$0xff]  }
  0x1e   : > { %2114 = vmatprep.subr.bf16.mxu1 %v2300_v15 }
  0x20   : > { %2095 = vmatpush3.bf16.msra.mxu0 %v2299_v14  ;;  %v1184_v14 = vshll.u32 %v1913_v7, 16 }
  0x21   : > { %2115 = vmatpush3.bf16.msra.mxu1 %v2300_v15  ;;  %2096 = vmatprep.subr.bf16.mxu0 %v2301_v16  ;;  %v1189_v15 = vshrl.u32 %v2635_v8, 16 }
  0x22   : > { %2116 = vmatprep.subr.bf16.mxu1 %v2302_v17  ;;  %v1186_v25 = vrot.slane %v1184_v14, 3 }
  0x23   : > { %v1191_v26 = vrot.slane %v1189_v15, 2 }
  0x24   : > { %2097 = vmatpush3.bf16.msra.mxu0 %v2301_v16  ;;  %v1192_v16 = vshll.u32 %v2635_v8, 16 }
  0x25   : > { %2117 = vmatpush3.bf16.msra.mxu1 %v2302_v17  ;;  %2122 = vmatprep.subr.bf16.mxu0 %v2307_v19  ;;  %v1330_v17 = vshrl.u32 %v2364_v10, 16 }
  0x26   : > { %2142 = vmatprep.subr.bf16.mxu1 %v2308_v21 }
  0x27   : > { %2099 = vmatmul.mubr.bf16.vlgmr.msra.gmra.mrb[0].mxu0 %v2305_v18  ;;  %v1333_v18 = vshll.u32 %v2364_v10, 16 }
  0x28   : > { %2119 = vmatmul.mubr.bf16.vlgmr.msra.gmra.mrb[0].mxu1 %v2306_v20  ;;  %2123 = vmatpush3.bf16.msra.mxu0 %v2307_v19  ;;  %v1338_v19 = vshrl.u32 %v2365_v11, 16  ;;  %v1341_v20 = vshll.u32 %v2365_v11, 16 }
  0x29   : > { %2143 = vmatpush3.bf16.msra.mxu1 %v2308_v21  ;;  %2124 = vmatprep.subr.bf16.mxu0 %v2309_v23  ;;  %v2340_v21 = vld [vmem:[%s2759_s4 + $0x138] sm:$0xff]   ;;  %v1335_v29 = vrot.slane %v1333_v18, 3 }
  0x2a   : > { %2144 = vmatprep.subr.bf16.mxu1 %v2310_v24  ;;  %2158 = vmatprep.mubr.bf16.mxu1 %v2325_v32  ;;  %v1340_v30 = vrot.slane %v1338_v19, 2  ;;  %v1343_v31 = vrot.slane %v1341_v20, 3  ;;  %v2344_v32 = vld [vmem:[%s2759_s4 + $0x180] sm:$0xff]  }
  0x2b   : > { %2138 = vmatprep.mubr.bf16.mxu0 %v648_v36 }
  0x2c   : > { %2125 = vmatpush3.bf16.msra.mxu0 %v2309_v23  ;;  %v1044_v23 = vshrl.u32 %v2584_v47, 16  ;;  %v2352_v47 = vld [vmem:[%s2759_s4 + $0x1d8] sm:$0xff]  }
  0x2d   : > { %2145 = vmatpush3.bf16.msra.mxu1 %v2310_v24  ;;  %2126 = vmatprep.subr.bf16.mxu0 %v2311_v27  ;;  %v1183_v24 = vrot.slane %v1181_v13, 2 }
  0x2e   : > { %2146 = vmatprep.subr.bf16.mxu1 %v2312_v28 }
  0x2f   : > { %v1187_v35 = vor.u32 %v1186_v25, %v1183_v24 }
  0x30   : > { %2127 = vmatpush3.bf16.msra.mxu0 %v2311_v27  ;;  %v1194_v27 = vrot.slane %v1192_v16, 3 }
  0x31   : > { %2147 = vmatpush3.bf16.msra.mxu1 %v2312_v28  ;;  %2128 = vmatprep.subr.bf16.mxu0 %v2313_v33  ;;  %v1332_v28 = vrot.slane %v1330_v17, 2 }
  0x32   : > { %2148 = vmatprep.subr.bf16.mxu1 %v2314_v34  ;;  %v2661_v36 = vor.u32 %v1194_v27, %v1191_v26 }
  0x34   : > { %2129 = vmatpush3.bf16.msra.mxu0 %v2313_v33  ;;  %v2346_v33 = vld [vmem:[%s2759_s4 + $0x1c0] sm:$0xff]  }
  0x35   : > { %2149 = vmatpush3.bf16.msra.mxu1 %v2314_v34  ;;  %2130 = vmatprep.subr.bf16.mxu0 %v2315_v37  ;;  %v2343_v34 = vld [vmem:[%s2575_s25 + $0x8] ss:$0 sps:$4 sm:$0x33]  }
  0x36   : > { %2150 = vmatprep.subr.bf16.mxu1 %v2316_v38 }
  0x38   : > { %2131 = vmatpush3.bf16.msra.mxu0 %v2315_v37  ;;  %v1046_v37 = vor.u32 %v1044_v23, %v2597_v57 }
  0x39   : > { %2151 = vmatpush3.bf16.msra.mxu1 %v2316_v38  ;;  %2132 = vmatprep.subr.bf16.mxu0 %v2317_v39  ;;  %v1336_v38 = vor.u32 %v1335_v29, %v1332_v28 }
  0x3a   : > { %2152 = vmatprep.subr.bf16.mxu1 %v2318_v40 }
  0x3c   : > { %2133 = vmatpush3.bf16.msra.mxu0 %v2317_v39  ;;  %v2664_v39 = vor.u32 %v1343_v31, %v1340_v30 }
  0x3d   : > { %2153 = vmatpush3.bf16.msra.mxu1 %v2318_v40  ;;  %2134 = vmatprep.subr.bf16.mxu0 %v2319_v41  ;;  %v2347_v40 = vld [vmem:[%s2759_s4 + $0x188] sm:$0xff]  }
  0x3e   : > { %2154 = vmatprep.subr.bf16.mxu1 %v2320_v42  ;;  %v1345_v43 = vsel %vm1179_vm1, %v1336_v38, %v2664_v39 }
  0x40   : > { %2135 = vmatpush3.bf16.msra.mxu0 %v2319_v41  ;;  %v2348_v41 = vld [vmem:[%s2759_s4 + $0x1c8] sm:$0xff]  }
  0x41   : > { %2155 = vmatpush3.bf16.msra.mxu1 %v2320_v42  ;;  %2136 = vmatprep.subr.bf16.mxu0 %v2321_v44  ;;  %v1196_v42 = vsel %vm1179_vm1, %v1187_v35, %v2661_v36 }
  0x42   : > { %2156 = vmatprep.subr.bf16.mxu1 %v2322_v45 }
  0x44   : > { %2137 = vmatpush3.bf16.msra.mxu0 %v2321_v44  ;;  %v2349_v44 = vld [vmem:[%s2759_s4 + $0x190] sm:$0xff]  }
  0x45   : > { %2157 = vmatpush3.bf16.msra.mxu1 %v2322_v45  ;;  %2162 = vmatprep.subr.bf16.mxu0 %v2324_v50  ;;  %v2350_v45 = vld [vmem:[%s2759_s4 + $0x1d0] sm:$0xff]  }
  0x46   : > { %2182 = vmatprep.subr.bf16.mxu1 %v2327_v53 }
  0x47   : > { %2139 = vmatmul.mubr.bf16.vlgmr.msra.gmra.mrb[4].mxu0 %v651_v54  ;;  %v1447_v54 = vld [vmem:[%s2499_s9] sm:$0x8] }
  0x48   : > { %2163 = vmatpush3.bf16.msra.mxu0 %v2324_v50  ;;  %2159 = vmatmul.mubr.bf16.vlgmr.msra.gmra.mrb[4].mxu1 %v2326_v52  ;;  %v2355_v50 = vld [vmem:[%s2759_s4 + $0x1a8] sm:$0xff]   ;;  %v2357_v52 = vld [vmem:[%s2759_s4 + $0x1b0] sm:$0xff]   ;;  %v1965_v57 = vcombine.low %v1447_v54, %v2625_v4  ;;  %v2372_v4 = vld [vmem:[%s2759_s4 + $0x238] sm:$0xff]  }
  0x49   : > { %2183 = vmatpush3.bf16.msra.mxu1 %v2327_v53  ;;  %2164 = vmatprep.subr.bf16.mxu0 %v2328_v55  ;;  %v2358_v53 = vld [vmem:[%s2759_s4 + $0x1f0] sm:$0xff]  }
  0x4a   : > { %2184 = vmatprep.subr.bf16.mxu1 %v2329_v58  ;;  %2178 = vmatprep.mubr.bf16.mxu0 %v2342_v59  ;;  %v1469_v59 = vrot.slane %v1965_v57, 3 }
  0x4b   : > { %2198 = vmatprep.mubr.bf16.mxu1 %v1043_v60  ;;  %v1470_v60 = vrot.slane %v2635_v8, 3 }
  0x4c   : > { %2165 = vmatpush3.bf16.msra.mxu0 %v2328_v55  ;;  %v2359_v55 = vld [vmem:[%s2759_s4 + $0x1b8] sm:$0xff]  }
  0x4d   : > { %2185 = vmatpush3.bf16.msra.mxu1 %v2329_v58  ;;  %2166 = vmatprep.subr.bf16.mxu0 %v2330_v61  ;;  %v2363_v58 = vld [vmem:[%s2759_s4 + $0x200] sm:$0xff]  }
  0x4e   : > { %2186 = vmatprep.subr.bf16.mxu1 %v2331_v62 }
  0x50   : > { %2167 = vmatpush3.bf16.msra.mxu0 %v2330_v61  ;;  %v2366_v61 = vld [vmem:[%s2759_s4 + $0x208] sm:$0xff]  }
  0x51   : > { %2187 = vmatpush3.bf16.msra.mxu1 %v2331_v62  ;;  %2168 = vmatprep.subr.bf16.mxu0 %v2332_v63  ;;  %v1471_v62 = vsel %vm1468_vm2, %v1469_v59, %v1470_v60  ;;  %v1974_v59 = vld [vmem:[%s2760_s5] ss:$0 sm:$0xff] }
  0x52   : > { %2188 = vmatprep.subr.bf16.mxu1 %v2333_v0 }
  0x54   : > { %2169 = vmatpush3.bf16.msra.mxu0 %v2332_v63  ;;  %v2367_v63 = vld [vmem:[%s2759_s4 + $0x210] sm:$0xff]  }
  0x55   : > { %2189 = vmatpush3.bf16.msra.mxu1 %v2333_v0  ;;  %2170 = vmatprep.subr.bf16.mxu0 %v2334_v1  ;;  %v2368_v0 = vld [vmem:[%s2759_s4 + $0x218] sm:$0xff]  }
  0x56   : > { %2190 = vmatprep.subr.bf16.mxu1 %v2335_v2 }
  0x58   : > { %2171 = vmatpush3.bf16.msra.mxu0 %v2334_v1  ;;  %v2369_v1 = vld [vmem:[%s2759_s4 + $0x220] sm:$0xff]  }
  0x59   : > { %2191 = vmatpush3.bf16.msra.mxu1 %v2335_v2  ;;  %2172 = vmatprep.subr.bf16.mxu0 %v2336_v5  ;;  %v2370_v2 = vld [vmem:[%s2759_s4 + $0x228] sm:$0xff]  }
  0x5a   : > { %2192 = vmatprep.subr.bf16.mxu1 %v2337_v6 }
  0x5c   : > { %2173 = vmatpush3.bf16.msra.mxu0 %v2336_v5 }
  0x5d   : > { %2193 = vmatpush3.bf16.msra.mxu1 %v2337_v6  ;;  %2174 = vmatprep.subr.bf16.mxu0 %v2338_v9 }
  0x5e   : > { %2194 = vmatprep.subr.bf16.mxu1 %v2339_v12 }
  0x60   : > { %2175 = vmatpush3.bf16.msra.mxu0 %v2338_v9 }
  0x61   : > { %2195 = vmatpush3.bf16.msra.mxu1 %v2339_v12  ;;  %2176 = vmatprep.subr.bf16.mxu0 %v2340_v21 }
  0x62   : > { %2196 = vmatprep.subr.bf16.mxu1 %v2341_v22 }
  0x64   : > { %2177 = vmatpush3.bf16.msra.mxu0 %v2340_v21 }
  0x65   : > { %2197 = vmatpush3.bf16.msra.mxu1 %v2341_v22  ;;  %2202 = vmatprep.subr.bf16.mxu0 %v2344_v32 }
  0x66   : > { %2222 = vmatprep.subr.bf16.mxu1 %v2346_v33 }
  0x67   : > { %2179 = vmatmul.mubr.bf16.vlgmr.msra.gmra.mrb[8].mxu0 %v2343_v34 }
  0x68   : > { %2203 = vmatpush3.bf16.msra.mxu0 %v2344_v32  ;;  %2199 = vmatmul.mubr.bf16.vlgmr.msra.gmra.mrb[8].mxu1 %v1046_v37 }
  0x69   : > { %2223 = vmatpush3.bf16.msra.mxu1 %v2346_v33  ;;  %2204 = vmatprep.subr.bf16.mxu0 %v2347_v40 }
  0x6a   : > { %2224 = vmatprep.subr.bf16.mxu1 %v2348_v41  ;;  %2218 = vmatprep.mubr.bf16.mxu0 %v1196_v42 }
  0x6b   : > { %2238 = vmatprep.mubr.bf16.mxu1 %v1345_v43 }
  0x6c   : > { %2205 = vmatpush3.bf16.msra.mxu0 %v2347_v40 }
  0x6d   : > { %2225 = vmatpush3.bf16.msra.mxu1 %v2348_v41  ;;  %2206 = vmatprep.subr.bf16.mxu0 %v2349_v44 }
  0x6e   : > { %2226 = vmatprep.subr.bf16.mxu1 %v2350_v45 }
  0x70   : > { %2207 = vmatpush3.bf16.msra.mxu0 %v2349_v44 }
  0x71   : > { %2227 = vmatpush3.bf16.msra.mxu1 %v2350_v45  ;;  %2208 = vmatprep.subr.bf16.mxu0 %v2351_v46 }
  0x72   : > { %2228 = vmatprep.subr.bf16.mxu1 %v2352_v47 }
  0x74   : > { %2209 = vmatpush3.bf16.msra.mxu0 %v2351_v46 }
  0x75   : > { %2229 = vmatpush3.bf16.msra.mxu1 %v2352_v47  ;;  %2210 = vmatprep.subr.bf16.mxu0 %v2353_v48 }
  0x76   : > { %2230 = vmatprep.subr.bf16.mxu1 %v2354_v49 }
  0x78   : > { %2211 = vmatpush3.bf16.msra.mxu0 %v2353_v48 }
  0x79   : > { %2231 = vmatpush3.bf16.msra.mxu1 %v2354_v49  ;;  %2212 = vmatprep.subr.bf16.mxu0 %v2355_v50 }
  0x7a   : > { %2232 = vmatprep.subr.bf16.mxu1 %v2356_v51 }
  0x7c   : > { %2213 = vmatpush3.bf16.msra.mxu0 %v2355_v50 }
  0x7d   : > { %2233 = vmatpush3.bf16.msra.mxu1 %v2356_v51  ;;  %2214 = vmatprep.subr.bf16.mxu0 %v2357_v52 }
  0x7e   : > { %2234 = vmatprep.subr.bf16.mxu1 %v2358_v53 }
  0x80   : > { %2215 = vmatpush3.bf16.msra.mxu0 %v2357_v52 }
  0x81   : > { %2235 = vmatpush3.bf16.msra.mxu1 %v2358_v53  ;;  %2216 = vmatprep.subr.bf16.mxu0 %v2359_v55 }
  0x82   : > { %2236 = vmatprep.subr.bf16.mxu1 %v2360_v56 }
  0x84   : > { %2217 = vmatpush3.bf16.msra.mxu0 %v2359_v55 }
  0x85   : > { %2237 = vmatpush3.bf16.msra.mxu1 %v2360_v56  ;;  %2242 = vmatprep.subr.bf16.mxu0 %v2363_v58 }
  0x87   : > { %2219 = vmatmul.mubr.bf16.vlgmr.msra.gmra.mrb[12].mxu0 %v2661_v36 }
  0x88   : > { %2243 = vmatpush3.bf16.msra.mxu0 %v2363_v58  ;;  %2239 = vmatmul.mubr.bf16.vlgmr.msra.gmra.mrb[12].mxu1 %v2664_v39 }
  0x89   : > { %2244 = vmatprep.subr.bf16.mxu0 %v2366_v61  ;;  %2258 = vmatprep.mubr.bf16.mxu0 %v1471_v62 }
  0x8c   : > { %2245 = vmatpush3.bf16.msra.mxu0 %v2366_v61 }
  0x8d   : > { %2246 = vmatprep.subr.bf16.mxu0 %v2367_v63 }
  0x90   : > { %2247 = vmatpush3.bf16.msra.mxu0 %v2367_v63 }
  0x91   : > { %2248 = vmatprep.subr.bf16.mxu0 %v2368_v0 }
  0x94   : > { %2249 = vmatpush3.bf16.msra.mxu0 %v2368_v0 }
  0x95   : > { %2250 = vmatprep.subr.bf16.mxu0 %v2369_v1 }
  0x98   : > { %2251 = vmatpush3.bf16.msra.mxu0 %v2369_v1 }
  0x99   : > { %2252 = vmatprep.subr.bf16.mxu0 %v2370_v2 }
  0x9c   : > { %2253 = vmatpush3.bf16.msra.mxu0 %v2370_v2 }
  0x9d   : > { %2254 = vmatprep.subr.bf16.mxu0 %v2371_v3 }
  0xa0   : > { %2255 = vmatpush3.bf16.msra.mxu0 %v2371_v3 }
  0xa1   : > { %2256 = vmatprep.subr.bf16.mxu0 %v2372_v4 }
  0xa4   : > { %2257 = vmatpush3.bf16.msra.mxu0 %v2372_v4 }
  0xa7   : > { %2259 = vmatmul.mubr.bf16.vlgmr.msra.gmra.mrb[16].mxu0 %v1470_v60 }
  0xfa   : > { %v2100_v5 = vpop.f32.mrb[0].mxu0 }
  0xfb   : > { %v2120_v6 = vpop.f32.mrb[0].mxu1  ;;  %v495_v7 = vpop.f32.mrb[1].mxu0 }
  0xfc   : > { %v610_v8 = vadd.f32 %v2120_v6, %v2100_v5  ;;  %v601_v9 = vpop.f32.mrb[1].mxu1  ;;  %v2101_v10 = vpop.f32.mrb[2].mxu0 }
  0xfd   : > { %v602_v11 = vadd.f32 %v601_v9, %v495_v7  ;;  %v2121_v12 = vpop.f32.mrb[2].mxu1  ;;  %v498_v13 = vpop.f32.mrb[3].mxu0 }
  0xfe   : > { %v604_v14 = vpop.f32.mrb[3].mxu1 }
  0xff   : > { %v605_v15 = vadd.f32 %v604_v14, %v498_v13 }
 0x11a   : > { %v2140_v16 = vpop.f32.mrb[4].mxu0 }
 0x11b   : > { %v752_v17 = vadd.f32 %v2140_v16, %v610_v8  ;;  %v736_v18 = vpop.f32.mrb[5].mxu0  ;;  %v2160_v19 = vpop.f32.mrb[4].mxu1 }
 0x11c   : > { %v750_v20 = vadd.f32 %v736_v18, %v602_v11  ;;  %v2141_v21 = vpop.f32.mrb[6].mxu0  ;;  %v865_v22 = vpop.f32.mrb[5].mxu1 }
 0x11d   : > { %v881_v23 = vadd.f32 %v2160_v19, %v752_v17  ;;  %v739_v24 = vpop.f32.mrb[7].mxu0  ;;  %v2161_v25 = vpop.f32.mrb[6].mxu1 }
 0x11e   : > { %v751_v26 = vadd.f32 %v739_v24, %v605_v15  ;;  %v879_v27 = vadd.f32 %v865_v22, %v750_v20  ;;  %v868_v28 = vpop.f32.mrb[7].mxu1 }
 0x120   : > { %v880_v29 = vadd.f32 %v868_v28, %v751_v26 }
 0x13a   : > { %v2180_v30 = vpop.f32.mrb[8].mxu0 }
 0x13b   : > { %v1010_v31 = vadd.f32 %v2180_v30, %v881_v23  ;;  %v994_v32 = vpop.f32.mrb[9].mxu0  ;;  %v2200_v33 = vpop.f32.mrb[8].mxu1 }
 0x13c   : > { %v1008_v34 = vadd.f32 %v994_v32, %v879_v27  ;;  %v2181_v35 = vpop.f32.mrb[10].mxu0  ;;  %v1131_v36 = vpop.f32.mrb[9].mxu1 }
 0x13d   : > { %v1147_v37 = vadd.f32 %v2200_v33, %v1010_v31  ;;  %v997_v38 = vpop.f32.mrb[11].mxu0  ;;  %v2201_v39 = vpop.f32.mrb[10].mxu1 }
 0x13e   : > { %v1009_v40 = vadd.f32 %v997_v38, %v880_v29  ;;  %v1145_v41 = vadd.f32 %v1131_v36, %v1008_v34  ;;  %v1134_v42 = vpop.f32.mrb[11].mxu1 }
 0x140   : > { %v1146_v43 = vadd.f32 %v1134_v42, %v1009_v40 }
 0x15a   : > { %v2220_v44 = vpop.f32.mrb[12].mxu0 }
 0x15b   : > { %v1297_v45 = vadd.f32 %v2220_v44, %v1147_v37  ;;  %v1281_v46 = vpop.f32.mrb[13].mxu0  ;;  %v2240_v47 = vpop.f32.mrb[12].mxu1 }
 0x15c   : > { %v1295_v48 = vadd.f32 %v1281_v46, %v1145_v41  ;;  %v2221_v49 = vpop.f32.mrb[14].mxu0  ;;  %v1430_v50 = vpop.f32.mrb[13].mxu1 }
 0x15d   : > { %v1446_v51 = vadd.f32 %v2240_v47, %v1297_v45  ;;  %v1284_v52 = vpop.f32.mrb[15].mxu0  ;;  %v2241_v53 = vpop.f32.mrb[14].mxu1 }
 0x15e   : > { %v1296_v54 = vadd.f32 %v1284_v52, %v1146_v43  ;;  %v1444_v55 = vadd.f32 %v1430_v50, %v1295_v48  ;;  %v1433_v56 = vpop.f32.mrb[15].mxu1 }
 0x160   : > { %v1445_v57 = vadd.f32 %v1433_v56, %v1296_v54 }
 0x17a   : > { %v2260_v58 = vpop.f32.mrb[16].mxu0 }
 0x17b   : > { %v1572_v60 = vadd.f32 %v2260_v58, %v1446_v51  ;;  %v1556_v61 = vpop.f32.mrb[17].mxu0 }
 0x17c   : > { %v1570_v62 = vadd.f32 %v1556_v61, %v1444_v55  ;;  %v2261_v63 = vpop.f32.mrb[18].mxu0 }
 0x17d   : > { %v1582_v0 = vadd.f32 %v1974_v59, %v1572_v60  ;;  %v1559_v1 = vpop.f32.mrb[19].mxu0 }
 0x17e   : > { %v1580_v2 = vadd.f32 %v1974_v59, %v1570_v62  ;;  %v1571_v3 = vadd.f32 %v1559_v1, %v1445_v57 }
 0x17f   : > { %v1585_v4 = vmax.f32 %v1582_v0, 0.0 }
 0x180   : > { %v1581_v5 = vadd.f32 %v1974_v59, %v1571_v3  ;;  %v1583_v7 = vmax.f32 %v1580_v2, 0.0 }
 0x181   : > { %v1986_v6 = vpack.c.bf16 %v1585_v4, %v1585_v4 }
 0x182   : > { %v1584_v8 = vmax.f32 %v1581_v5, 0.0 }
 0x183   : > { %1601 = vst [vmem:[%s362_s18 + $0x8] sm:$0x3] %v1986_v6 }
 0x184   : > { %v1990_v9 = vpack.c.bf16 %v1584_v8, %v1583_v7 }
 0x186   : > { %1991 = vst [vmem:[%s362_s18] sm:$0xff] %v1990_v9  }
 0x187 PF: > { %s16_s23 = sadd.s32 1, %s2396_s23   ;;  %s2762_s21 = smov %s2392_s22 }
 0x188   : > { %p13_p5 = scmp.ge.s32.totalorder %s16_s23, 4   ;;  %s2763_s22 = smov %s2765_s24 }
 0x18a   :  { %15 = sbr.rel (!%p13_p5) target bundleno = 2 (0x2), region = 97 }

// kernel: stem_forward.5
= control target key start
LH: loop header
LB: loop body
LE: loop exit
PB: predicated region body
PF: predicated region fallthrough
CT: control target
= control target key end

     0   :  { %s2192_s12 = smov 0   ;;  %s2194_s13 = smov 0   ;;  %s2516_s0 = inlined_call_operand.vmem [shape: bf16[2,42,128], index: 0, kind: input, shape index: {}]   ;;  %s2517_s1 = inlined_call_operand.vmem [shape: bf16[9,128,128], index: 1, kind: input, shape index: {}]   ;;  %s2518_s2 = inlined_call_operand.vmem [shape: f32[1,128], index: 2, kind: input, shape index: {}]   ;;  %s2519_s3 = inlined_call_operand.vmem [shape: bf16[2,24,128], index: 3, kind: output, shape index: {}]  }
   0x1   :  { %s2196_s14 = smov 0  }
   0x2 LB: > { %s25_s15 = sadd.s32 1, %s2166_s13  ;;  %p1537_p0 = scmp.ge.s32.totalorder %s2170_s14, 1  ;;  %s2170_s14 = sphi %s2196_s14, %s13_s14   ;;  %s2166_s13 = sphi %s2194_s13, %s2521_s13   ;;  %s2162_s12 = sphi %s2192_s12, %s2520_s12  }
   0x3   : > { %p27_p1 = scmp.ge.s32.totalorder %s25_s15, 2  ;;  %p168_p2 = scmp.lt.s32.totalorder %s2170_s14, 3 }
   0x5   : > { %s2523_s15 = smov (%p27_p1, %s25_s15), 0  ;;  %p169_p3 = pnand %p1537_p0, %p168_p2 }
   0x6   : > { %v2063_v0 = vld [vmem:[%s2517_s1 + $0x40] sm:$0xff] (!%p169_p3)   ;;  %p202_p4 = scmp.lt.s32.totalorder (!%p169_p3), %s2162_s12, 1  ;;  %v2065_v2 = vld [vmem:[%s2517_s1 + $0x48] sm:$0xff] (!%p169_p3)   ;;  %v2067_v4 = vld [vmem:[%s2517_s1 + $0x50] sm:$0xff] (!%p169_p3)   ;;  %vm270_vm0 = vsmask.f32 (!%p169_p3), 7424 }
   0x7   : > { %172 = sbr.rel (%p169_p3) target bundleno = 389 (0x185), region = 32  ;;  %v2064_v1 = vld [vmem:[%s2517_s1] sm:$0xff] (!%p169_p3)   ;;  %1857 = vmatprep.subr.bf16.mxu0 (!%p169_p3), %v2063_v0  ;;  %v2066_v3 = vld [vmem:[%s2517_s1 + $0x8] sm:$0xff] (!%p169_p3)   ;;  %v2068_v5 = vld [vmem:[%s2517_s1 + $0x10] sm:$0xff] (!%p169_p3)   ;;  %vm504_vm1 = vcmask (!%p169_p3), 1046528   ;;  %vm634_vm2 = vcmask (!%p169_p3), 1044480  }
   0x8   : > { %1877 = vmatprep.subr.bf16.mxu1 (!%p169_p3), %v2064_v1  ;;  %1858 = vmatpush3.bf16.msra.mxu0 (!%p169_p3), %v2063_v0  ;;  %v2069_v6 = vld [vmem:[%s2517_s1 + $0x58] sm:$0xff] (!%p169_p3)   ;;  %v2071_v8 = vld [vmem:[%s2517_s1 + $0x60] sm:$0xff] (!%p169_p3)   ;;  %v2073_v10 = vld [vmem:[%s2517_s1 + $0x68] sm:$0xff] (!%p169_p3)   ;;  %vm760_vm3 = vsmask.f32 (!%p169_p3), 4352  ;;  %vm1030_vm4 = vcmask (!%p169_p3), 1045504  }
   0x9   : > { %1878 = vmatpush3.bf16.msra.mxu1 (!%p169_p3), %v2064_v1  ;;  %1859 = vmatprep.subr.bf16.mxu0 (!%p169_p3), %v2065_v2  ;;  %v2070_v7 = vld [vmem:[%s2517_s1 + $0x18] sm:$0xff] (!%p169_p3)   ;;  %v2072_v9 = vld [vmem:[%s2517_s1 + $0x20] sm:$0xff] (!%p169_p3)   ;;  %v2074_v14 = vld [vmem:[%s2517_s1 + $0x28] sm:$0xff] (!%p169_p3)   ;;  %vm1156_vm5 = vsmask.f32 (!%p169_p3), 5376 }
   0xa   : > { %1879 = vmatprep.subr.bf16.mxu1 (!%p169_p3), %v2066_v3  ;;  %v2075_v20 = vld [vmem:[%s2517_s1 + $0x70] sm:$0xff] (!%p169_p3)   ;;  %v2077_v26 = vld [vmem:[%s2517_s1 + $0x78] sm:$0xff] (!%p169_p3)   ;;  %v2082_v30 = vld [vmem:[%s2517_s1 + $0x80] sm:$0xff] (!%p169_p3)  }
   0xb   : > { %v2076_v22 = vld [vmem:[%s2517_s1 + $0x30] sm:$0xff] (!%p169_p3)   ;;  %v2078_v27 = vld [vmem:[%s2517_s1 + $0x38] sm:$0xff] (!%p169_p3)   ;;  %v2083_v31 = vld [vmem:[%s2517_s1 + $0xc0] sm:$0xff] (!%p169_p3)  }
   0xc   : > { %1860 = vmatpush3.bf16.msra.mxu0 (!%p169_p3), %v2065_v2  ;;  %v2084_v34 = vld [vmem:[%s2517_s1 + $0x88] sm:$0xff] (!%p169_p3)   ;;  %v2086_v41 = vld [vmem:[%s2517_s1 + $0x90] sm:$0xff] (!%p169_p3)   ;;  %v2088_v49 = vld [vmem:[%s2517_s1 + $0x98] sm:$0xff] (!%p169_p3)  }
   0xd   : > { %1880 = vmatpush3.bf16.msra.mxu1 (!%p169_p3), %v2066_v3  ;;  %1861 = vmatprep.subr.bf16.mxu0 (!%p169_p3), %v2067_v4  ;;  %v2085_v35 = vld [vmem:[%s2517_s1 + $0xc8] sm:$0xff] (!%p169_p3)   ;;  %v2087_v44 = vld [vmem:[%s2517_s1 + $0xd0] sm:$0xff] (!%p169_p3)   ;;  %v2089_v51 = vld [vmem:[%s2517_s1 + $0xd8] sm:$0xff] (!%p169_p3)  }
   0xe   : > { %s2525_s12 = smov (!%p202_p4, %s2162_s12), 1  ;;  %1881 = vmatprep.subr.bf16.mxu1 %v2068_v5  ;;  %v2090_v52 = vld [vmem:[%s2517_s1 + $0xa0] sm:$0xff]   ;;  %v2092_v54 = vld [vmem:[%s2517_s1 + $0xa8] sm:$0xff]   ;;  %v2094_v56 = vld [vmem:[%s2517_s1 + $0xb0] sm:$0xff]  }
   0xf   : > { %s2037_s5 = smul.u32 24, %s2525_s12  ;;  %v2091_v53 = vld [vmem:[%s2517_s1 + $0xe0] sm:$0xff]   ;;  %v2093_v55 = vld [vmem:[%s2517_s1 + $0xe8] sm:$0xff]   ;;  %v2095_v61 = vld [vmem:[%s2517_s1 + $0xf0] sm:$0xff]  }
  0x10   : > { %1862 = vmatpush3.bf16.msra.mxu0 %v2067_v4  ;;  %v2096_v0 = vld [vmem:[%s2517_s1 + $0xb8] sm:$0xff]   ;;  %s2038_s28 = smul.u32 12, %s2525_s12 }
  0x11   : > { %1882 = vmatpush3.bf16.msra.mxu1 %v2068_v5  ;;  %1863 = vmatprep.subr.bf16.mxu0 %v2069_v6  ;;  %s2246_s16 = scalar_lea.vmem %s2516_s0, %s2037_s5  ;;  %v2097_v1 = vld [vmem:[%s2517_s1 + $0xf8] sm:$0xff]  }
  0x12   : > { %1883 = vmatprep.subr.bf16.mxu1 %v2070_v7  ;;  %v223_v11 = vld [vmem:[%s2246_s16] sm:$0xf]  ;;  %v2253_v12 = vld [vmem:[%s2246_s16 + $0x4] sm:$0xf]  ;;  %v2256_v13 = vld [vmem:[%s2246_s16 + $0x8] sm:$0xf]  ;;  %s221_s6 = scalar_lea.vmem %s2519_s3, %s2038_s28 }
  0x13   : > { %v242_v15 = vld [vmem:[%s2246_s16 + $0xc] sm:$0x1]  ;;  %v1556_v16 = vcombine.low %v223_v11, %v2253_v12  ;;  %v1566_v33 = vcombine.low %v2256_v13, %v2256_v13  ;;  %v483_v36 = vld [vmem:[%s2246_s16] sm:$0xe] }
  0x14   : > { %1864 = vmatpush3.bf16.msra.mxu0 %v2069_v6  ;;  %v2264_v17 = vcombine.low %v2256_v13, %v242_v15  ;;  %v1591_v37 = vcombine.low %v483_v36, %v2253_v12  ;;  %v609_v39 = vld [vmem:[%s2246_s16] sm:$0x8]  ;;  %v610_v40 = vld [vmem:[%s2246_s16 + $0xc] sm:$0x7]  ;;  %v1667_v15 = vcombine.low %v2253_v12, %v2256_v13 }
  0x15   : > { %1884 = vmatpush3.bf16.msra.mxu1 %v2070_v7  ;;  %1865 = vmatprep.subr.bf16.mxu0 %v2071_v8  ;;  %v272_v18 = vshrl.u32 %v1556_v16, 16  ;;  %v274_v19 = vshll.u32 %v1556_v16, 16  ;;  %v1616_v42 = vcombine.low %v609_v39, %v2253_v12  ;;  %v1617_v43 = vcombine.low %v2256_v13, %v610_v40  ;;  %v2337_v57 = vld [vmem:[%s2246_s16 + $0xc] sm:$0xf]  ;;  %v2099_v6 = vld [vmem:[%s2517_s1 + $0x100] sm:$0xff]   ;;  %v2107_v12 = vld [vmem:[%s2517_s1 + $0x118] sm:$0xff]  }
  0x16   : > { %1885 = vmatprep.subr.bf16.mxu1 %v2072_v9  ;;  %1893 = vmatprep.mubr.bf16.mxu1 %v1556_v16  ;;  %v279_v21 = vshll.u32 %v2264_v17, 16  ;;  %v283_v29 = vshrl.u32 %v2264_v17, 16  ;;  %v506_v38 = vrot.slane %v2264_v17, 1  ;;  %v505_v45 = vrot.slane %v1591_v37, 1  ;;  %v2102_v7 = vld [vmem:[%s2517_s1 + $0x140] sm:$0xff]   ;;  %v2104_v11 = vld [vmem:[%s2517_s1 + $0x148] sm:$0xff]  }
  0x17   : > { %v276_v23 = vrot.slane %v274_v19, 1  ;;  %v635_v46 = vrot.slane %v1616_v42, 3  ;;  %v2308_v47 = vrot.slane %v1617_v43, 3  ;;  %v762_v58 = vshrl.u32 %v1616_v42, 16  ;;  %v2105_v16 = vld [vmem:[%s2517_s1 + $0x110] sm:$0xff]   ;;  %v2115_v40 = vld [vmem:[%s2517_s1 + $0x138] sm:$0xff]  }
  0x18   : > { %1866 = vmatpush3.bf16.msra.mxu0 %v2071_v8  ;;  %v281_v24 = vrot.slane %v279_v21, 1  ;;  %v507_v48 = vsel %vm504_vm1, %v505_v45, %v506_v38  ;;  %v765_v59 = vshll.u32 %v1616_v42, 16  ;;  %v1642_v60 = vcombine.low %v2256_v13, %v2337_v57  ;;  %v2106_v17 = vld [vmem:[%s2517_s1 + $0x150] sm:$0xff]   ;;  %v2108_v13 = vld [vmem:[%s2517_s1 + $0x158] sm:$0xff]   ;;  %v2110_v21 = vld [vmem:[%s2517_s1 + $0x160] sm:$0xff]  }
  0x19   : > { %1886 = vmatpush3.bf16.msra.mxu1 %v2072_v9  ;;  %1867 = vmatprep.subr.bf16.mxu0 %v2073_v10  ;;  %v277_v25 = vor.u32 %v276_v23, %v272_v18  ;;  %v637_v50 = vsel %vm634_vm2, %v635_v46, %v2308_v47  ;;  %v764_v2 = vrot.slane %v762_v58, 3  ;;  %v1001_v18 = vld [vmem:[%s2246_s16 + $0xc] sm:$0xf]  ;;  %v1135_v19 = vld [vmem:[%s2246_s16 + $0x10] sm:$0x7] }
  0x1a   : > { %1887 = vmatprep.subr.bf16.mxu1 %v2074_v14  ;;  %v285_v32 = vor.u32 %v283_v29, %v281_v24  ;;  %v770_v62 = vshrl.u32 %v1642_v60, 16  ;;  %v773_v63 = vshll.u32 %v1642_v60, 16  ;;  %v767_v3 = vrot.slane %v765_v59, 4  ;;  %v1000_v23 = vld [vmem:[%s2246_s16 + $0x8] sm:$0xf]  ;;  %v2124_v58 = vld [vmem:[%s2517_s1 + $0x190] sm:$0xff]  }
  0x1b   : > { %v282_v28 = vsel %vm270_vm0, %v277_v25, %v281_v24  ;;  %v1275_v24 = vld [vmem:[%s2246_s16 + $0x4] sm:$0x8]  ;;  %v2112_v29 = vld [vmem:[%s2517_s1 + $0x168] sm:$0xff]   ;;  %v2125_v59 = vld [vmem:[%s2517_s1 + $0x1d0] sm:$0xff]  }
  0x1c   : > { %1868 = vmatpush3.bf16.msra.mxu0 %v2073_v10  ;;  %1873 = vmatprep.mubr.bf16.mxu0 %v282_v28  ;;  %v772_v4 = vrot.slane %v770_v62, 3  ;;  %v775_v5 = vrot.slane %v773_v63, 4  ;;  %v768_v8 = vor.u32 %v767_v3, %v764_v2  ;;  %v2103_v10 = vld [vmem:[%s2517_s1 + $0x108] sm:$0xff]   ;;  %v1744_v25 = vcombine.low %v1275_v24, %v1000_v23  ;;  %v999_v28 = vld [vmem:[%s2246_s16 + $0x4] sm:$0xc]  ;;  %v2126_v60 = vld [vmem:[%s2517_s1 + $0x198] sm:$0xff]  }
  0x1d   : > { %1888 = vmatpush3.bf16.msra.mxu1 %v2074_v14  ;;  %1869 = vmatprep.subr.bf16.mxu0 %v2075_v20  ;;  %v2128_v62 = vld [vmem:[%s2517_s1 + $0x1a0] sm:$0xff]   ;;  %v2132_v2 = vld [vmem:[%s2517_s1 + $0x1b0] sm:$0xff]  }
  0x1e   : > { %1889 = vmatprep.subr.bf16.mxu1 %v2076_v22  ;;  %v2356_v9 = vor.u32 %v775_v5, %v772_v4  ;;  %v2129_v63 = vld [vmem:[%s2517_s1 + $0x1e0] sm:$0xff]   ;;  %v2133_v3 = vld [vmem:[%s2517_s1 + $0x1f0] sm:$0xff]   ;;  %v2134_v4 = vld [vmem:[%s2517_s1 + $0x1b8] sm:$0xff]  }
  0x1f   : > { %v2135_v5 = vld [vmem:[%s2517_s1 + $0x1f8] sm:$0xff]  }
  0x20   : > { %1870 = vmatpush3.bf16.msra.mxu0 %v2075_v20  ;;  %v777_v14 = vsel %vm760_vm3, %v768_v8, %v2356_v9  ;;  %v2109_v20 = vld [vmem:[%s2517_s1 + $0x120] sm:$0xff]   ;;  %v2141_v8 = vld [vmem:[%s2517_s1 + $0x210] sm:$0xff]  }
  0x21   : > { %1890 = vmatpush3.bf16.msra.mxu1 %v2076_v22  ;;  %1871 = vmatprep.subr.bf16.mxu0 %v2077_v26  ;;  %v2390_v22 = vcombine.low %v1001_v18, %v1135_v19 }
  0x22   : > { %1891 = vmatprep.subr.bf16.mxu1 %v2078_v27 }
  0x23   : > { %v1169_v39 = vshll.u32 %v2390_v22, 16 }
  0x24   : > { %1872 = vmatpush3.bf16.msra.mxu0 %v2077_v26  ;;  %v1297_v26 = vrot.slane %v2390_v22, 3 }
  0x25   : > { %1892 = vmatpush3.bf16.msra.mxu1 %v2078_v27  ;;  %1897 = vmatprep.subr.bf16.mxu0 %v2082_v30  ;;  %v2111_v27 = vld [vmem:[%s2517_s1 + $0x128] sm:$0xff]   ;;  %v1171_v46 = vrot.slane %v1169_v39, 3 }
  0x26   : > { %1917 = vmatprep.subr.bf16.mxu1 %v2083_v31 }
  0x27   : > { %1874 = vmatmul.mubr.bf16.vlgmr.msra.gmra.mrb[0].mxu0 %v285_v32 }
  0x28   : > { %1894 = vmatmul.mubr.bf16.vlgmr.msra.gmra.mrb[0].mxu1 %v1566_v33  ;;  %1898 = vmatpush3.bf16.msra.mxu0 %v2082_v30  ;;  %v1296_v30 = vrot.slane %v1744_v25, 3  ;;  %v2113_v33 = vld [vmem:[%s2517_s1 + $0x130] sm:$0xff]  }
  0x29   : > { %1918 = vmatpush3.bf16.msra.mxu1 %v2083_v31  ;;  %1899 = vmatprep.subr.bf16.mxu0 %v2084_v34  ;;  %v1693_v31 = vcombine.low %v999_v28, %v1000_v23 }
  0x2a   : > { %1919 = vmatprep.subr.bf16.mxu1 %v2085_v35  ;;  %1913 = vmatprep.mubr.bf16.mxu0 %v507_v48  ;;  %v2405_v32 = vsel %vm634_vm2, %v1296_v30, %v1297_v26  ;;  %v2121_v48 = vld [vmem:[%s2517_s1 + $0x1c0] sm:$0xff]  }
  0x2b   : > { %1933 = vmatprep.mubr.bf16.mxu1 %v637_v50  ;;  %v1158_v36 = vshrl.u32 %v1693_v31, 16  ;;  %v1161_v37 = vshll.u32 %v1693_v31, 16 }
  0x2c   : > { %1900 = vmatpush3.bf16.msra.mxu0 %v2084_v34  ;;  %v2114_v34 = vld [vmem:[%s2517_s1 + $0x170] sm:$0xff]  }
  0x2d   : > { %1920 = vmatpush3.bf16.msra.mxu1 %v2085_v35  ;;  %1901 = vmatprep.subr.bf16.mxu0 %v2086_v41  ;;  %v1002_v35 = vld [vmem:[%s2246_s16 + $0x10] sm:$0x3]  ;;  %v1160_v43 = vrot.slane %v1158_v36, 2 }
  0x2e   : > { %1921 = vmatprep.subr.bf16.mxu1 %v2087_v44  ;;  %v1694_v42 = vcombine.low %v1001_v18, %v1002_v35 }
  0x30   : > { %1902 = vmatpush3.bf16.msra.mxu0 %v2086_v41  ;;  %v2116_v41 = vld [vmem:[%s2517_s1 + $0x178] sm:$0xff]   ;;  %v1032_v50 = vrot.slane %v1694_v42, 2 }
  0x31   : > { %1922 = vmatpush3.bf16.msra.mxu1 %v2087_v44  ;;  %1903 = vmatprep.subr.bf16.mxu0 %v2088_v49  ;;  %v1163_v44 = vrot.slane %v1161_v37, 3 }
  0x32   : > { %1923 = vmatprep.subr.bf16.mxu1 %v2089_v51 }
  0x34   : > { %1904 = vmatpush3.bf16.msra.mxu0 %v2088_v49  ;;  %v1031_v49 = vrot.slane %v1693_v31, 2 }
  0x35   : > { %1924 = vmatpush3.bf16.msra.mxu1 %v2089_v51  ;;  %1905 = vmatprep.subr.bf16.mxu0 %v2090_v52  ;;  %v1668_v51 = vcombine.low %v2337_v57, %v2337_v57 }
  0x36   : > { %1925 = vmatprep.subr.bf16.mxu1 %v2091_v53 }
  0x38   : > { %1906 = vmatpush3.bf16.msra.mxu0 %v2090_v52  ;;  %v1164_v52 = vor.u32 %v1163_v44, %v1160_v43 }
  0x39   : > { %1926 = vmatpush3.bf16.msra.mxu1 %v2091_v53  ;;  %1907 = vmatprep.subr.bf16.mxu0 %v2092_v54 }
  0x3a   : > { %1927 = vmatprep.subr.bf16.mxu1 %v2093_v55 }
  0x3c   : > { %1908 = vmatpush3.bf16.msra.mxu0 %v2092_v54  ;;  %v2122_v54 = vld [vmem:[%s2517_s1 + $0x188] sm:$0xff]  }
  0x3d   : > { %1928 = vmatpush3.bf16.msra.mxu1 %v2093_v55  ;;  %1909 = vmatprep.subr.bf16.mxu0 %v2094_v56  ;;  %v2123_v55 = vld [vmem:[%s2517_s1 + $0x1c8] sm:$0xff]  }
  0x3e   : > { %1929 = vmatprep.subr.bf16.mxu1 %v2095_v61 }
  0x40   : > { %1910 = vmatpush3.bf16.msra.mxu0 %v2094_v56  ;;  %v1033_v56 = vsel %vm1030_vm4, %v1031_v49, %v1032_v50 }
  0x41   : > { %1930 = vmatpush3.bf16.msra.mxu1 %v2095_v61  ;;  %1911 = vmatprep.subr.bf16.mxu0 %v2096_v0  ;;  %v2127_v61 = vld [vmem:[%s2517_s1 + $0x1d8] sm:$0xff]  }
  0x42   : > { %1931 = vmatprep.subr.bf16.mxu1 %v2097_v1 }
  0x44   : > { %1912 = vmatpush3.bf16.msra.mxu0 %v2096_v0  ;;  %v2130_v0 = vld [vmem:[%s2517_s1 + $0x1a8] sm:$0xff]  }
  0x45   : > { %1932 = vmatpush3.bf16.msra.mxu1 %v2097_v1  ;;  %1937 = vmatprep.subr.bf16.mxu0 %v2099_v6  ;;  %v2131_v1 = vld [vmem:[%s2517_s1 + $0x1e8] sm:$0xff]  }
  0x46   : > { %1957 = vmatprep.subr.bf16.mxu1 %v2102_v7 }
  0x47   : > { %1914 = vmatmul.mubr.bf16.vlgmr.msra.gmra.mrb[4].mxu0 %v506_v38  ;;  %v1166_v38 = vshrl.u32 %v2390_v22, 16 }
  0x48   : > { %1938 = vmatpush3.bf16.msra.mxu0 %v2099_v6  ;;  %1934 = vmatmul.mubr.bf16.vlgmr.msra.gmra.mrb[4].mxu1 %v2308_v47  ;;  %v2118_v47 = vld [vmem:[%s2517_s1 + $0x180] sm:$0xff]  }
  0x49   : > { %1958 = vmatpush3.bf16.msra.mxu1 %v2102_v7  ;;  %1939 = vmatprep.subr.bf16.mxu0 %v2103_v10  ;;  %v1168_v45 = vrot.slane %v1166_v38, 2  ;;  %v2139_v6 = vld [vmem:[%s2517_s1 + $0x200] sm:$0xff]   ;;  %v2140_v7 = vld [vmem:[%s2517_s1 + $0x208] sm:$0xff]  }
  0x4a   : > { %1959 = vmatprep.subr.bf16.mxu1 %v2104_v11  ;;  %1953 = vmatprep.mubr.bf16.mxu0 %v777_v14  ;;  %v2145_v14 = vld [vmem:[%s2517_s1 + $0x230] sm:$0xff]  }
  0x4b   : > { %1973 = vmatprep.mubr.bf16.mxu1 %v1667_v15  ;;  %v1172_v53 = vor.u32 %v1171_v46, %v1168_v45  ;;  %v2146_v15 = vld [vmem:[%s2517_s1 + $0x238] sm:$0xff]  }
  0x4c   : > { %1940 = vmatpush3.bf16.msra.mxu0 %v2103_v10  ;;  %v2143_v10 = vld [vmem:[%s2517_s1 + $0x220] sm:$0xff]  }
  0x4d   : > { %1960 = vmatpush3.bf16.msra.mxu1 %v2104_v11  ;;  %1941 = vmatprep.subr.bf16.mxu0 %v2105_v16  ;;  %v1173_v57 = vsel %vm1156_vm5, %v1164_v52, %v1172_v53  ;;  %v2144_v11 = vld [vmem:[%s2517_s1 + $0x228] sm:$0xff]  }
  0x4e   : > { %1961 = vmatprep.subr.bf16.mxu1 %v2106_v17 }
  0x50   : > { %1942 = vmatpush3.bf16.msra.mxu0 %v2105_v16 }
  0x51   : > { %1962 = vmatpush3.bf16.msra.mxu1 %v2106_v17  ;;  %1943 = vmatprep.subr.bf16.mxu0 %v2107_v12 }
  0x52   : > { %1963 = vmatprep.subr.bf16.mxu1 %v2108_v13 }
  0x54   : > { %1944 = vmatpush3.bf16.msra.mxu0 %v2107_v12 }
  0x55   : > { %1964 = vmatpush3.bf16.msra.mxu1 %v2108_v13  ;;  %1945 = vmatprep.subr.bf16.mxu0 %v2109_v20 }
  0x56   : > { %1965 = vmatprep.subr.bf16.mxu1 %v2110_v21 }
  0x58   : > { %1946 = vmatpush3.bf16.msra.mxu0 %v2109_v20 }
  0x59   : > { %1966 = vmatpush3.bf16.msra.mxu1 %v2110_v21  ;;  %1947 = vmatprep.subr.bf16.mxu0 %v2111_v27 }
  0x5a   : > { %1967 = vmatprep.subr.bf16.mxu1 %v2112_v29 }
  0x5c   : > { %1948 = vmatpush3.bf16.msra.mxu0 %v2111_v27 }
  0x5d   : > { %1968 = vmatpush3.bf16.msra.mxu1 %v2112_v29  ;;  %1949 = vmatprep.subr.bf16.mxu0 %v2113_v33 }
  0x5e   : > { %1969 = vmatprep.subr.bf16.mxu1 %v2114_v34 }
  0x60   : > { %1950 = vmatpush3.bf16.msra.mxu0 %v2113_v33 }
  0x61   : > { %1970 = vmatpush3.bf16.msra.mxu1 %v2114_v34  ;;  %1951 = vmatprep.subr.bf16.mxu0 %v2115_v40 }
  0x62   : > { %1971 = vmatprep.subr.bf16.mxu1 %v2116_v41 }
  0x64   : > { %1952 = vmatpush3.bf16.msra.mxu0 %v2115_v40 }
  0x65   : > { %1972 = vmatpush3.bf16.msra.mxu1 %v2116_v41  ;;  %1977 = vmatprep.subr.bf16.mxu0 %v2118_v47 }
  0x66   : > { %1997 = vmatprep.subr.bf16.mxu1 %v2121_v48 }
  0x67   : > { %1954 = vmatmul.mubr.bf16.vlgmr.msra.gmra.mrb[8].mxu0 %v2356_v9  ;;  %v2142_v9 = vld [vmem:[%s2517_s1 + $0x218] sm:$0xff]  }
  0x68   : > { %1978 = vmatpush3.bf16.msra.mxu0 %v2118_v47  ;;  %1974 = vmatmul.mubr.bf16.vlgmr.msra.gmra.mrb[8].mxu1 %v1668_v51 }
  0x69   : > { %1998 = vmatpush3.bf16.msra.mxu1 %v2121_v48  ;;  %1979 = vmatprep.subr.bf16.mxu0 %v2122_v54 }
  0x6a   : > { %1999 = vmatprep.subr.bf16.mxu1 %v2123_v55  ;;  %1993 = vmatprep.mubr.bf16.mxu0 %v1033_v56 }
  0x6b   : > { %2013 = vmatprep.mubr.bf16.mxu1 %v1173_v57 }
  0x6c   : > { %1980 = vmatpush3.bf16.msra.mxu0 %v2122_v54 }
  0x6d   : > { %2000 = vmatpush3.bf16.msra.mxu1 %v2123_v55  ;;  %1981 = vmatprep.subr.bf16.mxu0 %v2124_v58 }
  0x6e   : > { %2001 = vmatprep.subr.bf16.mxu1 %v2125_v59 }
  0x70   : > { %1982 = vmatpush3.bf16.msra.mxu0 %v2124_v58 }
  0x71   : > { %2002 = vmatpush3.bf16.msra.mxu1 %v2125_v59  ;;  %1983 = vmatprep.subr.bf16.mxu0 %v2126_v60 }
  0x72   : > { %2003 = vmatprep.subr.bf16.mxu1 %v2127_v61 }
  0x74   : > { %1984 = vmatpush3.bf16.msra.mxu0 %v2126_v60 }
  0x75   : > { %2004 = vmatpush3.bf16.msra.mxu1 %v2127_v61  ;;  %1985 = vmatprep.subr.bf16.mxu0 %v2128_v62 }
  0x76   : > { %2005 = vmatprep.subr.bf16.mxu1 %v2129_v63 }
  0x78   : > { %1986 = vmatpush3.bf16.msra.mxu0 %v2128_v62 }
  0x79   : > { %2006 = vmatpush3.bf16.msra.mxu1 %v2129_v63  ;;  %1987 = vmatprep.subr.bf16.mxu0 %v2130_v0 }
  0x7a   : > { %2007 = vmatprep.subr.bf16.mxu1 %v2131_v1 }
  0x7c   : > { %1988 = vmatpush3.bf16.msra.mxu0 %v2130_v0 }
  0x7d   : > { %2008 = vmatpush3.bf16.msra.mxu1 %v2131_v1  ;;  %1989 = vmatprep.subr.bf16.mxu0 %v2132_v2 }
  0x7e   : > { %2009 = vmatprep.subr.bf16.mxu1 %v2133_v3 }
  0x80   : > { %1990 = vmatpush3.bf16.msra.mxu0 %v2132_v2 }
  0x81   : > { %2010 = vmatpush3.bf16.msra.mxu1 %v2133_v3  ;;  %1991 = vmatprep.subr.bf16.mxu0 %v2134_v4 }
  0x82   : > { %2011 = vmatprep.subr.bf16.mxu1 %v2135_v5 }
  0x84   : > { %1992 = vmatpush3.bf16.msra.mxu0 %v2134_v4  ;;  %v1753_v4 = vld [vmem:[%s2518_s2] ss:$0 sm:$0xff] }
  0x85   : > { %2012 = vmatpush3.bf16.msra.mxu1 %v2135_v5  ;;  %2017 = vmatprep.subr.bf16.mxu0 %v2139_v6 }
  0x87   : > { %1994 = vmatmul.mubr.bf16.vlgmr.msra.gmra.mrb[12].mxu0 %v1032_v50 }
  0x88   : > { %2018 = vmatpush3.bf16.msra.mxu0 %v2139_v6  ;;  %2014 = vmatmul.mubr.bf16.vlgmr.msra.gmra.mrb[12].mxu1 %v1172_v53 }
  0x89   : > { %2019 = vmatprep.subr.bf16.mxu0 %v2140_v7  ;;  %2033 = vmatprep.mubr.bf16.mxu0 %v2405_v32 }
  0x8c   : > { %2020 = vmatpush3.bf16.msra.mxu0 %v2140_v7 }
  0x8d   : > { %2021 = vmatprep.subr.bf16.mxu0 %v2141_v8 }
  0x90   : > { %2022 = vmatpush3.bf16.msra.mxu0 %v2141_v8 }
  0x91   : > { %2023 = vmatprep.subr.bf16.mxu0 %v2142_v9 }
  0x94   : > { %2024 = vmatpush3.bf16.msra.mxu0 %v2142_v9 }
  0x95   : > { %2025 = vmatprep.subr.bf16.mxu0 %v2143_v10 }
  0x98   : > { %2026 = vmatpush3.bf16.msra.mxu0 %v2143_v10 }
  0x99   : > { %2027 = vmatprep.subr.bf16.mxu0 %v2144_v11 }
  0x9c   : > { %2028 = vmatpush3.bf16.msra.mxu0 %v2144_v11 }
  0x9d   : > { %2029 = vmatprep.subr.bf16.mxu0 %v2145_v14 }
  0xa0   : > { %2030 = vmatpush3.bf16.msra.mxu0 %v2145_v14 }
  0xa1   : > { %2031 = vmatprep.subr.bf16.mxu0 %v2146_v15 }
  0xa4   : > { %2032 = vmatpush3.bf16.msra.mxu0 %v2146_v15 }
  0xa7   : > { %2034 = vmatmul.mubr.bf16.vlgmr.msra.gmra.mrb[16].mxu0 %v1297_v26 }
  0xfa   : > { %v1875_v16 = vpop.f32.mrb[0].mxu0 }
  0xfb   : > { %v1895_v17 = vpop.f32.mrb[0].mxu1  ;;  %v370_v12 = vpop.f32.mrb[1].mxu0 }
  0xfc   : > { %v478_v13 = vadd.f32 %v1895_v17, %v1875_v16  ;;  %v469_v18 = vpop.f32.mrb[1].mxu1  ;;  %v1876_v19 = vpop.f32.mrb[2].mxu0 }
  0xfd   : > { %v470_v20 = vadd.f32 %v469_v18, %v370_v12  ;;  %v1896_v21 = vpop.f32.mrb[2].mxu1  ;;  %v373_v23 = vpop.f32.mrb[3].mxu0 }
  0xfe   : > { %v472_v24 = vpop.f32.mrb[3].mxu1 }
  0xff   : > { %v473_v25 = vadd.f32 %v472_v24, %v373_v23 }
 0x11a   : > { %v1915_v27 = vpop.f32.mrb[4].mxu0 }
 0x11b   : > { %v608_v28 = vadd.f32 %v1915_v27, %v478_v13  ;;  %v592_v29 = vpop.f32.mrb[5].mxu0  ;;  %v1935_v30 = vpop.f32.mrb[4].mxu1 }
 0x11c   : > { %v606_v31 = vadd.f32 %v592_v29, %v470_v20  ;;  %v1916_v32 = vpop.f32.mrb[6].mxu0  ;;  %v722_v33 = vpop.f32.mrb[5].mxu1 }
 0x11d   : > { %v738_v22 = vadd.f32 %v1935_v30, %v608_v28  ;;  %v595_v26 = vpop.f32.mrb[7].mxu0  ;;  %v1936_v34 = vpop.f32.mrb[6].mxu1 }
 0x11e   : > { %v607_v35 = vadd.f32 %v595_v26, %v473_v25  ;;  %v736_v36 = vadd.f32 %v722_v33, %v606_v31  ;;  %v725_v37 = vpop.f32.mrb[7].mxu1 }
 0x120   : > { %v737_v38 = vadd.f32 %v725_v37, %v607_v35 }
 0x13a   : > { %v1955_v39 = vpop.f32.mrb[8].mxu0 }
 0x13b   : > { %v878_v40 = vadd.f32 %v1955_v39, %v738_v22  ;;  %v862_v41 = vpop.f32.mrb[9].mxu0  ;;  %v1975_v42 = vpop.f32.mrb[8].mxu1 }
 0x13c   : > { %v876_v43 = vadd.f32 %v862_v41, %v736_v36  ;;  %v1956_v44 = vpop.f32.mrb[10].mxu0  ;;  %v982_v45 = vpop.f32.mrb[9].mxu1 }
 0x13d   : > { %v998_v46 = vadd.f32 %v1975_v42, %v878_v40  ;;  %v865_v47 = vpop.f32.mrb[11].mxu0  ;;  %v1976_v48 = vpop.f32.mrb[10].mxu1 }
 0x13e   : > { %v877_v49 = vadd.f32 %v865_v47, %v737_v38  ;;  %v996_v50 = vadd.f32 %v982_v45, %v876_v43  ;;  %v985_v51 = vpop.f32.mrb[11].mxu1 }
 0x140   : > { %v997_v52 = vadd.f32 %v985_v51, %v877_v49 }
 0x15a   : > { %v1995_v53 = vpop.f32.mrb[12].mxu0 }
 0x15b   : > { %v1134_v54 = vadd.f32 %v1995_v53, %v998_v46  ;;  %v1118_v55 = vpop.f32.mrb[13].mxu0  ;;  %v2015_v56 = vpop.f32.mrb[12].mxu1 }
 0x15c   : > { %v1132_v57 = vadd.f32 %v1118_v55, %v996_v50  ;;  %v1996_v58 = vpop.f32.mrb[14].mxu0  ;;  %v1258_v59 = vpop.f32.mrb[13].mxu1 }
 0x15d   : > { %v1274_v60 = vadd.f32 %v2015_v56, %v1134_v54  ;;  %v1121_v61 = vpop.f32.mrb[15].mxu0  ;;  %v2016_v62 = vpop.f32.mrb[14].mxu1 }
 0x15e   : > { %v1133_v63 = vadd.f32 %v1121_v61, %v997_v52  ;;  %v1272_v0 = vadd.f32 %v1258_v59, %v1132_v57  ;;  %v1261_v1 = vpop.f32.mrb[15].mxu1 }
 0x160   : > { %v1273_v2 = vadd.f32 %v1261_v1, %v1133_v63 }
 0x17a   : > { %v2035_v3 = vpop.f32.mrb[16].mxu0 }
 0x17b   : > { %v1399_v5 = vadd.f32 %v2035_v3, %v1274_v60  ;;  %v1383_v6 = vpop.f32.mrb[17].mxu0 }
 0x17c   : > { %v1397_v7 = vadd.f32 %v1383_v6, %v1272_v0  ;;  %v2036_v8 = vpop.f32.mrb[18].mxu0 }
 0x17d   : > { %v1409_v9 = vadd.f32 %v1753_v4, %v1399_v5  ;;  %v1386_v10 = vpop.f32.mrb[19].mxu0 }
 0x17e   : > { %v1398_v11 = vadd.f32 %v1386_v10, %v1273_v2  ;;  %v1407_v15 = vadd.f32 %v1753_v4, %v1397_v7 }
 0x17f   : > { %v1761_v14 = vpack.c.bf16 %v1409_v9, %v1409_v9 }
 0x180   : > { %v1408_v16 = vadd.f32 %v1753_v4, %v1398_v11 }
 0x181   : > { %1425 = vst [vmem:[%s221_s6 + $0x8] sm:$0xf] %v1761_v14 }
 0x182   : > { %v1765_v17 = vpack.c.bf16 %v1408_v16, %v1407_v15 }
 0x184   : > { %1766 = vst [vmem:[%s221_s6] sm:$0xff] %v1765_v17  }
 0x185 PF: > { %s13_s14 = sadd.s32 1, %s2170_s14   ;;  %s2520_s12 = smov %s2166_s13 }
 0x186   : > { %p10_p5 = scmp.ge.s32.totalorder %s13_s14, 4   ;;  %s2521_s13 = smov %s2523_s15 }
 0x188   :  { %12 = sbr.rel (!%p10_p5) target bundleno = 2 (0x2), region = 76 }

</bundles_post_ra>
